<compile_context>
chip_gen: v7x
topology: tpu7x:2x2x1
jax: 0.10.0
libtpu: 0.0.40
codegen_flags: <defaults>
</compile_context>

<pallas_src>
import functools

import jax
import jax.numpy as jnp
from jax import lax
from jax.experimental import pallas as pl
from jax.experimental.pallas import tpu as pltpu

_VOCAB = 262


def _round_up(x, m):
    return (x + m - 1) // m * m


# ---------------------------------------------------------------------------
# Kernel
# ---------------------------------------------------------------------------
def classifier_kernel(ids_ref, ef_ref, eb_ref, bin_ref, whh_ref, wout_ref,
                      bout_ref, logits_ref, argmax_ref, gx_ref):
    LB2 = ids_ref.shape[0]            # 2 * L * Bp  (fwd stream ; reversed stream)
    LB = LB2 // 2
    VP = ef_ref.shape[0]              # padded vocab (multiple of 128)
    L, Bp, G = gx_ref.shape           # G = 8H
    D2 = whh_ref.shape[0]             # 2H
    Cp = wout_ref.shape[1]            # padded class count (multiple of 128)

    # --- embedding gather + input projection, fused via folded tables -------
    # e_fwd / e_bwd = embed @ W_in_{fwd,bwd} pre-folded offline, so a one-hot
    # MXU matmul against them yields the gate pre-activations directly at full
    # 256-lane output width (no lane concat, no f32->bf16 recast afterwards).
    # Selection is exact (exactly one nonzero per one-hot row).  One iota /
    # compare builds the one-hot for both streams at once.
    iota_v = lax.broadcasted_iota(jnp.int32, (LB2, VP), 1)
    oh = (iota_v == ids_ref[...]).astype(jnp.bfloat16)
    sel_f = jnp.dot(oh[:LB], ef_ref[...], preferred_element_type=jnp.float32)
    sel_b = jnp.dot(oh[LB:], eb_ref[...], preferred_element_type=jnp.float32)
    # fwd rows populate only the fwd gate slots, bwd rows only the bwd slots
    # (disjoint column blocks), so a plain add merges them.  The backward
    # stream is already time-reversed, so the recurrence only reads gx[t].
    gx_ref[...] = (sel_f + sel_b + bin_ref[...]).reshape(L, Bp, G)

    # --- bidirectional recurrence, both directions fused per step -----------
    whh = whh_ref[...]                # hoisted once: (2H, 8H) bf16, block-diag
    D6 = 3 * D2                       # extent of the i/f/o gate columns

    def step(t, carry):
        h, c = carry                  # (Bp, 2H) f32 each, layout [fwd | bwd]
        g = gx_ref[t] + jnp.dot(h.astype(jnp.bfloat16), whh,
                                preferred_element_type=jnp.float32)
        s = jax.nn.sigmoid(g[:, :D6])   # i/f/o only (skip the g-gate quarter)
        i_g = s[:, 0 * D2:1 * D2]
        f_g = s[:, 1 * D2:2 * D2]
        o_g = s[:, 2 * D2:3 * D2]
        g_g = jnp.tanh(g[:, D6:])
        c = f_g * c + i_g * g_g       # f32 cell state (no bf16 drift)
        h = o_g * jnp.tanh(c)
        return h, c

    z = jnp.zeros((Bp, D2), jnp.float32)
    h_cat, _ = lax.fori_loop(0, L, step, (z, z), unroll=True)

    # --- lane-dense bf16 epilogue: [h_fwd | h_bwd] @ W_out + b, then argmax --
    y = jnp.dot(h_cat.astype(jnp.bfloat16), wout_ref[...],
                preferred_element_type=jnp.float32) + bout_ref[...]
    logits_ref[...] = y

    # argmax over classes (first occurrence on ties); padded columns carry a
    # -1e30 bias so they never win.  int32 output (torch returns int64).
    col = lax.broadcasted_iota(jnp.int32, (Bp, Cp), 1)
    maxv = jnp.max(y, axis=-1, keepdims=True)
    argmax_ref[...] = jnp.min(jnp.where(y == maxv, col, Cp),
                              axis=-1, keepdims=True).astype(jnp.int32)


# ---------------------------------------------------------------------------
# Wrapper
# ---------------------------------------------------------------------------
def classifier_forward(packed, inputs):
    B = inputs.shape[0]
    ids = inputs.reshape(B, -1).astype(jnp.int32)            # inputs.view(B, -1)
    L = ids.shape[1]
    Bp = _round_up(max(B, 8), 8)                             # pad batch to 8

    H = packed["hidden_size"]
    C = packed["class_size"]
    Cp = packed["b_out"].shape[1]

    # Tiny integer-only glue: batch pad + stacked time-major / time-reversed
    # id streams (one tensor -> one iota/compare inside the kernel).
    ids_p = jnp.zeros((Bp, L), jnp.int32).at[:B].set(ids)
    ids_f = jnp.transpose(ids_p, (1, 0)).reshape(L * Bp, 1)           # x_t
    ids_b = jnp.transpose(ids_p[:, ::-1], (1, 0)).reshape(L * Bp, 1)  # x_{L-1-t}
    ids_stack = jnp.concatenate([ids_f, ids_b], axis=0)               # (2*L*Bp, 1)

    vmem = functools.partial(pl.BlockSpec, memory_space=pltpu.MemorySpace.VMEM)
    logits, argmax = pl.pallas_call(
        classifier_kernel,
        out_shape=(jax.ShapeDtypeStruct((Bp, Cp), jnp.float32),
                   jax.ShapeDtypeStruct((Bp, 1), jnp.int32)),
        in_specs=[vmem() for _ in range(7)],
        out_specs=(vmem(), vmem()),
        scratch_shapes=[pltpu.VMEM((L, Bp, 8 * H), jnp.float32)],
        compiler_params=pltpu.CompilerParams(
            vmem_limit_bytes=32 * 1024 * 1024),
    )(ids_stack, packed["e_fwd"], packed["e_bwd"], packed["b_in"],
      packed["w_hh"], packed["w_out"], packed["b_out"])
    return argmax[:B, 0], logits[:B, :C]


# ---------------------------------------------------------------------------
# Parameter construction (PyTorch layout) and one-time packing
# ---------------------------------------------------------------------------
def init_torch_params(key, hidden_size, class_size):
    """Parameters in native PyTorch layout (LSTM gate order [i, f, g, o])."""
    H = hidden_size
    ks = jax.random.split(key, 11)
    s = 1.0 / (H ** 0.5)
    u = lambda k, shp: jax.random.uniform(k, shp, jnp.float32, -s, s)
    so = 1.0 / ((2 * H) ** 0.5)
    return {
        "embed":  jax.random.normal(ks[0], (_VOCAB, 2 * H), jnp.float32),
        "w_ih_f": u(ks[1], (4 * H, 2 * H)),
        "w_hh_f": u(ks[2], (4 * H, H)),
        "b_ih_f": u(ks[3], (4 * H,)),
        "b_hh_f": u(ks[4], (4 * H,)),
        "w_ih_b": u(ks[5], (4 * H, 2 * H)),
        "w_hh_b": u(ks[6], (4 * H, H)),
        "b_ih_b": u(ks[7], (4 * H,)),
        "b_hh_b": u(ks[8], (4 * H,)),
        "w_out":  jax.random.uniform(ks[9], (class_size, 2 * H),
                                     jnp.float32, -so, so),
        "b_out":  jax.random.uniform(ks[10], (class_size,),
                                     jnp.float32, -so, so),
    }


# packed gate-column slots (each H wide): 0:i_f 1:i_b 2:f_f 3:f_b 4:o_f 5:o_b 6:g_f 7:g_b
_SLOT_F = {0: 0, 1: 2, 2: 6, 3: 4}    # torch gate idx (i,f,g,o) -> packed slot
_SLOT_B = {0: 1, 1: 3, 2: 7, 3: 5}


def _pack_gate_matrix(w_f, w_b, H):
    """w_f/w_b: PyTorch (4H, K) gate matrices. Returns (K_f + K_b, 8H):
    rows 0:K_f fed by the forward-direction input, rows K_f: by the backward
    one (block structure), columns in the packed slot order above."""
    Kf, Kb = w_f.shape[1], w_b.shape[1]
    out = jnp.zeros((Kf + Kb, 8 * H), jnp.float32)
    for g in range(4):
        sf, sb = _SLOT_F[g], _SLOT_B[g]
        out = out.at[:Kf, sf * H:(sf + 1) * H].set(w_f[g * H:(g + 1) * H].T)
        out = out.at[Kf:, sb * H:(sb + 1) * H].set(w_b[g * H:(g + 1) * H].T)
    return out


def _pack_gate_bias(b_f, b_b, H):
    out = jnp.zeros((8 * H,), jnp.float32)
    for g in range(4):
        sf, sb = _SLOT_F[g], _SLOT_B[g]
        out = out.at[sf * H:(sf + 1) * H].set(b_f[g * H:(g + 1) * H])
        out = out.at[sb * H:(sb + 1) * H].set(b_b[g * H:(g + 1) * H])
    return out[None, :]


def pack_params(p, hidden_size, class_size):
    """One-time packing into kernel-friendly layouts (done outside hot path)."""
    H = hidden_size
    C = class_size
    vp = _round_up(_VOCAB, 128)
    cp = _round_up(C, 128)

    embed_pad = jnp.zeros((vp, 2 * H), jnp.float32).at[:_VOCAB].set(p["embed"])
    # Pack W_in (4H, 8H) and fold it into the embedding table per direction
    # (computed in f32, single bf16 rounding at the end).
    w_in = _pack_gate_matrix(p["w_ih_f"], p["w_ih_b"], H)
    e_fwd = (embed_pad @ w_in[:2 * H]).astype(jnp.bfloat16)        # (VP, 8H)
    e_bwd = (embed_pad @ w_in[2 * H:]).astype(jnp.bfloat16)        # (VP, 8H)

    # Lane-dense output head: zero-pad W_out columns to 128, bias padded with
    # -1e30 so the in-kernel argmax never selects a padded class.
    w_out = jnp.zeros((2 * H, cp), jnp.float32).at[:, :C].set(p["w_out"].T)
    b_out = jnp.full((1, cp), -1e30, jnp.float32).at[0, :C].set(p["b_out"])

    return {
        "hidden_size": H,
        "class_size": C,
        "e_fwd": e_fwd,                                                     # (VP, 8H) bf16
        "e_bwd": e_bwd,                                                     # (VP, 8H) bf16
        "w_hh": _pack_gate_matrix(p["w_hh_f"], p["w_hh_b"], H).astype(jnp.bfloat16),  # (2H, 8H)
        "b_in": _pack_gate_bias(p["b_ih_f"] + p["b_hh_f"],
                                p["b_ih_b"] + p["b_hh_b"], H),              # (1, 8H) f32
        "w_out": w_out.astype(jnp.bfloat16),                                # (2H, Cp) bf16
        "b_out": b_out,                                                     # (1, Cp) f32
    }


# ---------------------------------------------------------------------------
# Pure-JAX reference (f32) for a sanity check
# ---------------------------------------------------------------------------
def _reference_logits(p, inputs, H):
    B = inputs.shape[0]
    ids = inputs.reshape(B, -1)
    w = jnp.take(p["embed"], ids, axis=0)                    # (B, L, 2H)
    L = w.shape[1]

    def cell(x_t, h, c, w_ih, w_hh, b):
        g = x_t @ w_ih.T + h @ w_hh.T + b
        i = jax.nn.sigmoid(g[:, 0:H])
        f = jax.nn.sigmoid(g[:, H:2 * H])
        gg = jnp.tanh(g[:, 2 * H:3 * H])
        o = jax.nn.sigmoid(g[:, 3 * H:4 * H])
        c = f * c + i * gg
        return o * jnp.tanh(c), c

    bf = p["b_ih_f"] + p["b_hh_f"]
    bb = p["b_ih_b"] + p["b_hh_b"]
    h_f = c_f = h_b = c_b = jnp.zeros((B, H), jnp.float32)
    for t in range(L):
        h_f, c_f = cell(w[:, t], h_f, c_f, p["w_ih_f"], p["w_hh_f"], bf)
        h_b, c_b = cell(w[:, L - 1 - t], h_b, c_b, p["w_ih_b"], p["w_hh_b"], bb)
    h_cat = jnp.concatenate([h_f, h_b], axis=-1)
    return h_cat @ p["w_out"].T + p["b_out"]


if __name__ == "__main__":
    key = jax.random.PRNGKey(0)
    pkey, ikey = jax.random.split(key)

    hidden_size, class_size = 32, 10
    torch_params = init_torch_params(pkey, hidden_size, class_size)
    packed = pack_params(torch_params, hidden_size, class_size)

    # inputs: (batch=2, seq=8, chars=4) integer ids in [0, 262); forward
    # flattens to (2, 32) before the embedding, like inputs.view(B, -1).
    inputs = jax.random.randint(ikey, (2, 8, 4), 0, _VOCAB, dtype=jnp.int32)

    argmax, logits = classifier_forward(packed, inputs)
    jax.block_until_ready((argmax, logits))
    assert argmax.shape == (2,) and logits.shape == (2, class_size)

    # sanity check against an f32 pure-JAX reference (kernel uses bf16 MXU
    # weights/activations, so allow a loose tolerance).
    ref = jax.jit(lambda p, x: _reference_logits(p, x, hidden_size))(
        torch_params, inputs)
    max_err = float(jnp.max(jnp.abs(logits - ref)))
    assert max_err < 0.1, f"logits mismatch vs reference: {max_err}"

    print("KERNEL_OK")
</pallas_src>

<mosaic_0001>
module attributes {stable_mosaic.version = 11 : i64} {
  func.func @classifier_kernel(%arg0: memref<512x1xi32, #tpu.memory_space<vmem>>, %arg1: memref<384x256xbf16, #tpu.memory_space<vmem>>, %arg2: memref<384x256xbf16, #tpu.memory_space<vmem>>, %arg3: memref<1x256xf32, #tpu.memory_space<vmem>>, %arg4: memref<64x256xbf16, #tpu.memory_space<vmem>>, %arg5: memref<64x128xbf16, #tpu.memory_space<vmem>>, %arg6: memref<1x128xf32, #tpu.memory_space<vmem>>, %arg7: memref<8x128xf32, #tpu.memory_space<vmem>>, %arg8: memref<8x1xi32, #tpu.memory_space<vmem>>, %arg9: memref<32x8x256xf32, #tpu.memory_space<vmem>>) attributes {dimension_semantics = [], scalar_prefetch = 0 : i64, scratch_operands = 1 : i64, tpu.core_type = #tpu.core_type<tc>} {
    %0 = tpu.iota {dimensions = array<i32: 1>} : vector<512x384xi32>
    %c0 = arith.constant 0 : index
    %c0_0 = arith.constant 0 : index
    %1 = vector.load %arg0[%c0, %c0_0] : memref<512x1xi32, #tpu.memory_space<vmem>>, vector<512x1xi32>
    %2 = vector.broadcast %1 : vector<512x1xi32> to vector<512x384xi32>
    %3 = arith.cmpi eq, %0, %2 : vector<512x384xi32>
    %4 = arith.extui %3 : vector<512x384xi1> to vector<512x384xi32>
    %5 = arith.sitofp %4 : vector<512x384xi32> to vector<512x384xf32>
    %6 = arith.truncf %5 : vector<512x384xf32> to vector<512x384xbf16>
    %7 = vector.extract_strided_slice %6 {offsets = [0, 0], sizes = [256, 384], strides = [1, 1]} : vector<512x384xbf16> to vector<256x384xbf16>
    %c0_1 = arith.constant 0 : index
    %c0_2 = arith.constant 0 : index
    %8 = vector.load %arg1[%c0_1, %c0_2] : memref<384x256xbf16, #tpu.memory_space<vmem>>, vector<384x256xbf16>
    %cst = arith.constant dense<0.000000e+00> : vector<256x256xf32>
    %9 = tpu.matmul %7, %8, %cst {dimension_numbers = #tpu.dot_dimension_numbers<[1], [0], [0], [1], [0, 0, 1, 1], [], []>} : vector<256x384xbf16>, vector<384x256xbf16>, vector<256x256xf32> -> vector<256x256xf32>
    %10 = vector.extract_strided_slice %6 {offsets = [256, 0], sizes = [256, 384], strides = [1, 1]} : vector<512x384xbf16> to vector<256x384xbf16>
    %c0_3 = arith.constant 0 : index
    %c0_4 = arith.constant 0 : index
    %11 = vector.load %arg2[%c0_3, %c0_4] : memref<384x256xbf16, #tpu.memory_space<vmem>>, vector<384x256xbf16>
    %cst_5 = arith.constant dense<0.000000e+00> : vector<256x256xf32>
    %12 = tpu.matmul %10, %11, %cst_5 {dimension_numbers = #tpu.dot_dimension_numbers<[1], [0], [0], [1], [0, 0, 1, 1], [], []>} : vector<256x384xbf16>, vector<384x256xbf16>, vector<256x256xf32> -> vector<256x256xf32>
    %13 = arith.addf %9, %12 : vector<256x256xf32>
    %c0_6 = arith.constant 0 : index
    %c0_7 = arith.constant 0 : index
    %14 = vector.load %arg3[%c0_6, %c0_7] : memref<1x256xf32, #tpu.memory_space<vmem>>, vector<1x256xf32>
    %15 = vector.broadcast %14 : vector<1x256xf32> to vector<256x256xf32>
    %16 = arith.addf %13, %15 : vector<256x256xf32>
    %17 = vector.shape_cast %16 : vector<256x256xf32> to vector<32x8x256xf32>
    %c0_8 = arith.constant 0 : index
    %c0_9 = arith.constant 0 : index
    %c0_10 = arith.constant 0 : index
    %18 = vector.load %arg9[%c0_8, %c0_9, %c0_10] : memref<32x8x256xf32, #tpu.memory_space<vmem>>, vector<32x8x256xf32>
    tpu.vector_store %arg9[%c0_8, %c0_9, %c0_10], %17 {strides = array<i32>} : memref<32x8x256xf32, #tpu.memory_space<vmem>>, vector<32x8x256xf32>,
    %c0_11 = arith.constant 0 : index
    %c0_12 = arith.constant 0 : index
    %19 = vector.load %arg4[%c0_11, %c0_12] : memref<64x256xbf16, #tpu.memory_space<vmem>>, vector<64x256xbf16>
    %cst_13 = arith.constant 0.000000e+00 : f32
    %20 = vector.broadcast %cst_13 : f32 to vector<8x64xf32>
    %c0_i32 = arith.constant 0 : i32
    %21 = arith.index_cast %c0_i32 : i32 to index
    %c0_14 = arith.constant 0 : index
    %c0_15 = arith.constant 0 : index
    %22 = vector.load %arg9[%21, %c0_14, %c0_15] : memref<32x8x256xf32, #tpu.memory_space<vmem>>, vector<1x8x256xf32>
    %23 = vector.shape_cast %22 : vector<1x8x256xf32> to vector<8x256xf32>
    %24 = arith.truncf %20 : vector<8x64xf32> to vector<8x64xbf16>
    %cst_16 = arith.constant dense<0.000000e+00> : vector<8x256xf32>
    %25 = tpu.matmul %24, %19, %cst_16 {dimension_numbers = #tpu.dot_dimension_numbers<[1], [0], [0], [1], [0, 0, 1, 1], [], []>} : vector<8x64xbf16>, vector<64x256xbf16>, vector<8x256xf32> -> vector<8x256xf32>
    %26 = arith.addf %23, %25 : vector<8x256xf32>
    %27 = vector.extract_strided_slice %26 {offsets = [0, 0], sizes = [8, 192], strides = [1, 1]} : vector<8x256xf32> to vector<8x192xf32>
    %28 = arith.negf %27 : vector<8x192xf32>
    %29 = math.exp %28 : vector<8x192xf32>
    %cst_17 = arith.constant 1.000000e+00 : f32
    %30 = vector.broadcast %cst_17 : f32 to vector<8x192xf32>
    %31 = arith.addf %30, %29 : vector<8x192xf32>
    %32 = arith.divf %30, %31 : vector<8x192xf32>
    %33 = vector.extract_strided_slice %32 {offsets = [0, 0], sizes = [8, 64], strides = [1, 1]} : vector<8x192xf32> to vector<8x64xf32>
    %34 = vector.extract_strided_slice %32 {offsets = [0, 64], sizes = [8, 64], strides = [1, 1]} : vector<8x192xf32> to vector<8x64xf32>
    %35 = vector.extract_strided_slice %32 {offsets = [0, 128], sizes = [8, 64], strides = [1, 1]} : vector<8x192xf32> to vector<8x64xf32>
    %36 = vector.extract_strided_slice %26 {offsets = [0, 192], sizes = [8, 64], strides = [1, 1]} : vector<8x256xf32> to vector<8x64xf32>
    %37 = math.tanh %36 : vector<8x64xf32>
    %38 = arith.mulf %34, %20 : vector<8x64xf32>
    %39 = arith.mulf %33, %37 : vector<8x64xf32>
    %40 = arith.addf %38, %39 : vector<8x64xf32>
    %41 = math.tanh %40 : vector<8x64xf32>
    %42 = arith.mulf %35, %41 : vector<8x64xf32>
    %c1_i32 = arith.constant 1 : i32
    %43 = arith.index_cast %c1_i32 : i32 to index
    %c0_18 = arith.constant 0 : index
    %c0_19 = arith.constant 0 : index
    %44 = vector.load %arg9[%43, %c0_18, %c0_19] : memref<32x8x256xf32, #tpu.memory_space<vmem>>, vector<1x8x256xf32>
    %45 = vector.shape_cast %44 : vector<1x8x256xf32> to vector<8x256xf32>
    %46 = arith.truncf %42 : vector<8x64xf32> to vector<8x64xbf16>
    %cst_20 = arith.constant dense<0.000000e+00> : vector<8x256xf32>
    %47 = tpu.matmul %46, %19, %cst_20 {dimension_numbers = #tpu.dot_dimension_numbers<[1], [0], [0], [1], [0, 0, 1, 1], [], []>} : vector<8x64xbf16>, vector<64x256xbf16>, vector<8x256xf32> -> vector<8x256xf32>
    %48 = arith.addf %45, %47 : vector<8x256xf32>
    %49 = vector.extract_strided_slice %48 {offsets = [0, 0], sizes = [8, 192], strides = [1, 1]} : vector<8x256xf32> to vector<8x192xf32>
    %50 = arith.negf %49 : vector<8x192xf32>
    %51 = math.exp %50 : vector<8x192xf32>
    %cst_21 = arith.constant 1.000000e+00 : f32
    %52 = vector.broadcast %cst_21 : f32 to vector<8x192xf32>
    %53 = arith.addf %52, %51 : vector<8x192xf32>
    %54 = arith.divf %52, %53 : vector<8x192xf32>
    %55 = vector.extract_strided_slice %54 {offsets = [0, 0], sizes = [8, 64], strides = [1, 1]} : vector<8x192xf32> to vector<8x64xf32>
    %56 = vector.extract_strided_slice %54 {offsets = [0, 64], sizes = [8, 64], strides = [1, 1]} : vector<8x192xf32> to vector<8x64xf32>
    %57 = vector.extract_strided_slice %54 {offsets = [0, 128], sizes = [8, 64], strides = [1, 1]} : vector<8x192xf32> to vector<8x64xf32>
    %58 = vector.extract_strided_slice %48 {offsets = [0, 192], sizes = [8, 64], strides = [1, 1]} : vector<8x256xf32> to vector<8x64xf32>
    %59 = math.tanh %58 : vector<8x64xf32>
    %60 = arith.mulf %56, %40 : vector<8x64xf32>
    %61 = arith.mulf %55, %59 : vector<8x64xf32>
    %62 = arith.addf %60, %61 : vector<8x64xf32>
    %63 = math.tanh %62 : vector<8x64xf32>
    %64 = arith.mulf %57, %63 : vector<8x64xf32>
    %c2_i32 = arith.constant 2 : i32
    %65 = arith.index_cast %c2_i32 : i32 to index
    %c0_22 = arith.constant 0 : index
    %c0_23 = arith.constant 0 : index
    %66 = vector.load %arg9[%65, %c0_22, %c0_23] : memref<32x8x256xf32, #tpu.memory_space<vmem>>, vector<1x8x256xf32>
    %67 = vector.shape_cast %66 : vector<1x8x256xf32> to vector<8x256xf32>
    %68 = arith.truncf %64 : vector<8x64xf32> to vector<8x64xbf16>
    %cst_24 = arith.constant dense<0.000000e+00> : vector<8x256xf32>
    %69 = tpu.matmul %68, %19, %cst_24 {dimension_numbers = #tpu.dot_dimension_numbers<[1], [0], [0], [1], [0, 0, 1, 1], [], []>} : vector<8x64xbf16>, vector<64x256xbf16>, vector<8x256xf32> -> vector<8x256xf32>
    %70 = arith.addf %67, %69 : vector<8x256xf32>
    %71 = vector.extract_strided_slice %70 {offsets = [0, 0], sizes = [8, 192], strides = [1, 1]} : vector<8x256xf32> to vector<8x192xf32>
    %72 = arith.negf %71 : vector<8x192xf32>
    %73 = math.exp %72 : vector<8x192xf32>
    %cst_25 = arith.constant 1.000000e+00 : f32
    %74 = vector.broadcast %cst_25 : f32 to vector<8x192xf32>
    %75 = arith.addf %74, %73 : vector<8x192xf32>
    %76 = arith.divf %74, %75 : vector<8x192xf32>
    %77 = vector.extract_strided_slice %76 {offsets = [0, 0], sizes = [8, 64], strides = [1, 1]} : vector<8x192xf32> to vector<8x64xf32>
    %78 = vector.extract_strided_slice %76 {offsets = [0, 64], sizes = [8, 64], strides = [1, 1]} : vector<8x192xf32> to vector<8x64xf32>
    %79 = vector.extract_strided_slice %76 {offsets = [0, 128], sizes = [8, 64], strides = [1, 1]} : vector<8x192xf32> to vector<8x64xf32>
    %80 = vector.extract_strided_slice %70 {offsets = [0, 192], sizes = [8, 64], strides = [1, 1]} : vector<8x256xf32> to vector<8x64xf32>
    %81 = math.tanh %80 : vector<8x64xf32>
    %82 = arith.mulf %78, %62 : vector<8x64xf32>
    %83 = arith.mulf %77, %81 : vector<8x64xf32>
    %84 = arith.addf %82, %83 : vector<8x64xf32>
    %85 = math.tanh %84 : vector<8x64xf32>
    %86 = arith.mulf %79, %85 : vector<8x64xf32>
    %c3_i32 = arith.constant 3 : i32
    %87 = arith.index_cast %c3_i32 : i32 to index
    %c0_26 = arith.constant 0 : index
    %c0_27 = arith.constant 0 : index
    %88 = vector.load %arg9[%87, %c0_26, %c0_27] : memref<32x8x256xf32, #tpu.memory_space<vmem>>, vector<1x8x256xf32>
    %89 = vector.shape_cast %88 : vector<1x8x256xf32> to vector<8x256xf32>
    %90 = arith.truncf %86 : vector<8x64xf32> to vector<8x64xbf16>
    %cst_28 = arith.constant dense<0.000000e+00> : vector<8x256xf32>
    %91 = tpu.matmul %90, %19, %cst_28 {dimension_numbers = #tpu.dot_dimension_numbers<[1], [0], [0], [1], [0, 0, 1, 1], [], []>} : vector<8x64xbf16>, vector<64x256xbf16>, vector<8x256xf32> -> vector<8x256xf32>
    %92 = arith.addf %89, %91 : vector<8x256xf32>
    %93 = vector.extract_strided_slice %92 {offsets = [0, 0], sizes = [8, 192], strides = [1, 1]} : vector<8x256xf32> to vector<8x192xf32>
    %94 = arith.negf %93 : vector<8x192xf32>
    %95 = math.exp %94 : vector<8x192xf32>
    %cst_29 = arith.constant 1.000000e+00 : f32
    %96 = vector.broadcast %cst_29 : f32 to vector<8x192xf32>
    %97 = arith.addf %96, %95 : vector<8x192xf32>
    %98 = arith.divf %96, %97 : vector<8x192xf32>
    %99 = vector.extract_strided_slice %98 {offsets = [0, 0], sizes = [8, 64], strides = [1, 1]} : vector<8x192xf32> to vector<8x64xf32>
    %100 = vector.extract_strided_slice %98 {offsets = [0, 64], sizes = [8, 64], strides = [1, 1]} : vector<8x192xf32> to vector<8x64xf32>
    %101 = vector.extract_strided_slice %98 {offsets = [0, 128], sizes = [8, 64], strides = [1, 1]} : vector<8x192xf32> to vector<8x64xf32>
    %102 = vector.extract_strided_slice %92 {offsets = [0, 192], sizes = [8, 64], strides = [1, 1]} : vector<8x256xf32> to vector<8x64xf32>
    %103 = math.tanh %102 : vector<8x64xf32>
    %104 = arith.mulf %100, %84 : vector<8x64xf32>
    %105 = arith.mulf %99, %103 : vector<8x64xf32>
    %106 = arith.addf %104, %105 : vector<8x64xf32>
    %107 = math.tanh %106 : vector<8x64xf32>
    %108 = arith.mulf %101, %107 : vector<8x64xf32>
    %c4_i32 = arith.constant 4 : i32
    %109 = arith.index_cast %c4_i32 : i32 to index
    %c0_30 = arith.constant 0 : index
    %c0_31 = arith.constant 0 : index
    %110 = vector.load %arg9[%109, %c0_30, %c0_31] : memref<32x8x256xf32, #tpu.memory_space<vmem>>, vector<1x8x256xf32>
    %111 = vector.shape_cast %110 : vector<1x8x256xf32> to vector<8x256xf32>
    %112 = arith.truncf %108 : vector<8x64xf32> to vector<8x64xbf16>
    %cst_32 = arith.constant dense<0.000000e+00> : vector<8x256xf32>
    %113 = tpu.matmul %112, %19, %cst_32 {dimension_numbers = #tpu.dot_dimension_numbers<[1], [0], [0], [1], [0, 0, 1, 1], [], []>} : vector<8x64xbf16>, vector<64x256xbf16>, vector<8x256xf32> -> vector<8x256xf32>
    %114 = arith.addf %111, %113 : vector<8x256xf32>
    %115 = vector.extract_strided_slice %114 {offsets = [0, 0], sizes = [8, 192], strides = [1, 1]} : vector<8x256xf32> to vector<8x192xf32>
    %116 = arith.negf %115 : vector<8x192xf32>
    %117 = math.exp %116 : vector<8x192xf32>
    %cst_33 = arith.constant 1.000000e+00 : f32
    %118 = vector.broadcast %cst_33 : f32 to vector<8x192xf32>
    %119 = arith.addf %118, %117 : vector<8x192xf32>
    %120 = arith.divf %118, %119 : vector<8x192xf32>
    %121 = vector.extract_strided_slice %120 {offsets = [0, 0], sizes = [8, 64], strides = [1, 1]} : vector<8x192xf32> to vector<8x64xf32>
    %122 = vector.extract_strided_slice %120 {offsets = [0, 64], sizes = [8, 64], strides = [1, 1]} : vector<8x192xf32> to vector<8x64xf32>
    %123 = vector.extract_strided_slice %120 {offsets = [0, 128], sizes = [8, 64], strides = [1, 1]} : vector<8x192xf32> to vector<8x64xf32>
    %124 = vector.extract_strided_slice %114 {offsets = [0, 192], sizes = [8, 64], strides = [1, 1]} : vector<8x256xf32> to vector<8x64xf32>
    %125 = math.tanh %124 : vector<8x64xf32>
    %126 = arith.mulf %122, %106 : vector<8x64xf32>
    %127 = arith.mulf %121, %125 : vector<8x64xf32>
    %128 = arith.addf %126, %127 : vector<8x64xf32>
    %129 = math.tanh %128 : vector<8x64xf32>
    %130 = arith.mulf %123, %129 : vector<8x64xf32>
    %c5_i32 = arith.constant 5 : i32
    %131 = arith.index_cast %c5_i32 : i32 to index
    %c0_34 = arith.constant 0 : index
    %c0_35 = arith.constant 0 : index
    %132 = vector.load %arg9[%131, %c0_34, %c0_35] : memref<32x8x256xf32, #tpu.memory_space<vmem>>, vector<1x8x256xf32>
    %133 = vector.shape_cast %132 : vector<1x8x256xf32> to vector<8x256xf32>
    %134 = arith.truncf %130 : vector<8x64xf32> to vector<8x64xbf16>
    %cst_36 = arith.constant dense<0.000000e+00> : vector<8x256xf32>
    %135 = tpu.matmul %134, %19, %cst_36 {dimension_numbers = #tpu.dot_dimension_numbers<[1], [0], [0], [1], [0, 0, 1, 1], [], []>} : vector<8x64xbf16>, vector<64x256xbf16>, vector<8x256xf32> -> vector<8x256xf32>
    %136 = arith.addf %133, %135 : vector<8x256xf32>
    %137 = vector.extract_strided_slice %136 {offsets = [0, 0], sizes = [8, 192], strides = [1, 1]} : vector<8x256xf32> to vector<8x192xf32>
    %138 = arith.negf %137 : vector<8x192xf32>
    %139 = math.exp %138 : vector<8x192xf32>
    %cst_37 = arith.constant 1.000000e+00 : f32
    %140 = vector.broadcast %cst_37 : f32 to vector<8x192xf32>
    %141 = arith.addf %140, %139 : vector<8x192xf32>
    %142 = arith.divf %140, %141 : vector<8x192xf32>
    %143 = vector.extract_strided_slice %142 {offsets = [0, 0], sizes = [8, 64], strides = [1, 1]} : vector<8x192xf32> to vector<8x64xf32>
    %144 = vector.extract_strided_slice %142 {offsets = [0, 64], sizes = [8, 64], strides = [1, 1]} : vector<8x192xf32> to vector<8x64xf32>
    %145 = vector.extract_strided_slice %142 {offsets = [0, 128], sizes = [8, 64], strides = [1, 1]} : vector<8x192xf32> to vector<8x64xf32>
    %146 = vector.extract_strided_slice %136 {offsets = [0, 192], sizes = [8, 64], strides = [1, 1]} : vector<8x256xf32> to vector<8x64xf32>
    %147 = math.tanh %146 : vector<8x64xf32>
    %148 = arith.mulf %144, %128 : vector<8x64xf32>
    %149 = arith.mulf %143, %147 : vector<8x64xf32>
    %150 = arith.addf %148, %149 : vector<8x64xf32>
    %151 = math.tanh %150 : vector<8x64xf32>
    %152 = arith.mulf %145, %151 : vector<8x64xf32>
    %c6_i32 = arith.constant 6 : i32
    %153 = arith.index_cast %c6_i32 : i32 to index
    %c0_38 = arith.constant 0 : index
    %c0_39 = arith.constant 0 : index
    %154 = vector.load %arg9[%153, %c0_38, %c0_39] : memref<32x8x256xf32, #tpu.memory_space<vmem>>, vector<1x8x256xf32>
    %155 = vector.shape_cast %154 : vector<1x8x256xf32> to vector<8x256xf32>
    %156 = arith.truncf %152 : vector<8x64xf32> to vector<8x64xbf16>
    %cst_40 = arith.constant dense<0.000000e+00> : vector<8x256xf32>
    %157 = tpu.matmul %156, %19, %cst_40 {dimension_numbers = #tpu.dot_dimension_numbers<[1], [0], [0], [1], [0, 0, 1, 1], [], []>} : vector<8x64xbf16>, vector<64x256xbf16>, vector<8x256xf32> -> vector<8x256xf32>
    %158 = arith.addf %155, %157 : vector<8x256xf32>
    %159 = vector.extract_strided_slice %158 {offsets = [0, 0], sizes = [8, 192], strides = [1, 1]} : vector<8x256xf32> to vector<8x192xf32>
    %160 = arith.negf %159 : vector<8x192xf32>
    %161 = math.exp %160 : vector<8x192xf32>
    %cst_41 = arith.constant 1.000000e+00 : f32
    %162 = vector.broadcast %cst_41 : f32 to vector<8x192xf32>
    %163 = arith.addf %162, %161 : vector<8x192xf32>
    %164 = arith.divf %162, %163 : vector<8x192xf32>
    %165 = vector.extract_strided_slice %164 {offsets = [0, 0], sizes = [8, 64], strides = [1, 1]} : vector<8x192xf32> to vector<8x64xf32>
    %166 = vector.extract_strided_slice %164 {offsets = [0, 64], sizes = [8, 64], strides = [1, 1]} : vector<8x192xf32> to vector<8x64xf32>
    %167 = vector.extract_strided_slice %164 {offsets = [0, 128], sizes = [8, 64], strides = [1, 1]} : vector<8x192xf32> to vector<8x64xf32>
    %168 = vector.extract_strided_slice %158 {offsets = [0, 192], sizes = [8, 64], strides = [1, 1]} : vector<8x256xf32> to vector<8x64xf32>
    %169 = math.tanh %168 : vector<8x64xf32>
    %170 = arith.mulf %166, %150 : vector<8x64xf32>
    %171 = arith.mulf %165, %169 : vector<8x64xf32>
    %172 = arith.addf %170, %171 : vector<8x64xf32>
    %173 = math.tanh %172 : vector<8x64xf32>
    %174 = arith.mulf %167, %173 : vector<8x64xf32>
    %c7_i32 = arith.constant 7 : i32
    %175 = arith.index_cast %c7_i32 : i32 to index
    %c0_42 = arith.constant 0 : index
    %c0_43 = arith.constant 0 : index
    %176 = vector.load %arg9[%175, %c0_42, %c0_43] : memref<32x8x256xf32, #tpu.memory_space<vmem>>, vector<1x8x256xf32>
    %177 = vector.shape_cast %176 : vector<1x8x256xf32> to vector<8x256xf32>
    %178 = arith.truncf %174 : vector<8x64xf32> to vector<8x64xbf16>
    %cst_44 = arith.constant dense<0.000000e+00> : vector<8x256xf32>
    %179 = tpu.matmul %178, %19, %cst_44 {dimension_numbers = #tpu.dot_dimension_numbers<[1], [0], [0], [1], [0, 0, 1, 1], [], []>} : vector<8x64xbf16>, vector<64x256xbf16>, vector<8x256xf32> -> vector<8x256xf32>
    %180 = arith.addf %177, %179 : vector<8x256xf32>
    %181 = vector.extract_strided_slice %180 {offsets = [0, 0], sizes = [8, 192], strides = [1, 1]} : vector<8x256xf32> to vector<8x192xf32>
    %182 = arith.negf %181 : vector<8x192xf32>
    %183 = math.exp %182 : vector<8x192xf32>
    %cst_45 = arith.constant 1.000000e+00 : f32
    %184 = vector.broadcast %cst_45 : f32 to vector<8x192xf32>
    %185 = arith.addf %184, %183 : vector<8x192xf32>
    %186 = arith.divf %184, %185 : vector<8x192xf32>
    %187 = vector.extract_strided_slice %186 {offsets = [0, 0], sizes = [8, 64], strides = [1, 1]} : vector<8x192xf32> to vector<8x64xf32>
    %188 = vector.extract_strided_slice %186 {offsets = [0, 64], sizes = [8, 64], strides = [1, 1]} : vector<8x192xf32> to vector<8x64xf32>
    %189 = vector.extract_strided_slice %186 {offsets = [0, 128], sizes = [8, 64], strides = [1, 1]} : vector<8x192xf32> to vector<8x64xf32>
    %190 = vector.extract_strided_slice %180 {offsets = [0, 192], sizes = [8, 64], strides = [1, 1]} : vector<8x256xf32> to vector<8x64xf32>
    %191 = math.tanh %190 : vector<8x64xf32>
    %192 = arith.mulf %188, %172 : vector<8x64xf32>
    %193 = arith.mulf %187, %191 : vector<8x64xf32>
    %194 = arith.addf %192, %193 : vector<8x64xf32>
    %195 = math.tanh %194 : vector<8x64xf32>
    %196 = arith.mulf %189, %195 : vector<8x64xf32>
    %c8_i32 = arith.constant 8 : i32
    %197 = arith.index_cast %c8_i32 : i32 to index
    %c0_46 = arith.constant 0 : index
    %c0_47 = arith.constant 0 : index
    %198 = vector.load %arg9[%197, %c0_46, %c0_47] : memref<32x8x256xf32, #tpu.memory_space<vmem>>, vector<1x8x256xf32>
    %199 = vector.shape_cast %198 : vector<1x8x256xf32> to vector<8x256xf32>
    %200 = arith.truncf %196 : vector<8x64xf32> to vector<8x64xbf16>
    %cst_48 = arith.constant dense<0.000000e+00> : vector<8x256xf32>
    %201 = tpu.matmul %200, %19, %cst_48 {dimension_numbers = #tpu.dot_dimension_numbers<[1], [0], [0], [1], [0, 0, 1, 1], [], []>} : vector<8x64xbf16>, vector<64x256xbf16>, vector<8x256xf32> -> vector<8x256xf32>
    %202 = arith.addf %199, %201 : vector<8x256xf32>
    %203 = vector.extract_strided_slice %202 {offsets = [0, 0], sizes = [8, 192], strides = [1, 1]} : vector<8x256xf32> to vector<8x192xf32>
    %204 = arith.negf %203 : vector<8x192xf32>
    %205 = math.exp %204 : vector<8x192xf32>
    %cst_49 = arith.constant 1.000000e+00 : f32
    %206 = vector.broadcast %cst_49 : f32 to vector<8x192xf32>
    %207 = arith.addf %206, %205 : vector<8x192xf32>
    %208 = arith.divf %206, %207 : vector<8x192xf32>
    %209 = vector.extract_strided_slice %208 {offsets = [0, 0], sizes = [8, 64], strides = [1, 1]} : vector<8x192xf32> to vector<8x64xf32>
    %210 = vector.extract_strided_slice %208 {offsets = [0, 64], sizes = [8, 64], strides = [1, 1]} : vector<8x192xf32> to vector<8x64xf32>
    %211 = vector.extract_strided_slice %208 {offsets = [0, 128], sizes = [8, 64], strides = [1, 1]} : vector<8x192xf32> to vector<8x64xf32>
    %212 = vector.extract_strided_slice %202 {offsets = [0, 192], sizes = [8, 64], strides = [1, 1]} : vector<8x256xf32> to vector<8x64xf32>
    %213 = math.tanh %212 : vector<8x64xf32>
    %214 = arith.mulf %210, %194 : vector<8x64xf32>
    %215 = arith.mulf %209, %213 : vector<8x64xf32>
    %216 = arith.addf %214, %215 : vector<8x64xf32>
    %217 = math.tanh %216 : vector<8x64xf32>
    %218 = arith.mulf %211, %217 : vector<8x64xf32>
    %c9_i32 = arith.constant 9 : i32
    %219 = arith.index_cast %c9_i32 : i32 to index
    %c0_50 = arith.constant 0 : index
    %c0_51 = arith.constant 0 : index
    %220 = vector.load %arg9[%219, %c0_50, %c0_51] : memref<32x8x256xf32, #tpu.memory_space<vmem>>, vector<1x8x256xf32>
    %221 = vector.shape_cast %220 : vector<1x8x256xf32> to vector<8x256xf32>
    %222 = arith.truncf %218 : vector<8x64xf32> to vector<8x64xbf16>
    %cst_52 = arith.constant dense<0.000000e+00> : vector<8x256xf32>
    %223 = tpu.matmul %222, %19, %cst_52 {dimension_numbers = #tpu.dot_dimension_numbers<[1], [0], [0], [1], [0, 0, 1, 1], [], []>} : vector<8x64xbf16>, vector<64x256xbf16>, vector<8x256xf32> -> vector<8x256xf32>
    %224 = arith.addf %221, %223 : vector<8x256xf32>
    %225 = vector.extract_strided_slice %224 {offsets = [0, 0], sizes = [8, 192], strides = [1, 1]} : vector<8x256xf32> to vector<8x192xf32>
    %226 = arith.negf %225 : vector<8x192xf32>
    %227 = math.exp %226 : vector<8x192xf32>
    %cst_53 = arith.constant 1.000000e+00 : f32
    %228 = vector.broadcast %cst_53 : f32 to vector<8x192xf32>
    %229 = arith.addf %228, %227 : vector<8x192xf32>
    %230 = arith.divf %228, %229 : vector<8x192xf32>
    %231 = vector.extract_strided_slice %230 {offsets = [0, 0], sizes = [8, 64], strides = [1, 1]} : vector<8x192xf32> to vector<8x64xf32>
    %232 = vector.extract_strided_slice %230 {offsets = [0, 64], sizes = [8, 64], strides = [1, 1]} : vector<8x192xf32> to vector<8x64xf32>
    %233 = vector.extract_strided_slice %230 {offsets = [0, 128], sizes = [8, 64], strides = [1, 1]} : vector<8x192xf32> to vector<8x64xf32>
    %234 = vector.extract_strided_slice %224 {offsets = [0, 192], sizes = [8, 64], strides = [1, 1]} : vector<8x256xf32> to vector<8x64xf32>
    %235 = math.tanh %234 : vector<8x64xf32>
    %236 = arith.mulf %232, %216 : vector<8x64xf32>
    %237 = arith.mulf %231, %235 : vector<8x64xf32>
    %238 = arith.addf %236, %237 : vector<8x64xf32>
    %239 = math.tanh %238 : vector<8x64xf32>
    %240 = arith.mulf %233, %239 : vector<8x64xf32>
    %c10_i32 = arith.constant 10 : i32
    %241 = arith.index_cast %c10_i32 : i32 to index
    %c0_54 = arith.constant 0 : index
    %c0_55 = arith.constant 0 : index
    %242 = vector.load %arg9[%241, %c0_54, %c0_55] : memref<32x8x256xf32, #tpu.memory_space<vmem>>, vector<1x8x256xf32>
    %243 = vector.shape_cast %242 : vector<1x8x256xf32> to vector<8x256xf32>
    %244 = arith.truncf %240 : vector<8x64xf32> to vector<8x64xbf16>
    %cst_56 = arith.constant dense<0.000000e+00> : vector<8x256xf32>
    %245 = tpu.matmul %244, %19, %cst_56 {dimension_numbers = #tpu.dot_dimension_numbers<[1], [0], [0], [1], [0, 0, 1, 1], [], []>} : vector<8x64xbf16>, vector<64x256xbf16>, vector<8x256xf32> -> vector<8x256xf32>
    %246 = arith.addf %243, %245 : vector<8x256xf32>
    %247 = vector.extract_strided_slice %246 {offsets = [0, 0], sizes = [8, 192], strides = [1, 1]} : vector<8x256xf32> to vector<8x192xf32>
    %248 = arith.negf %247 : vector<8x192xf32>
    %249 = math.exp %248 : vector<8x192xf32>
    %cst_57 = arith.constant 1.000000e+00 : f32
    %250 = vector.broadcast %cst_57 : f32 to vector<8x192xf32>
    %251 = arith.addf %250, %249 : vector<8x192xf32>
    %252 = arith.divf %250, %251 : vector<8x192xf32>
    %253 = vector.extract_strided_slice %252 {offsets = [0, 0], sizes = [8, 64], strides = [1, 1]} : vector<8x192xf32> to vector<8x64xf32>
    %254 = vector.extract_strided_slice %252 {offsets = [0, 64], sizes = [8, 64], strides = [1, 1]} : vector<8x192xf32> to vector<8x64xf32>
    %255 = vector.extract_strided_slice %252 {offsets = [0, 128], sizes = [8, 64], strides = [1, 1]} : vector<8x192xf32> to vector<8x64xf32>
    %256 = vector.extract_strided_slice %246 {offsets = [0, 192], sizes = [8, 64], strides = [1, 1]} : vector<8x256xf32> to vector<8x64xf32>
    %257 = math.tanh %256 : vector<8x64xf32>
    %258 = arith.mulf %254, %238 : vector<8x64xf32>
    %259 = arith.mulf %253, %257 : vector<8x64xf32>
    %260 = arith.addf %258, %259 : vector<8x64xf32>
    %261 = math.tanh %260 : vector<8x64xf32>
    %262 = arith.mulf %255, %261 : vector<8x64xf32>
    %c11_i32 = arith.constant 11 : i32
    %263 = arith.index_cast %c11_i32 : i32 to index
    %c0_58 = arith.constant 0 : index
    %c0_59 = arith.constant 0 : index
    %264 = vector.load %arg9[%263, %c0_58, %c0_59] : memref<32x8x256xf32, #tpu.memory_space<vmem>>, vector<1x8x256xf32>
    %265 = vector.shape_cast %264 : vector<1x8x256xf32> to vector<8x256xf32>
    %266 = arith.truncf %262 : vector<8x64xf32> to vector<8x64xbf16>
    %cst_60 = arith.constant dense<0.000000e+00> : vector<8x256xf32>
    %267 = tpu.matmul %266, %19, %cst_60 {dimension_numbers = #tpu.dot_dimension_numbers<[1], [0], [0], [1], [0, 0, 1, 1], [], []>} : vector<8x64xbf16>, vector<64x256xbf16>, vector<8x256xf32> -> vector<8x256xf32>
    %268 = arith.addf %265, %267 : vector<8x256xf32>
    %269 = vector.extract_strided_slice %268 {offsets = [0, 0], sizes = [8, 192], strides = [1, 1]} : vector<8x256xf32> to vector<8x192xf32>
    %270 = arith.negf %269 : vector<8x192xf32>
    %271 = math.exp %270 : vector<8x192xf32>
    %cst_61 = arith.constant 1.000000e+00 : f32
    %272 = vector.broadcast %cst_61 : f32 to vector<8x192xf32>
    %273 = arith.addf %272, %271 : vector<8x192xf32>
    %274 = arith.divf %272, %273 : vector<8x192xf32>
    %275 = vector.extract_strided_slice %274 {offsets = [0, 0], sizes = [8, 64], strides = [1, 1]} : vector<8x192xf32> to vector<8x64xf32>
    %276 = vector.extract_strided_slice %274 {offsets = [0, 64], sizes = [8, 64], strides = [1, 1]} : vector<8x192xf32> to vector<8x64xf32>
    %277 = vector.extract_strided_slice %274 {offsets = [0, 128], sizes = [8, 64], strides = [1, 1]} : vector<8x192xf32> to vector<8x64xf32>
    %278 = vector.extract_strided_slice %268 {offsets = [0, 192], sizes = [8, 64], strides = [1, 1]} : vector<8x256xf32> to vector<8x64xf32>
    %279 = math.tanh %278 : vector<8x64xf32>
    %280 = arith.mulf %276, %260 : vector<8x64xf32>
    %281 = arith.mulf %275, %279 : vector<8x64xf32>
    %282 = arith.addf %280, %281 : vector<8x64xf32>
    %283 = math.tanh %282 : vector<8x64xf32>
    %284 = arith.mulf %277, %283 : vector<8x64xf32>
    %c12_i32 = arith.constant 12 : i32
    %285 = arith.index_cast %c12_i32 : i32 to index
    %c0_62 = arith.constant 0 : index
    %c0_63 = arith.constant 0 : index
    %286 = vector.load %arg9[%285, %c0_62, %c0_63] : memref<32x8x256xf32, #tpu.memory_space<vmem>>, vector<1x8x256xf32>
    %287 = vector.shape_cast %286 : vector<1x8x256xf32> to vector<8x256xf32>
    %288 = arith.truncf %284 : vector<8x64xf32> to vector<8x64xbf16>
    %cst_64 = arith.constant dense<0.000000e+00> : vector<8x256xf32>
    %289 = tpu.matmul %288, %19, %cst_64 {dimension_numbers = #tpu.dot_dimension_numbers<[1], [0], [0], [1], [0, 0, 1, 1], [], []>} : vector<8x64xbf16>, vector<64x256xbf16>, vector<8x256xf32> -> vector<8x256xf32>
    %290 = arith.addf %287, %289 : vector<8x256xf32>
    %291 = vector.extract_strided_slice %290 {offsets = [0, 0], sizes = [8, 192], strides = [1, 1]} : vector<8x256xf32> to vector<8x192xf32>
    %292 = arith.negf %291 : vector<8x192xf32>
    %293 = math.exp %292 : vector<8x192xf32>
    %cst_65 = arith.constant 1.000000e+00 : f32
    %294 = vector.broadcast %cst_65 : f32 to vector<8x192xf32>
    %295 = arith.addf %294, %293 : vector<8x192xf32>
    %296 = arith.divf %294, %295 : vector<8x192xf32>
    %297 = vector.extract_strided_slice %296 {offsets = [0, 0], sizes = [8, 64], strides = [1, 1]} : vector<8x192xf32> to vector<8x64xf32>
    %298 = vector.extract_strided_slice %296 {offsets = [0, 64], sizes = [8, 64], strides = [1, 1]} : vector<8x192xf32> to vector<8x64xf32>
    %299 = vector.extract_strided_slice %296 {offsets = [0, 128], sizes = [8, 64], strides = [1, 1]} : vector<8x192xf32> to vector<8x64xf32>
    %300 = vector.extract_strided_slice %290 {offsets = [0, 192], sizes = [8, 64], strides = [1, 1]} : vector<8x256xf32> to vector<8x64xf32>
    %301 = math.tanh %300 : vector<8x64xf32>
    %302 = arith.mulf %298, %282 : vector<8x64xf32>
    %303 = arith.mulf %297, %301 : vector<8x64xf32>
    %304 = arith.addf %302, %303 : vector<8x64xf32>
    %305 = math.tanh %304 : vector<8x64xf32>
    %306 = arith.mulf %299, %305 : vector<8x64xf32>
    %c13_i32 = arith.constant 13 : i32
    %307 = arith.index_cast %c13_i32 : i32 to index
    %c0_66 = arith.constant 0 : index
    %c0_67 = arith.constant 0 : index
    %308 = vector.load %arg9[%307, %c0_66, %c0_67] : memref<32x8x256xf32, #tpu.memory_space<vmem>>, vector<1x8x256xf32>
    %309 = vector.shape_cast %308 : vector<1x8x256xf32> to vector<8x256xf32>
    %310 = arith.truncf %306 : vector<8x64xf32> to vector<8x64xbf16>
    %cst_68 = arith.constant dense<0.000000e+00> : vector<8x256xf32>
    %311 = tpu.matmul %310, %19, %cst_68 {dimension_numbers = #tpu.dot_dimension_numbers<[1], [0], [0], [1], [0, 0, 1, 1], [], []>} : vector<8x64xbf16>, vector<64x256xbf16>, vector<8x256xf32> -> vector<8x256xf32>
    %312 = arith.addf %309, %311 : vector<8x256xf32>
    %313 = vector.extract_strided_slice %312 {offsets = [0, 0], sizes = [8, 192], strides = [1, 1]} : vector<8x256xf32> to vector<8x192xf32>
    %314 = arith.negf %313 : vector<8x192xf32>
    %315 = math.exp %314 : vector<8x192xf32>
    %cst_69 = arith.constant 1.000000e+00 : f32
    %316 = vector.broadcast %cst_69 : f32 to vector<8x192xf32>
    %317 = arith.addf %316, %315 : vector<8x192xf32>
    %318 = arith.divf %316, %317 : vector<8x192xf32>
    %319 = vector.extract_strided_slice %318 {offsets = [0, 0], sizes = [8, 64], strides = [1, 1]} : vector<8x192xf32> to vector<8x64xf32>
    %320 = vector.extract_strided_slice %318 {offsets = [0, 64], sizes = [8, 64], strides = [1, 1]} : vector<8x192xf32> to vector<8x64xf32>
    %321 = vector.extract_strided_slice %318 {offsets = [0, 128], sizes = [8, 64], strides = [1, 1]} : vector<8x192xf32> to vector<8x64xf32>
    %322 = vector.extract_strided_slice %312 {offsets = [0, 192], sizes = [8, 64], strides = [1, 1]} : vector<8x256xf32> to vector<8x64xf32>
    %323 = math.tanh %322 : vector<8x64xf32>
    %324 = arith.mulf %320, %304 : vector<8x64xf32>
    %325 = arith.mulf %319, %323 : vector<8x64xf32>
    %326 = arith.addf %324, %325 : vector<8x64xf32>
    %327 = math.tanh %326 : vector<8x64xf32>
    %328 = arith.mulf %321, %327 : vector<8x64xf32>
    %c14_i32 = arith.constant 14 : i32
    %329 = arith.index_cast %c14_i32 : i32 to index
    %c0_70 = arith.constant 0 : index
    %c0_71 = arith.constant 0 : index
    %330 = vector.load %arg9[%329, %c0_70, %c0_71] : memref<32x8x256xf32, #tpu.memory_space<vmem>>, vector<1x8x256xf32>
    %331 = vector.shape_cast %330 : vector<1x8x256xf32> to vector<8x256xf32>
    %332 = arith.truncf %328 : vector<8x64xf32> to vector<8x64xbf16>
    %cst_72 = arith.constant dense<0.000000e+00> : vector<8x256xf32>
    %333 = tpu.matmul %332, %19, %cst_72 {dimension_numbers = #tpu.dot_dimension_numbers<[1], [0], [0], [1], [0, 0, 1, 1], [], []>} : vector<8x64xbf16>, vector<64x256xbf16>, vector<8x256xf32> -> vector<8x256xf32>
    %334 = arith.addf %331, %333 : vector<8x256xf32>
    %335 = vector.extract_strided_slice %334 {offsets = [0, 0], sizes = [8, 192], strides = [1, 1]} : vector<8x256xf32> to vector<8x192xf32>
    %336 = arith.negf %335 : vector<8x192xf32>
    %337 = math.exp %336 : vector<8x192xf32>
    %cst_73 = arith.constant 1.000000e+00 : f32
    %338 = vector.broadcast %cst_73 : f32 to vector<8x192xf32>
    %339 = arith.addf %338, %337 : vector<8x192xf32>
    %340 = arith.divf %338, %339 : vector<8x192xf32>
    %341 = vector.extract_strided_slice %340 {offsets = [0, 0], sizes = [8, 64], strides = [1, 1]} : vector<8x192xf32> to vector<8x64xf32>
    %342 = vector.extract_strided_slice %340 {offsets = [0, 64], sizes = [8, 64], strides = [1, 1]} : vector<8x192xf32> to vector<8x64xf32>
    %343 = vector.extract_strided_slice %340 {offsets = [0, 128], sizes = [8, 64], strides = [1, 1]} : vector<8x192xf32> to vector<8x64xf32>
    %344 = vector.extract_strided_slice %334 {offsets = [0, 192], sizes = [8, 64], strides = [1, 1]} : vector<8x256xf32> to vector<8x64xf32>
    %345 = math.tanh %344 : vector<8x64xf32>
    %346 = arith.mulf %342, %326 : vector<8x64xf32>
    %347 = arith.mulf %341, %345 : vector<8x64xf32>
    %348 = arith.addf %346, %347 : vector<8x64xf32>
    %349 = math.tanh %348 : vector<8x64xf32>
    %350 = arith.mulf %343, %349 : vector<8x64xf32>
    %c15_i32 = arith.constant 15 : i32
    %351 = arith.index_cast %c15_i32 : i32 to index
    %c0_74 = arith.constant 0 : index
    %c0_75 = arith.constant 0 : index
    %352 = vector.load %arg9[%351, %c0_74, %c0_75] : memref<32x8x256xf32, #tpu.memory_space<vmem>>, vector<1x8x256xf32>
    %353 = vector.shape_cast %352 : vector<1x8x256xf32> to vector<8x256xf32>
    %354 = arith.truncf %350 : vector<8x64xf32> to vector<8x64xbf16>
    %cst_76 = arith.constant dense<0.000000e+00> : vector<8x256xf32>
    %355 = tpu.matmul %354, %19, %cst_76 {dimension_numbers = #tpu.dot_dimension_numbers<[1], [0], [0], [1], [0, 0, 1, 1], [], []>} : vector<8x64xbf16>, vector<64x256xbf16>, vector<8x256xf32> -> vector<8x256xf32>
    %356 = arith.addf %353, %355 : vector<8x256xf32>
    %357 = vector.extract_strided_slice %356 {offsets = [0, 0], sizes = [8, 192], strides = [1, 1]} : vector<8x256xf32> to vector<8x192xf32>
    %358 = arith.negf %357 : vector<8x192xf32>
    %359 = math.exp %358 : vector<8x192xf32>
    %cst_77 = arith.constant 1.000000e+00 : f32
    %360 = vector.broadcast %cst_77 : f32 to vector<8x192xf32>
    %361 = arith.addf %360, %359 : vector<8x192xf32>
    %362 = arith.divf %360, %361 : vector<8x192xf32>
    %363 = vector.extract_strided_slice %362 {offsets = [0, 0], sizes = [8, 64], strides = [1, 1]} : vector<8x192xf32> to vector<8x64xf32>
    %364 = vector.extract_strided_slice %362 {offsets = [0, 64], sizes = [8, 64], strides = [1, 1]} : vector<8x192xf32> to vector<8x64xf32>
    %365 = vector.extract_strided_slice %362 {offsets = [0, 128], sizes = [8, 64], strides = [1, 1]} : vector<8x192xf32> to vector<8x64xf32>
    %366 = vector.extract_strided_slice %356 {offsets = [0, 192], sizes = [8, 64], strides = [1, 1]} : vector<8x256xf32> to vector<8x64xf32>
    %367 = math.tanh %366 : vector<8x64xf32>
    %368 = arith.mulf %364, %348 : vector<8x64xf32>
    %369 = arith.mulf %363, %367 : vector<8x64xf32>
    %370 = arith.addf %368, %369 : vector<8x64xf32>
    %371 = math.tanh %370 : vector<8x64xf32>
    %372 = arith.mulf %365, %371 : vector<8x64xf32>
    %c16_i32 = arith.constant 16 : i32
    %373 = arith.index_cast %c16_i32 : i32 to index
    %c0_78 = arith.constant 0 : index
    %c0_79 = arith.constant 0 : index
    %374 = vector.load %arg9[%373, %c0_78, %c0_79] : memref<32x8x256xf32, #tpu.memory_space<vmem>>, vector<1x8x256xf32>
    %375 = vector.shape_cast %374 : vector<1x8x256xf32> to vector<8x256xf32>
    %376 = arith.truncf %372 : vector<8x64xf32> to vector<8x64xbf16>
    %cst_80 = arith.constant dense<0.000000e+00> : vector<8x256xf32>
    %377 = tpu.matmul %376, %19, %cst_80 {dimension_numbers = #tpu.dot_dimension_numbers<[1], [0], [0], [1], [0, 0, 1, 1], [], []>} : vector<8x64xbf16>, vector<64x256xbf16>, vector<8x256xf32> -> vector<8x256xf32>
    %378 = arith.addf %375, %377 : vector<8x256xf32>
    %379 = vector.extract_strided_slice %378 {offsets = [0, 0], sizes = [8, 192], strides = [1, 1]} : vector<8x256xf32> to vector<8x192xf32>
    %380 = arith.negf %379 : vector<8x192xf32>
    %381 = math.exp %380 : vector<8x192xf32>
    %cst_81 = arith.constant 1.000000e+00 : f32
    %382 = vector.broadcast %cst_81 : f32 to vector<8x192xf32>
    %383 = arith.addf %382, %381 : vector<8x192xf32>
    %384 = arith.divf %382, %383 : vector<8x192xf32>
    %385 = vector.extract_strided_slice %384 {offsets = [0, 0], sizes = [8, 64], strides = [1, 1]} : vector<8x192xf32> to vector<8x64xf32>
    %386 = vector.extract_strided_slice %384 {offsets = [0, 64], sizes = [8, 64], strides = [1, 1]} : vector<8x192xf32> to vector<8x64xf32>
    %387 = vector.extract_strided_slice %384 {offsets = [0, 128], sizes = [8, 64], strides = [1, 1]} : vector<8x192xf32> to vector<8x64xf32>
    %388 = vector.extract_strided_slice %378 {offsets = [0, 192], sizes = [8, 64], strides = [1, 1]} : vector<8x256xf32> to vector<8x64xf32>
    %389 = math.tanh %388 : vector<8x64xf32>
    %390 = arith.mulf %386, %370 : vector<8x64xf32>
    %391 = arith.mulf %385, %389 : vector<8x64xf32>
    %392 = arith.addf %390, %391 : vector<8x64xf32>
    %393 = math.tanh %392 : vector<8x64xf32>
    %394 = arith.mulf %387, %393 : vector<8x64xf32>
    %c17_i32 = arith.constant 17 : i32
    %395 = arith.index_cast %c17_i32 : i32 to index
    %c0_82 = arith.constant 0 : index
    %c0_83 = arith.constant 0 : index
    %396 = vector.load %arg9[%395, %c0_82, %c0_83] : memref<32x8x256xf32, #tpu.memory_space<vmem>>, vector<1x8x256xf32>
    %397 = vector.shape_cast %396 : vector<1x8x256xf32> to vector<8x256xf32>
    %398 = arith.truncf %394 : vector<8x64xf32> to vector<8x64xbf16>
    %cst_84 = arith.constant dense<0.000000e+00> : vector<8x256xf32>
    %399 = tpu.matmul %398, %19, %cst_84 {dimension_numbers = #tpu.dot_dimension_numbers<[1], [0], [0], [1], [0, 0, 1, 1], [], []>} : vector<8x64xbf16>, vector<64x256xbf16>, vector<8x256xf32> -> vector<8x256xf32>
    %400 = arith.addf %397, %399 : vector<8x256xf32>
    %401 = vector.extract_strided_slice %400 {offsets = [0, 0], sizes = [8, 192], strides = [1, 1]} : vector<8x256xf32> to vector<8x192xf32>
    %402 = arith.negf %401 : vector<8x192xf32>
    %403 = math.exp %402 : vector<8x192xf32>
    %cst_85 = arith.constant 1.000000e+00 : f32
    %404 = vector.broadcast %cst_85 : f32 to vector<8x192xf32>
    %405 = arith.addf %404, %403 : vector<8x192xf32>
    %406 = arith.divf %404, %405 : vector<8x192xf32>
    %407 = vector.extract_strided_slice %406 {offsets = [0, 0], sizes = [8, 64], strides = [1, 1]} : vector<8x192xf32> to vector<8x64xf32>
    %408 = vector.extract_strided_slice %406 {offsets = [0, 64], sizes = [8, 64], strides = [1, 1]} : vector<8x192xf32> to vector<8x64xf32>
    %409 = vector.extract_strided_slice %406 {offsets = [0, 128], sizes = [8, 64], strides = [1, 1]} : vector<8x192xf32> to vector<8x64xf32>
    %410 = vector.extract_strided_slice %400 {offsets = [0, 192], sizes = [8, 64], strides = [1, 1]} : vector<8x256xf32> to vector<8x64xf32>
    %411 = math.tanh %410 : vector<8x64xf32>
    %412 = arith.mulf %408, %392 : vector<8x64xf32>
    %413 = arith.mulf %407, %411 : vector<8x64xf32>
    %414 = arith.addf %412, %413 : vector<8x64xf32>
    %415 = math.tanh %414 : vector<8x64xf32>
    %416 = arith.mulf %409, %415 : vector<8x64xf32>
    %c18_i32 = arith.constant 18 : i32
    %417 = arith.index_cast %c18_i32 : i32 to index
    %c0_86 = arith.constant 0 : index
    %c0_87 = arith.constant 0 : index
    %418 = vector.load %arg9[%417, %c0_86, %c0_87] : memref<32x8x256xf32, #tpu.memory_space<vmem>>, vector<1x8x256xf32>
    %419 = vector.shape_cast %418 : vector<1x8x256xf32> to vector<8x256xf32>
    %420 = arith.truncf %416 : vector<8x64xf32> to vector<8x64xbf16>
    %cst_88 = arith.constant dense<0.000000e+00> : vector<8x256xf32>
    %421 = tpu.matmul %420, %19, %cst_88 {dimension_numbers = #tpu.dot_dimension_numbers<[1], [0], [0], [1], [0, 0, 1, 1], [], []>} : vector<8x64xbf16>, vector<64x256xbf16>, vector<8x256xf32> -> vector<8x256xf32>
    %422 = arith.addf %419, %421 : vector<8x256xf32>
    %423 = vector.extract_strided_slice %422 {offsets = [0, 0], sizes = [8, 192], strides = [1, 1]} : vector<8x256xf32> to vector<8x192xf32>
    %424 = arith.negf %423 : vector<8x192xf32>
    %425 = math.exp %424 : vector<8x192xf32>
    %cst_89 = arith.constant 1.000000e+00 : f32
    %426 = vector.broadcast %cst_89 : f32 to vector<8x192xf32>
    %427 = arith.addf %426, %425 : vector<8x192xf32>
    %428 = arith.divf %426, %427 : vector<8x192xf32>
    %429 = vector.extract_strided_slice %428 {offsets = [0, 0], sizes = [8, 64], strides = [1, 1]} : vector<8x192xf32> to vector<8x64xf32>
    %430 = vector.extract_strided_slice %428 {offsets = [0, 64], sizes = [8, 64], strides = [1, 1]} : vector<8x192xf32> to vector<8x64xf32>
    %431 = vector.extract_strided_slice %428 {offsets = [0, 128], sizes = [8, 64], strides = [1, 1]} : vector<8x192xf32> to vector<8x64xf32>
    %432 = vector.extract_strided_slice %422 {offsets = [0, 192], sizes = [8, 64], strides = [1, 1]} : vector<8x256xf32> to vector<8x64xf32>
    %433 = math.tanh %432 : vector<8x64xf32>
    %434 = arith.mulf %430, %414 : vector<8x64xf32>
    %435 = arith.mulf %429, %433 : vector<8x64xf32>
    %436 = arith.addf %434, %435 : vector<8x64xf32>
    %437 = math.tanh %436 : vector<8x64xf32>
    %438 = arith.mulf %431, %437 : vector<8x64xf32>
    %c19_i32 = arith.constant 19 : i32
    %439 = arith.index_cast %c19_i32 : i32 to index
    %c0_90 = arith.constant 0 : index
    %c0_91 = arith.constant 0 : index
    %440 = vector.load %arg9[%439, %c0_90, %c0_91] : memref<32x8x256xf32, #tpu.memory_space<vmem>>, vector<1x8x256xf32>
    %441 = vector.shape_cast %440 : vector<1x8x256xf32> to vector<8x256xf32>
    %442 = arith.truncf %438 : vector<8x64xf32> to vector<8x64xbf16>
    %cst_92 = arith.constant dense<0.000000e+00> : vector<8x256xf32>
    %443 = tpu.matmul %442, %19, %cst_92 {dimension_numbers = #tpu.dot_dimension_numbers<[1], [0], [0], [1], [0, 0, 1, 1], [], []>} : vector<8x64xbf16>, vector<64x256xbf16>, vector<8x256xf32> -> vector<8x256xf32>
    %444 = arith.addf %441, %443 : vector<8x256xf32>
    %445 = vector.extract_strided_slice %444 {offsets = [0, 0], sizes = [8, 192], strides = [1, 1]} : vector<8x256xf32> to vector<8x192xf32>
    %446 = arith.negf %445 : vector<8x192xf32>
    %447 = math.exp %446 : vector<8x192xf32>
    %cst_93 = arith.constant 1.000000e+00 : f32
    %448 = vector.broadcast %cst_93 : f32 to vector<8x192xf32>
    %449 = arith.addf %448, %447 : vector<8x192xf32>
    %450 = arith.divf %448, %449 : vector<8x192xf32>
    %451 = vector.extract_strided_slice %450 {offsets = [0, 0], sizes = [8, 64], strides = [1, 1]} : vector<8x192xf32> to vector<8x64xf32>
    %452 = vector.extract_strided_slice %450 {offsets = [0, 64], sizes = [8, 64], strides = [1, 1]} : vector<8x192xf32> to vector<8x64xf32>
    %453 = vector.extract_strided_slice %450 {offsets = [0, 128], sizes = [8, 64], strides = [1, 1]} : vector<8x192xf32> to vector<8x64xf32>
    %454 = vector.extract_strided_slice %444 {offsets = [0, 192], sizes = [8, 64], strides = [1, 1]} : vector<8x256xf32> to vector<8x64xf32>
    %455 = math.tanh %454 : vector<8x64xf32>
    %456 = arith.mulf %452, %436 : vector<8x64xf32>
    %457 = arith.mulf %451, %455 : vector<8x64xf32>
    %458 = arith.addf %456, %457 : vector<8x64xf32>
    %459 = math.tanh %458 : vector<8x64xf32>
    %460 = arith.mulf %453, %459 : vector<8x64xf32>
    %c20_i32 = arith.constant 20 : i32
    %461 = arith.index_cast %c20_i32 : i32 to index
    %c0_94 = arith.constant 0 : index
    %c0_95 = arith.constant 0 : index
    %462 = vector.load %arg9[%461, %c0_94, %c0_95] : memref<32x8x256xf32, #tpu.memory_space<vmem>>, vector<1x8x256xf32>
    %463 = vector.shape_cast %462 : vector<1x8x256xf32> to vector<8x256xf32>
    %464 = arith.truncf %460 : vector<8x64xf32> to vector<8x64xbf16>
    %cst_96 = arith.constant dense<0.000000e+00> : vector<8x256xf32>
    %465 = tpu.matmul %464, %19, %cst_96 {dimension_numbers = #tpu.dot_dimension_numbers<[1], [0], [0], [1], [0, 0, 1, 1], [], []>} : vector<8x64xbf16>, vector<64x256xbf16>, vector<8x256xf32> -> vector<8x256xf32>
    %466 = arith.addf %463, %465 : vector<8x256xf32>
    %467 = vector.extract_strided_slice %466 {offsets = [0, 0], sizes = [8, 192], strides = [1, 1]} : vector<8x256xf32> to vector<8x192xf32>
    %468 = arith.negf %467 : vector<8x192xf32>
    %469 = math.exp %468 : vector<8x192xf32>
    %cst_97 = arith.constant 1.000000e+00 : f32
    %470 = vector.broadcast %cst_97 : f32 to vector<8x192xf32>
    %471 = arith.addf %470, %469 : vector<8x192xf32>
    %472 = arith.divf %470, %471 : vector<8x192xf32>
    %473 = vector.extract_strided_slice %472 {offsets = [0, 0], sizes = [8, 64], strides = [1, 1]} : vector<8x192xf32> to vector<8x64xf32>
    %474 = vector.extract_strided_slice %472 {offsets = [0, 64], sizes = [8, 64], strides = [1, 1]} : vector<8x192xf32> to vector<8x64xf32>
    %475 = vector.extract_strided_slice %472 {offsets = [0, 128], sizes = [8, 64], strides = [1, 1]} : vector<8x192xf32> to vector<8x64xf32>
    %476 = vector.extract_strided_slice %466 {offsets = [0, 192], sizes = [8, 64], strides = [1, 1]} : vector<8x256xf32> to vector<8x64xf32>
    %477 = math.tanh %476 : vector<8x64xf32>
    %478 = arith.mulf %474, %458 : vector<8x64xf32>
    %479 = arith.mulf %473, %477 : vector<8x64xf32>
    %480 = arith.addf %478, %479 : vector<8x64xf32>
    %481 = math.tanh %480 : vector<8x64xf32>
    %482 = arith.mulf %475, %481 : vector<8x64xf32>
    %c21_i32 = arith.constant 21 : i32
    %483 = arith.index_cast %c21_i32 : i32 to index
    %c0_98 = arith.constant 0 : index
    %c0_99 = arith.constant 0 : index
    %484 = vector.load %arg9[%483, %c0_98, %c0_99] : memref<32x8x256xf32, #tpu.memory_space<vmem>>, vector<1x8x256xf32>
    %485 = vector.shape_cast %484 : vector<1x8x256xf32> to vector<8x256xf32>
    %486 = arith.truncf %482 : vector<8x64xf32> to vector<8x64xbf16>
    %cst_100 = arith.constant dense<0.000000e+00> : vector<8x256xf32>
    %487 = tpu.matmul %486, %19, %cst_100 {dimension_numbers = #tpu.dot_dimension_numbers<[1], [0], [0], [1], [0, 0, 1, 1], [], []>} : vector<8x64xbf16>, vector<64x256xbf16>, vector<8x256xf32> -> vector<8x256xf32>
    %488 = arith.addf %485, %487 : vector<8x256xf32>
    %489 = vector.extract_strided_slice %488 {offsets = [0, 0], sizes = [8, 192], strides = [1, 1]} : vector<8x256xf32> to vector<8x192xf32>
    %490 = arith.negf %489 : vector<8x192xf32>
    %491 = math.exp %490 : vector<8x192xf32>
    %cst_101 = arith.constant 1.000000e+00 : f32
    %492 = vector.broadcast %cst_101 : f32 to vector<8x192xf32>
    %493 = arith.addf %492, %491 : vector<8x192xf32>
    %494 = arith.divf %492, %493 : vector<8x192xf32>
    %495 = vector.extract_strided_slice %494 {offsets = [0, 0], sizes = [8, 64], strides = [1, 1]} : vector<8x192xf32> to vector<8x64xf32>
    %496 = vector.extract_strided_slice %494 {offsets = [0, 64], sizes = [8, 64], strides = [1, 1]} : vector<8x192xf32> to vector<8x64xf32>
    %497 = vector.extract_strided_slice %494 {offsets = [0, 128], sizes = [8, 64], strides = [1, 1]} : vector<8x192xf32> to vector<8x64xf32>
    %498 = vector.extract_strided_slice %488 {offsets = [0, 192], sizes = [8, 64], strides = [1, 1]} : vector<8x256xf32> to vector<8x64xf32>
    %499 = math.tanh %498 : vector<8x64xf32>
    %500 = arith.mulf %496, %480 : vector<8x64xf32>
    %501 = arith.mulf %495, %499 : vector<8x64xf32>
    %502 = arith.addf %500, %501 : vector<8x64xf32>
    %503 = math.tanh %502 : vector<8x64xf32>
    %504 = arith.mulf %497, %503 : vector<8x64xf32>
    %c22_i32 = arith.constant 22 : i32
    %505 = arith.index_cast %c22_i32 : i32 to index
    %c0_102 = arith.constant 0 : index
    %c0_103 = arith.constant 0 : index
    %506 = vector.load %arg9[%505, %c0_102, %c0_103] : memref<32x8x256xf32, #tpu.memory_space<vmem>>, vector<1x8x256xf32>
    %507 = vector.shape_cast %506 : vector<1x8x256xf32> to vector<8x256xf32>
    %508 = arith.truncf %504 : vector<8x64xf32> to vector<8x64xbf16>
    %cst_104 = arith.constant dense<0.000000e+00> : vector<8x256xf32>
    %509 = tpu.matmul %508, %19, %cst_104 {dimension_numbers = #tpu.dot_dimension_numbers<[1], [0], [0], [1], [0, 0, 1, 1], [], []>} : vector<8x64xbf16>, vector<64x256xbf16>, vector<8x256xf32> -> vector<8x256xf32>
    %510 = arith.addf %507, %509 : vector<8x256xf32>
    %511 = vector.extract_strided_slice %510 {offsets = [0, 0], sizes = [8, 192], strides = [1, 1]} : vector<8x256xf32> to vector<8x192xf32>
    %512 = arith.negf %511 : vector<8x192xf32>
    %513 = math.exp %512 : vector<8x192xf32>
    %cst_105 = arith.constant 1.000000e+00 : f32
    %514 = vector.broadcast %cst_105 : f32 to vector<8x192xf32>
    %515 = arith.addf %514, %513 : vector<8x192xf32>
    %516 = arith.divf %514, %515 : vector<8x192xf32>
    %517 = vector.extract_strided_slice %516 {offsets = [0, 0], sizes = [8, 64], strides = [1, 1]} : vector<8x192xf32> to vector<8x64xf32>
    %518 = vector.extract_strided_slice %516 {offsets = [0, 64], sizes = [8, 64], strides = [1, 1]} : vector<8x192xf32> to vector<8x64xf32>
    %519 = vector.extract_strided_slice %516 {offsets = [0, 128], sizes = [8, 64], strides = [1, 1]} : vector<8x192xf32> to vector<8x64xf32>
    %520 = vector.extract_strided_slice %510 {offsets = [0, 192], sizes = [8, 64], strides = [1, 1]} : vector<8x256xf32> to vector<8x64xf32>
    %521 = math.tanh %520 : vector<8x64xf32>
    %522 = arith.mulf %518, %502 : vector<8x64xf32>
    %523 = arith.mulf %517, %521 : vector<8x64xf32>
    %524 = arith.addf %522, %523 : vector<8x64xf32>
    %525 = math.tanh %524 : vector<8x64xf32>
    %526 = arith.mulf %519, %525 : vector<8x64xf32>
    %c23_i32 = arith.constant 23 : i32
    %527 = arith.index_cast %c23_i32 : i32 to index
    %c0_106 = arith.constant 0 : index
    %c0_107 = arith.constant 0 : index
    %528 = vector.load %arg9[%527, %c0_106, %c0_107] : memref<32x8x256xf32, #tpu.memory_space<vmem>>, vector<1x8x256xf32>
    %529 = vector.shape_cast %528 : vector<1x8x256xf32> to vector<8x256xf32>
    %530 = arith.truncf %526 : vector<8x64xf32> to vector<8x64xbf16>
    %cst_108 = arith.constant dense<0.000000e+00> : vector<8x256xf32>
    %531 = tpu.matmul %530, %19, %cst_108 {dimension_numbers = #tpu.dot_dimension_numbers<[1], [0], [0], [1], [0, 0, 1, 1], [], []>} : vector<8x64xbf16>, vector<64x256xbf16>, vector<8x256xf32> -> vector<8x256xf32>
    %532 = arith.addf %529, %531 : vector<8x256xf32>
    %533 = vector.extract_strided_slice %532 {offsets = [0, 0], sizes = [8, 192], strides = [1, 1]} : vector<8x256xf32> to vector<8x192xf32>
    %534 = arith.negf %533 : vector<8x192xf32>
    %535 = math.exp %534 : vector<8x192xf32>
    %cst_109 = arith.constant 1.000000e+00 : f32
    %536 = vector.broadcast %cst_109 : f32 to vector<8x192xf32>
    %537 = arith.addf %536, %535 : vector<8x192xf32>
    %538 = arith.divf %536, %537 : vector<8x192xf32>
    %539 = vector.extract_strided_slice %538 {offsets = [0, 0], sizes = [8, 64], strides = [1, 1]} : vector<8x192xf32> to vector<8x64xf32>
    %540 = vector.extract_strided_slice %538 {offsets = [0, 64], sizes = [8, 64], strides = [1, 1]} : vector<8x192xf32> to vector<8x64xf32>
    %541 = vector.extract_strided_slice %538 {offsets = [0, 128], sizes = [8, 64], strides = [1, 1]} : vector<8x192xf32> to vector<8x64xf32>
    %542 = vector.extract_strided_slice %532 {offsets = [0, 192], sizes = [8, 64], strides = [1, 1]} : vector<8x256xf32> to vector<8x64xf32>
    %543 = math.tanh %542 : vector<8x64xf32>
    %544 = arith.mulf %540, %524 : vector<8x64xf32>
    %545 = arith.mulf %539, %543 : vector<8x64xf32>
    %546 = arith.addf %544, %545 : vector<8x64xf32>
    %547 = math.tanh %546 : vector<8x64xf32>
    %548 = arith.mulf %541, %547 : vector<8x64xf32>
    %c24_i32 = arith.constant 24 : i32
    %549 = arith.index_cast %c24_i32 : i32 to index
    %c0_110 = arith.constant 0 : index
    %c0_111 = arith.constant 0 : index
    %550 = vector.load %arg9[%549, %c0_110, %c0_111] : memref<32x8x256xf32, #tpu.memory_space<vmem>>, vector<1x8x256xf32>
    %551 = vector.shape_cast %550 : vector<1x8x256xf32> to vector<8x256xf32>
    %552 = arith.truncf %548 : vector<8x64xf32> to vector<8x64xbf16>
    %cst_112 = arith.constant dense<0.000000e+00> : vector<8x256xf32>
    %553 = tpu.matmul %552, %19, %cst_112 {dimension_numbers = #tpu.dot_dimension_numbers<[1], [0], [0], [1], [0, 0, 1, 1], [], []>} : vector<8x64xbf16>, vector<64x256xbf16>, vector<8x256xf32> -> vector<8x256xf32>
    %554 = arith.addf %551, %553 : vector<8x256xf32>
    %555 = vector.extract_strided_slice %554 {offsets = [0, 0], sizes = [8, 192], strides = [1, 1]} : vector<8x256xf32> to vector<8x192xf32>
    %556 = arith.negf %555 : vector<8x192xf32>
    %557 = math.exp %556 : vector<8x192xf32>
    %cst_113 = arith.constant 1.000000e+00 : f32
    %558 = vector.broadcast %cst_113 : f32 to vector<8x192xf32>
    %559 = arith.addf %558, %557 : vector<8x192xf32>
    %560 = arith.divf %558, %559 : vector<8x192xf32>
    %561 = vector.extract_strided_slice %560 {offsets = [0, 0], sizes = [8, 64], strides = [1, 1]} : vector<8x192xf32> to vector<8x64xf32>
    %562 = vector.extract_strided_slice %560 {offsets = [0, 64], sizes = [8, 64], strides = [1, 1]} : vector<8x192xf32> to vector<8x64xf32>
    %563 = vector.extract_strided_slice %560 {offsets = [0, 128], sizes = [8, 64], strides = [1, 1]} : vector<8x192xf32> to vector<8x64xf32>
    %564 = vector.extract_strided_slice %554 {offsets = [0, 192], sizes = [8, 64], strides = [1, 1]} : vector<8x256xf32> to vector<8x64xf32>
    %565 = math.tanh %564 : vector<8x64xf32>
    %566 = arith.mulf %562, %546 : vector<8x64xf32>
    %567 = arith.mulf %561, %565 : vector<8x64xf32>
    %568 = arith.addf %566, %567 : vector<8x64xf32>
    %569 = math.tanh %568 : vector<8x64xf32>
    %570 = arith.mulf %563, %569 : vector<8x64xf32>
    %c25_i32 = arith.constant 25 : i32
    %571 = arith.index_cast %c25_i32 : i32 to index
    %c0_114 = arith.constant 0 : index
    %c0_115 = arith.constant 0 : index
    %572 = vector.load %arg9[%571, %c0_114, %c0_115] : memref<32x8x256xf32, #tpu.memory_space<vmem>>, vector<1x8x256xf32>
    %573 = vector.shape_cast %572 : vector<1x8x256xf32> to vector<8x256xf32>
    %574 = arith.truncf %570 : vector<8x64xf32> to vector<8x64xbf16>
    %cst_116 = arith.constant dense<0.000000e+00> : vector<8x256xf32>
    %575 = tpu.matmul %574, %19, %cst_116 {dimension_numbers = #tpu.dot_dimension_numbers<[1], [0], [0], [1], [0, 0, 1, 1], [], []>} : vector<8x64xbf16>, vector<64x256xbf16>, vector<8x256xf32> -> vector<8x256xf32>
    %576 = arith.addf %573, %575 : vector<8x256xf32>
    %577 = vector.extract_strided_slice %576 {offsets = [0, 0], sizes = [8, 192], strides = [1, 1]} : vector<8x256xf32> to vector<8x192xf32>
    %578 = arith.negf %577 : vector<8x192xf32>
    %579 = math.exp %578 : vector<8x192xf32>
    %cst_117 = arith.constant 1.000000e+00 : f32
    %580 = vector.broadcast %cst_117 : f32 to vector<8x192xf32>
    %581 = arith.addf %580, %579 : vector<8x192xf32>
    %582 = arith.divf %580, %581 : vector<8x192xf32>
    %583 = vector.extract_strided_slice %582 {offsets = [0, 0], sizes = [8, 64], strides = [1, 1]} : vector<8x192xf32> to vector<8x64xf32>
    %584 = vector.extract_strided_slice %582 {offsets = [0, 64], sizes = [8, 64], strides = [1, 1]} : vector<8x192xf32> to vector<8x64xf32>
    %585 = vector.extract_strided_slice %582 {offsets = [0, 128], sizes = [8, 64], strides = [1, 1]} : vector<8x192xf32> to vector<8x64xf32>
    %586 = vector.extract_strided_slice %576 {offsets = [0, 192], sizes = [8, 64], strides = [1, 1]} : vector<8x256xf32> to vector<8x64xf32>
    %587 = math.tanh %586 : vector<8x64xf32>
    %588 = arith.mulf %584, %568 : vector<8x64xf32>
    %589 = arith.mulf %583, %587 : vector<8x64xf32>
    %590 = arith.addf %588, %589 : vector<8x64xf32>
    %591 = math.tanh %590 : vector<8x64xf32>
    %592 = arith.mulf %585, %591 : vector<8x64xf32>
    %c26_i32 = arith.constant 26 : i32
    %593 = arith.index_cast %c26_i32 : i32 to index
    %c0_118 = arith.constant 0 : index
    %c0_119 = arith.constant 0 : index
    %594 = vector.load %arg9[%593, %c0_118, %c0_119] : memref<32x8x256xf32, #tpu.memory_space<vmem>>, vector<1x8x256xf32>
    %595 = vector.shape_cast %594 : vector<1x8x256xf32> to vector<8x256xf32>
    %596 = arith.truncf %592 : vector<8x64xf32> to vector<8x64xbf16>
    %cst_120 = arith.constant dense<0.000000e+00> : vector<8x256xf32>
    %597 = tpu.matmul %596, %19, %cst_120 {dimension_numbers = #tpu.dot_dimension_numbers<[1], [0], [0], [1], [0, 0, 1, 1], [], []>} : vector<8x64xbf16>, vector<64x256xbf16>, vector<8x256xf32> -> vector<8x256xf32>
    %598 = arith.addf %595, %597 : vector<8x256xf32>
    %599 = vector.extract_strided_slice %598 {offsets = [0, 0], sizes = [8, 192], strides = [1, 1]} : vector<8x256xf32> to vector<8x192xf32>
    %600 = arith.negf %599 : vector<8x192xf32>
    %601 = math.exp %600 : vector<8x192xf32>
    %cst_121 = arith.constant 1.000000e+00 : f32
    %602 = vector.broadcast %cst_121 : f32 to vector<8x192xf32>
    %603 = arith.addf %602, %601 : vector<8x192xf32>
    %604 = arith.divf %602, %603 : vector<8x192xf32>
    %605 = vector.extract_strided_slice %604 {offsets = [0, 0], sizes = [8, 64], strides = [1, 1]} : vector<8x192xf32> to vector<8x64xf32>
    %606 = vector.extract_strided_slice %604 {offsets = [0, 64], sizes = [8, 64], strides = [1, 1]} : vector<8x192xf32> to vector<8x64xf32>
    %607 = vector.extract_strided_slice %604 {offsets = [0, 128], sizes = [8, 64], strides = [1, 1]} : vector<8x192xf32> to vector<8x64xf32>
    %608 = vector.extract_strided_slice %598 {offsets = [0, 192], sizes = [8, 64], strides = [1, 1]} : vector<8x256xf32> to vector<8x64xf32>
    %609 = math.tanh %608 : vector<8x64xf32>
    %610 = arith.mulf %606, %590 : vector<8x64xf32>
    %611 = arith.mulf %605, %609 : vector<8x64xf32>
    %612 = arith.addf %610, %611 : vector<8x64xf32>
    %613 = math.tanh %612 : vector<8x64xf32>
    %614 = arith.mulf %607, %613 : vector<8x64xf32>
    %c27_i32 = arith.constant 27 : i32
    %615 = arith.index_cast %c27_i32 : i32 to index
    %c0_122 = arith.constant 0 : index
    %c0_123 = arith.constant 0 : index
    %616 = vector.load %arg9[%615, %c0_122, %c0_123] : memref<32x8x256xf32, #tpu.memory_space<vmem>>, vector<1x8x256xf32>
    %617 = vector.shape_cast %616 : vector<1x8x256xf32> to vector<8x256xf32>
    %618 = arith.truncf %614 : vector<8x64xf32> to vector<8x64xbf16>
    %cst_124 = arith.constant dense<0.000000e+00> : vector<8x256xf32>
    %619 = tpu.matmul %618, %19, %cst_124 {dimension_numbers = #tpu.dot_dimension_numbers<[1], [0], [0], [1], [0, 0, 1, 1], [], []>} : vector<8x64xbf16>, vector<64x256xbf16>, vector<8x256xf32> -> vector<8x256xf32>
    %620 = arith.addf %617, %619 : vector<8x256xf32>
    %621 = vector.extract_strided_slice %620 {offsets = [0, 0], sizes = [8, 192], strides = [1, 1]} : vector<8x256xf32> to vector<8x192xf32>
    %622 = arith.negf %621 : vector<8x192xf32>
    %623 = math.exp %622 : vector<8x192xf32>
    %cst_125 = arith.constant 1.000000e+00 : f32
    %624 = vector.broadcast %cst_125 : f32 to vector<8x192xf32>
    %625 = arith.addf %624, %623 : vector<8x192xf32>
    %626 = arith.divf %624, %625 : vector<8x192xf32>
    %627 = vector.extract_strided_slice %626 {offsets = [0, 0], sizes = [8, 64], strides = [1, 1]} : vector<8x192xf32> to vector<8x64xf32>
    %628 = vector.extract_strided_slice %626 {offsets = [0, 64], sizes = [8, 64], strides = [1, 1]} : vector<8x192xf32> to vector<8x64xf32>
    %629 = vector.extract_strided_slice %626 {offsets = [0, 128], sizes = [8, 64], strides = [1, 1]} : vector<8x192xf32> to vector<8x64xf32>
    %630 = vector.extract_strided_slice %620 {offsets = [0, 192], sizes = [8, 64], strides = [1, 1]} : vector<8x256xf32> to vector<8x64xf32>
    %631 = math.tanh %630 : vector<8x64xf32>
    %632 = arith.mulf %628, %612 : vector<8x64xf32>
    %633 = arith.mulf %627, %631 : vector<8x64xf32>
    %634 = arith.addf %632, %633 : vector<8x64xf32>
    %635 = math.tanh %634 : vector<8x64xf32>
    %636 = arith.mulf %629, %635 : vector<8x64xf32>
    %c28_i32 = arith.constant 28 : i32
    %637 = arith.index_cast %c28_i32 : i32 to index
    %c0_126 = arith.constant 0 : index
    %c0_127 = arith.constant 0 : index
    %638 = vector.load %arg9[%637, %c0_126, %c0_127] : memref<32x8x256xf32, #tpu.memory_space<vmem>>, vector<1x8x256xf32>
    %639 = vector.shape_cast %638 : vector<1x8x256xf32> to vector<8x256xf32>
    %640 = arith.truncf %636 : vector<8x64xf32> to vector<8x64xbf16>
    %cst_128 = arith.constant dense<0.000000e+00> : vector<8x256xf32>
    %641 = tpu.matmul %640, %19, %cst_128 {dimension_numbers = #tpu.dot_dimension_numbers<[1], [0], [0], [1], [0, 0, 1, 1], [], []>} : vector<8x64xbf16>, vector<64x256xbf16>, vector<8x256xf32> -> vector<8x256xf32>
    %642 = arith.addf %639, %641 : vector<8x256xf32>
    %643 = vector.extract_strided_slice %642 {offsets = [0, 0], sizes = [8, 192], strides = [1, 1]} : vector<8x256xf32> to vector<8x192xf32>
    %644 = arith.negf %643 : vector<8x192xf32>
    %645 = math.exp %644 : vector<8x192xf32>
    %cst_129 = arith.constant 1.000000e+00 : f32
    %646 = vector.broadcast %cst_129 : f32 to vector<8x192xf32>
    %647 = arith.addf %646, %645 : vector<8x192xf32>
    %648 = arith.divf %646, %647 : vector<8x192xf32>
    %649 = vector.extract_strided_slice %648 {offsets = [0, 0], sizes = [8, 64], strides = [1, 1]} : vector<8x192xf32> to vector<8x64xf32>
    %650 = vector.extract_strided_slice %648 {offsets = [0, 64], sizes = [8, 64], strides = [1, 1]} : vector<8x192xf32> to vector<8x64xf32>
    %651 = vector.extract_strided_slice %648 {offsets = [0, 128], sizes = [8, 64], strides = [1, 1]} : vector<8x192xf32> to vector<8x64xf32>
    %652 = vector.extract_strided_slice %642 {offsets = [0, 192], sizes = [8, 64], strides = [1, 1]} : vector<8x256xf32> to vector<8x64xf32>
    %653 = math.tanh %652 : vector<8x64xf32>
    %654 = arith.mulf %650, %634 : vector<8x64xf32>
    %655 = arith.mulf %649, %653 : vector<8x64xf32>
    %656 = arith.addf %654, %655 : vector<8x64xf32>
    %657 = math.tanh %656 : vector<8x64xf32>
    %658 = arith.mulf %651, %657 : vector<8x64xf32>
    %c29_i32 = arith.constant 29 : i32
    %659 = arith.index_cast %c29_i32 : i32 to index
    %c0_130 = arith.constant 0 : index
    %c0_131 = arith.constant 0 : index
    %660 = vector.load %arg9[%659, %c0_130, %c0_131] : memref<32x8x256xf32, #tpu.memory_space<vmem>>, vector<1x8x256xf32>
    %661 = vector.shape_cast %660 : vector<1x8x256xf32> to vector<8x256xf32>
    %662 = arith.truncf %658 : vector<8x64xf32> to vector<8x64xbf16>
    %cst_132 = arith.constant dense<0.000000e+00> : vector<8x256xf32>
    %663 = tpu.matmul %662, %19, %cst_132 {dimension_numbers = #tpu.dot_dimension_numbers<[1], [0], [0], [1], [0, 0, 1, 1], [], []>} : vector<8x64xbf16>, vector<64x256xbf16>, vector<8x256xf32> -> vector<8x256xf32>
    %664 = arith.addf %661, %663 : vector<8x256xf32>
    %665 = vector.extract_strided_slice %664 {offsets = [0, 0], sizes = [8, 192], strides = [1, 1]} : vector<8x256xf32> to vector<8x192xf32>
    %666 = arith.negf %665 : vector<8x192xf32>
    %667 = math.exp %666 : vector<8x192xf32>
    %cst_133 = arith.constant 1.000000e+00 : f32
    %668 = vector.broadcast %cst_133 : f32 to vector<8x192xf32>
    %669 = arith.addf %668, %667 : vector<8x192xf32>
    %670 = arith.divf %668, %669 : vector<8x192xf32>
    %671 = vector.extract_strided_slice %670 {offsets = [0, 0], sizes = [8, 64], strides = [1, 1]} : vector<8x192xf32> to vector<8x64xf32>
    %672 = vector.extract_strided_slice %670 {offsets = [0, 64], sizes = [8, 64], strides = [1, 1]} : vector<8x192xf32> to vector<8x64xf32>
    %673 = vector.extract_strided_slice %670 {offsets = [0, 128], sizes = [8, 64], strides = [1, 1]} : vector<8x192xf32> to vector<8x64xf32>
    %674 = vector.extract_strided_slice %664 {offsets = [0, 192], sizes = [8, 64], strides = [1, 1]} : vector<8x256xf32> to vector<8x64xf32>
    %675 = math.tanh %674 : vector<8x64xf32>
    %676 = arith.mulf %672, %656 : vector<8x64xf32>
    %677 = arith.mulf %671, %675 : vector<8x64xf32>
    %678 = arith.addf %676, %677 : vector<8x64xf32>
    %679 = math.tanh %678 : vector<8x64xf32>
    %680 = arith.mulf %673, %679 : vector<8x64xf32>
    %c30_i32 = arith.constant 30 : i32
    %681 = arith.index_cast %c30_i32 : i32 to index
    %c0_134 = arith.constant 0 : index
    %c0_135 = arith.constant 0 : index
    %682 = vector.load %arg9[%681, %c0_134, %c0_135] : memref<32x8x256xf32, #tpu.memory_space<vmem>>, vector<1x8x256xf32>
    %683 = vector.shape_cast %682 : vector<1x8x256xf32> to vector<8x256xf32>
    %684 = arith.truncf %680 : vector<8x64xf32> to vector<8x64xbf16>
    %cst_136 = arith.constant dense<0.000000e+00> : vector<8x256xf32>
    %685 = tpu.matmul %684, %19, %cst_136 {dimension_numbers = #tpu.dot_dimension_numbers<[1], [0], [0], [1], [0, 0, 1, 1], [], []>} : vector<8x64xbf16>, vector<64x256xbf16>, vector<8x256xf32> -> vector<8x256xf32>
    %686 = arith.addf %683, %685 : vector<8x256xf32>
    %687 = vector.extract_strided_slice %686 {offsets = [0, 0], sizes = [8, 192], strides = [1, 1]} : vector<8x256xf32> to vector<8x192xf32>
    %688 = arith.negf %687 : vector<8x192xf32>
    %689 = math.exp %688 : vector<8x192xf32>
    %cst_137 = arith.constant 1.000000e+00 : f32
    %690 = vector.broadcast %cst_137 : f32 to vector<8x192xf32>
    %691 = arith.addf %690, %689 : vector<8x192xf32>
    %692 = arith.divf %690, %691 : vector<8x192xf32>
    %693 = vector.extract_strided_slice %692 {offsets = [0, 0], sizes = [8, 64], strides = [1, 1]} : vector<8x192xf32> to vector<8x64xf32>
    %694 = vector.extract_strided_slice %692 {offsets = [0, 64], sizes = [8, 64], strides = [1, 1]} : vector<8x192xf32> to vector<8x64xf32>
    %695 = vector.extract_strided_slice %692 {offsets = [0, 128], sizes = [8, 64], strides = [1, 1]} : vector<8x192xf32> to vector<8x64xf32>
    %696 = vector.extract_strided_slice %686 {offsets = [0, 192], sizes = [8, 64], strides = [1, 1]} : vector<8x256xf32> to vector<8x64xf32>
    %697 = math.tanh %696 : vector<8x64xf32>
    %698 = arith.mulf %694, %678 : vector<8x64xf32>
    %699 = arith.mulf %693, %697 : vector<8x64xf32>
    %700 = arith.addf %698, %699 : vector<8x64xf32>
    %701 = math.tanh %700 : vector<8x64xf32>
    %702 = arith.mulf %695, %701 : vector<8x64xf32>
    %c31_i32 = arith.constant 31 : i32
    %703 = arith.index_cast %c31_i32 : i32 to index
    %c0_138 = arith.constant 0 : index
    %c0_139 = arith.constant 0 : index
    %704 = vector.load %arg9[%703, %c0_138, %c0_139] : memref<32x8x256xf32, #tpu.memory_space<vmem>>, vector<1x8x256xf32>
    %705 = vector.shape_cast %704 : vector<1x8x256xf32> to vector<8x256xf32>
    %706 = arith.truncf %702 : vector<8x64xf32> to vector<8x64xbf16>
    %cst_140 = arith.constant dense<0.000000e+00> : vector<8x256xf32>
    %707 = tpu.matmul %706, %19, %cst_140 {dimension_numbers = #tpu.dot_dimension_numbers<[1], [0], [0], [1], [0, 0, 1, 1], [], []>} : vector<8x64xbf16>, vector<64x256xbf16>, vector<8x256xf32> -> vector<8x256xf32>
    %708 = arith.addf %705, %707 : vector<8x256xf32>
    %709 = vector.extract_strided_slice %708 {offsets = [0, 0], sizes = [8, 192], strides = [1, 1]} : vector<8x256xf32> to vector<8x192xf32>
    %710 = arith.negf %709 : vector<8x192xf32>
    %711 = math.exp %710 : vector<8x192xf32>
    %cst_141 = arith.constant 1.000000e+00 : f32
    %712 = vector.broadcast %cst_141 : f32 to vector<8x192xf32>
    %713 = arith.addf %712, %711 : vector<8x192xf32>
    %714 = arith.divf %712, %713 : vector<8x192xf32>
    %715 = vector.extract_strided_slice %714 {offsets = [0, 0], sizes = [8, 64], strides = [1, 1]} : vector<8x192xf32> to vector<8x64xf32>
    %716 = vector.extract_strided_slice %714 {offsets = [0, 64], sizes = [8, 64], strides = [1, 1]} : vector<8x192xf32> to vector<8x64xf32>
    %717 = vector.extract_strided_slice %714 {offsets = [0, 128], sizes = [8, 64], strides = [1, 1]} : vector<8x192xf32> to vector<8x64xf32>
    %718 = vector.extract_strided_slice %708 {offsets = [0, 192], sizes = [8, 64], strides = [1, 1]} : vector<8x256xf32> to vector<8x64xf32>
    %719 = math.tanh %718 : vector<8x64xf32>
    %720 = arith.mulf %716, %700 : vector<8x64xf32>
    %721 = arith.mulf %715, %719 : vector<8x64xf32>
    %722 = arith.addf %720, %721 : vector<8x64xf32>
    %723 = math.tanh %722 : vector<8x64xf32>
    %724 = arith.mulf %717, %723 : vector<8x64xf32>
    %c32_i32 = arith.constant 32 : i32
    %725 = arith.truncf %724 : vector<8x64xf32> to vector<8x64xbf16>
    %c0_142 = arith.constant 0 : index
    %c0_143 = arith.constant 0 : index
    %726 = vector.load %arg5[%c0_142, %c0_143] : memref<64x128xbf16, #tpu.memory_space<vmem>>, vector<64x128xbf16>
    %cst_144 = arith.constant dense<0.000000e+00> : vector<8x128xf32>
    %727 = tpu.matmul %725, %726, %cst_144 {dimension_numbers = #tpu.dot_dimension_numbers<[1], [0], [0], [1], [0, 0, 1, 1], [], []>} : vector<8x64xbf16>, vector<64x128xbf16>, vector<8x128xf32> -> vector<8x128xf32>
    %c0_145 = arith.constant 0 : index
    %c0_146 = arith.constant 0 : index
    %728 = vector.load %arg6[%c0_145, %c0_146] : memref<1x128xf32, #tpu.memory_space<vmem>>, vector<1x128xf32>
    %729 = vector.broadcast %728 : vector<1x128xf32> to vector<8x128xf32>
    %730 = arith.addf %727, %729 : vector<8x128xf32>
    %c0_147 = arith.constant 0 : index
    %c0_148 = arith.constant 0 : index
    %731 = vector.load %arg7[%c0_147, %c0_148] : memref<8x128xf32, #tpu.memory_space<vmem>>, vector<8x128xf32>
    tpu.vector_store %arg7[%c0_147, %c0_148], %730 {strides = array<i32>} : memref<8x128xf32, #tpu.memory_space<vmem>>, vector<8x128xf32>,
    %732 = tpu.iota {dimensions = array<i32: 1>} : vector<8x128xi32>
    %cst_149 = arith.constant dense<0xFF800000> : vector<8xf32>
    %733 = vector.multi_reduction <maximumf>, %730, %cst_149 [1] : vector<8x128xf32> to vector<8xf32>
    %734 = vector.shape_cast %733 : vector<8xf32> to vector<8x1xf32>
    %735 = vector.broadcast %734 : vector<8x1xf32> to vector<8x128xf32>
    %736 = arith.cmpf oeq, %730, %735 : vector<8x128xf32>
    %c128_i32 = arith.constant 128 : i32
    %737 = vector.broadcast %c128_i32 : i32 to vector<8x128xi32>
    %738 = arith.select %736, %732, %737 : vector<8x128xi1>, vector<8x128xi32>
    %cst_150 = arith.constant dense<2147483647> : vector<8xi32>
    %739 = vector.multi_reduction <minsi>, %738, %cst_150 [1] : vector<8x128xi32> to vector<8xi32>
    %740 = vector.shape_cast %739 : vector<8xi32> to vector<8x1xi32>
    %c0_151 = arith.constant 0 : index
    %c0_152 = arith.constant 0 : index
    %741 = vector.load %arg8[%c0_151, %c0_152] : memref<8x1xi32, #tpu.memory_space<vmem>>, vector<8x1xi32>
    tpu.vector_store %arg8[%c0_151, %c0_152], %740 {strides = array<i32>} : memref<8x1xi32, #tpu.memory_space<vmem>>, vector<8x1xi32>,
    return
  }
}

</mosaic_0001>

<bundles_post_ra>
// kernel: tpu_custom_call.1
= control target key start
LH: loop header
LB: loop body
LE: loop exit
PB: predicated region body
PF: predicated region fallthrough
CT: control target
= control target key end

     0   :  { %14 = vsyncpa [#allocation4], 0  ;;  %s8542_s0 = inlined_call_operand.vmem [shape: s32[512,1], index: 0, kind: input, shape index: {}]   ;;  %s8543_s1 = inlined_call_operand.vmem [shape: bf16[384,256], index: 1, kind: input, shape index: {}]   ;;  %s8544_s2 = inlined_call_operand.hbm [shape: bf16[384,256], index: 2, kind: input, shape index: {}]   ;;  %s8545_s3 = inlined_call_operand.vmem [shape: f32[1,256], index: 3, kind: input, shape index: {}]   ;;  %s8546_s4 = inlined_call_operand.vmem [shape: bf16[64,256], index: 4, kind: input, shape index: {}]   ;;  %s8547_s5 = inlined_call_operand.vmem [shape: bf16[64,128], index: 5, kind: input, shape index: {}]   ;;  %s8548_s6 = inlined_call_operand.vmem [shape: f32[1,128], index: 6, kind: input, shape index: {}]   ;;  %s8549_s7 = inlined_call_operand.hbm [shape: f32[8,128], index: 7, kind: output, shape index: {0}]   ;;  %s8550_s8 = inlined_call_operand.vmem [shape: s32[8,1], index: 8, kind: output, shape index: {1}]  }
   0x1   :  { %15 = vsyncpa [#allocation5], 0  ;;  %s6619_s27 = smov [#allocation3]   ;;  %s6571_s9 = scalar_lea.hbm %s8544_s2, 6144 }
   0x2   :  { %s25_s28 = sshll.u32 %s6619_s27, 4  ;;  %p6572_p0 = scmp.ne.s32.totalorder %s8544_s2, %s6571_s9  ;;  %s26_s28 = int_to_ptr.vmem [resolvable:$true] %s25_s28 }
   0x3   :  { %p6575_p1 = scmp.lt.u32.totalorder %s6571_s9, %s8544_s2 }
   0x5   :  { %p6577_p2 = pnand %p6575_p1, %p6572_p0 }
   0x7   :  { %6580 = shalt.err (!%p6577_p2)
}
   0x8   :  { %s6581_s14 = scalar_lea.vmem %s26_s28, 6144  ;;  %p6586_p4 = scmp.lt.s32.totalorder %s26_s28, %s26_s28 }
   0x9   :  { %p6582_p3 = scmp.ne.s32.totalorder %s26_s28, %s6581_s14  ;;  %p6587_p5 = scmp.lt.s32.totalorder %s6581_s14, %s6581_s14 }
   0xb   :  { %p6588_p6 = por %p6587_p5, %p6586_p4 }
   0xd   :  { %p6589_p7 = pnand %p6588_p6, %p6582_p3 }
   0xf   :  { %6592 = shalt.err (!%p6589_p7)
}
  0x10   :  { %s6620_s15 = smov 128   ;;  %s6621_s16 = smov 8  }
  0x11   :  { %31 = dma.hbm_to_vmem [thread:$0]  %s8544_s2, 6144, %s26_s28, [#allocation4], %s6620_s15, %s6620_s15, %s6621_s16  }
  0x12   :  { %6615 = dma.done.wait [#allocation4], 6144  }
  0x13   :  { %6616 = vsyncadd [#allocation4], 4294961152  ;;  %v8551_v0 = vmov 0   ;;  %v82_v1 = vld [vmem:[%s8542_s0 + $0x110] sm:$0xff]  ;;  %v80_v2 = vld [vmem:[%s8542_s0 + $0x100] sm:$0xff] }
  0x14   :  { %6002 = vset.pattern.permute.xlu1 %v8551_v0  ;;  %6001 = vset.pattern.permute.xlu0 %v8551_v0  ;;  %v83_v3 = vld [vmem:[%s8542_s0 + $0x118] sm:$0xff]  ;;  %v81_v4 = vld [vmem:[%s8542_s0 + $0x108] sm:$0xff]  ;;  %v84_v6 = vld [vmem:[%s8542_s0 + $0x120] sm:$0xff] }
  0x15   :  { %2550 = vmatprep.mubr.bf16.mxu1 %v8551_v0  ;;  %215 = vperm.xlu1 %6002, %v82_v1   ;;  %v85_v5 = vld [vmem:[%s8542_s0 + $0x128] sm:$0xff]  ;;  %v87_v7 = vld [vmem:[%s8542_s0 + $0x138] sm:$0xff]  ;;  %v86_v8 = vld [vmem:[%s8542_s0 + $0x130] sm:$0xff] }
  0x16   :  { %209 = vperm.xlu0 %6001, %v80_v2   ;;  %v6003_v9 = vld [vmem:[#allocation3 + $0x4] ss:$8 sps:$4 sm:$0xff]   ;;  %v6005_v12 = vld [vmem:[#allocation3] ss:$8 sps:$4 sm:$0xff]   ;;  %v6006_v13 = vld [vmem:[#allocation3 + $0x14] ss:$8 sps:$4 sm:$0xff]  }
  0x17   :  { %v89_v10 = vld [vmem:[%s8542_s0 + $0x148] sm:$0xff]  ;;  %v88_v11 = vld [vmem:[%s8542_s0 + $0x140] sm:$0xff]  ;;  %1312 = vmatprep.subr.bf16.mxu0 %v6003_v9  ;;  %v6008_v14 = vld [vmem:[#allocation3 + $0x10] ss:$8 sps:$4 sm:$0xff]  }
  0x18   :  { %1313 = vmatpush1.bf16.msra.mxu0 %v6005_v12  ;;  %v6009_v15 = vld [vmem:[#allocation3 + $0x24] ss:$8 sps:$4 sm:$0xff]   ;;  %v91_v16 = vld [vmem:[%s8542_s0 + $0x158] sm:$0xff]  ;;  %v90_v17 = vld [vmem:[%s8542_s0 + $0x150] sm:$0xff] }
  0x19   :  { %218 = vperm.xlu1 %6002, %v83_v3   ;;  %1314 = vmatprep.subr.bf16.mxu0 %v6006_v13  ;;  %v6011_v18 = vld [vmem:[#allocation3 + $0x20] ss:$8 sps:$4 sm:$0xff]   ;;  %v6012_v19 = vld [vmem:[#allocation3 + $0x34] ss:$8 sps:$4 sm:$0xff]   ;;  %v6014_v22 = vld [vmem:[#allocation3 + $0x30] ss:$8 sps:$4 sm:$0xff]  }
  0x1a   :  { %212 = vperm.xlu0 %6001, %v81_v4   ;;  %v93_v20 = vld [vmem:[%s8542_s0 + $0x168] sm:$0xff]  ;;  %v92_v21 = vld [vmem:[%s8542_s0 + $0x160] sm:$0xff]  ;;  %v95_v24 = vld [vmem:[%s8542_s0 + $0x178] sm:$0xff] }
  0x1b   :  { %v6015_v23 = vld [vmem:[#allocation3 + $0x44] ss:$8 sps:$4 sm:$0xff]   ;;  %v94_v25 = vld [vmem:[%s8542_s0 + $0x170] sm:$0xff]  ;;  %v6017_v26 = vld [vmem:[#allocation3 + $0x40] ss:$8 sps:$4 sm:$0xff]  }
  0x1c   :  { %1315 = vmatpush1.bf16.msra.mxu0 %v6008_v14  ;;  %v6018_v27 = vld [vmem:[#allocation3 + $0x54] ss:$8 sps:$4 sm:$0xff]   ;;  %v97_v28 = vld [vmem:[%s8542_s0 + $0x188] sm:$0xff]  ;;  %v96_v29 = vld [vmem:[%s8542_s0 + $0x180] sm:$0xff] }
  0x1d   :  { %224 = vperm.xlu1 %6002, %v85_v5   ;;  %1316 = vmatprep.subr.bf16.mxu0 %v6009_v15  ;;  %v6020_v30 = vld [vmem:[#allocation3 + $0x50] ss:$8 sps:$4 sm:$0xff]   ;;  %v6021_v31 = vld [vmem:[#allocation3 + $0x64] ss:$8 sps:$4 sm:$0xff]   ;;  %v6023_v34 = vld [vmem:[#allocation3 + $0x60] ss:$8 sps:$4 sm:$0xff]  }
  0x1e   :  { %221 = vperm.xlu0 %6001, %v84_v6   ;;  %v99_v32 = vld [vmem:[%s8542_s0 + $0x198] sm:$0xff]  ;;  %v98_v33 = vld [vmem:[%s8542_s0 + $0x190] sm:$0xff]  ;;  %v101_v36 = vld [vmem:[%s8542_s0 + $0x1a8] sm:$0xff] }
  0x1f   :  { %v6024_v35 = vld [vmem:[#allocation3 + $0x74] ss:$8 sps:$4 sm:$0xff]   ;;  %v100_v37 = vld [vmem:[%s8542_s0 + $0x1a0] sm:$0xff]  ;;  %v6026_v38 = vld [vmem:[#allocation3 + $0x70] ss:$8 sps:$4 sm:$0xff]  }
  0x20   :  { %1317 = vmatpush1.bf16.msra.mxu0 %v6011_v18  ;;  %v6027_v39 = vld [vmem:[#allocation3 + $0x84] ss:$8 sps:$4 sm:$0xff]   ;;  %v103_v40 = vld [vmem:[%s8542_s0 + $0x1b8] sm:$0xff]  ;;  %v102_v41 = vld [vmem:[%s8542_s0 + $0x1b0] sm:$0xff] }
  0x21   :  { %230 = vperm.xlu1 %6002, %v87_v7   ;;  %1318 = vmatprep.subr.bf16.mxu0 %v6012_v19  ;;  %v6029_v42 = vld [vmem:[#allocation3 + $0x80] ss:$8 sps:$4 sm:$0xff]   ;;  %v6030_v44 = vld [vmem:[#allocation3 + $0x94] ss:$8 sps:$4 sm:$0xff]   ;;  %v6032_v46 = vld [vmem:[#allocation3 + $0x90] ss:$8 sps:$4 sm:$0xff]  }
  0x22   :  { %227 = vperm.xlu0 %6001, %v86_v8   ;;  %v105_v43 = vld [vmem:[%s8542_s0 + $0x1c8] sm:$0xff]  ;;  %v104_v45 = vld [vmem:[%s8542_s0 + $0x1c0] sm:$0xff]  ;;  %v107_v48 = vld [vmem:[%s8542_s0 + $0x1d8] sm:$0xff] }
  0x23   :  { %v6033_v47 = vld [vmem:[#allocation3 + $0xa4] ss:$8 sps:$4 sm:$0xff]   ;;  %v106_v49 = vld [vmem:[%s8542_s0 + $0x1d0] sm:$0xff]  ;;  %v6035_v50 = vld [vmem:[#allocation3 + $0xa0] ss:$8 sps:$4 sm:$0xff]  }
  0x24   :  { %1319 = vmatpush1.bf16.msra.mxu0 %v6014_v22  ;;  %v109_v51 = vld [vmem:[%s8542_s0 + $0x1e8] sm:$0xff]  ;;  %v108_v52 = vld [vmem:[%s8542_s0 + $0x1e0] sm:$0xff]  ;;  %v6036_v53 = vld [vmem:[#allocation3 + $0xb4] ss:$8 sps:$4 sm:$0xff]  }
  0x25   :  { %236 = vperm.xlu1 %6002, %v89_v10   ;;  %1320 = vmatprep.subr.bf16.mxu0 %v6015_v23  ;;  %v6038_v54 = vld [vmem:[#allocation3 + $0xb0] ss:$8 sps:$4 sm:$0xff]   ;;  %v6039_v55 = vld [vmem:[#allocation3 + $0xc4] ss:$8 sps:$4 sm:$0xff]   ;;  %v6041_v58 = vld [vmem:[#allocation3 + $0xc0] ss:$8 sps:$4 sm:$0xff]  }
  0x26   :  { %233 = vperm.xlu0 %6001, %v88_v11   ;;  %v111_v56 = vld [vmem:[%s8542_s0 + $0x1f8] sm:$0xff]  ;;  %v110_v57 = vld [vmem:[%s8542_s0 + $0x1f0] sm:$0xff]  ;;  %v49_v60 = vld [vmem:[%s8542_s0 + $0x8] sm:$0xff] }
  0x27   :  { %v6042_v59 = vld [vmem:[#allocation3 + $0xd4] ss:$8 sps:$4 sm:$0xff]   ;;  %v48_v61 = vld [vmem:[%s8542_s0] sm:$0xff]  ;;  %v6044_v62 = vld [vmem:[#allocation3 + $0xd0] ss:$8 sps:$4 sm:$0xff]  }
  0x28   :  { %1321 = vmatpush1.bf16.msra.mxu0 %v6017_v26  ;;  %v6045_v63 = vld [vmem:[#allocation3 + $0xe4] ss:$8 sps:$4 sm:$0xff]   ;;  %v51_v1 = vld [vmem:[%s8542_s0 + $0x18] sm:$0xff]  ;;  %v50_v2 = vld [vmem:[%s8542_s0 + $0x10] sm:$0xff] }
  0x29   :  { %242 = vperm.xlu1 %6002, %v91_v16   ;;  %1322 = vmatprep.subr.bf16.mxu0 %v6018_v27  ;;  %v6047_v3 = vld [vmem:[#allocation3 + $0xe0] ss:$8 sps:$4 sm:$0xff]   ;;  %v6048_v6 = vld [vmem:[#allocation3 + $0xf4] ss:$8 sps:$4 sm:$0xff]   ;;  %v6050_v7 = vld [vmem:[#allocation3 + $0xf0] ss:$8 sps:$4 sm:$0xff]  }
  0x2a   :  { %239 = vperm.xlu0 %6001, %v90_v17   ;;  %v53_v4 = vld [vmem:[%s8542_s0 + $0x28] sm:$0xff]  ;;  %v52_v5 = vld [vmem:[%s8542_s0 + $0x20] sm:$0xff]  ;;  %v55_v9 = vld [vmem:[%s8542_s0 + $0x38] sm:$0xff] }
  0x2b   :  { %v6053_v8 = vld [vmem:[#allocation3 + $0x104] ss:$8 sps:$4 sm:$0xff]   ;;  %v54_v10 = vld [vmem:[%s8542_s0 + $0x30] sm:$0xff]  ;;  %v59_v13 = vld [vmem:[%s8542_s0 + $0x58] sm:$0xff] }
  0x2c   :  { %1323 = vmatpush1.bf16.msra.mxu0 %v6020_v30  ;;  %v57_v11 = vld [vmem:[%s8542_s0 + $0x48] sm:$0xff]  ;;  %v56_v12 = vld [vmem:[%s8542_s0 + $0x40] sm:$0xff]  ;;  %v58_v14 = vld [vmem:[%s8542_s0 + $0x50] sm:$0xff] }
  0x2d   :  { %248 = vperm.xlu1 %6002, %v93_v20   ;;  %1324 = vmatprep.subr.bf16.mxu0 %v6021_v31  ;;  %v61_v15 = vld [vmem:[%s8542_s0 + $0x68] sm:$0xff]  ;;  %v60_v16 = vld [vmem:[%s8542_s0 + $0x60] sm:$0xff]  ;;  %v63_v17 = vld [vmem:[%s8542_s0 + $0x78] sm:$0xff] }
  0x2e   :  { %245 = vperm.xlu0 %6001, %v92_v21   ;;  %v62_v18 = vld [vmem:[%s8542_s0 + $0x70] sm:$0xff]  ;;  %v65_v19 = vld [vmem:[%s8542_s0 + $0x88] sm:$0xff]  ;;  %v64_v20 = vld [vmem:[%s8542_s0 + $0x80] sm:$0xff] }
  0x2f   :  { %v67_v21 = vld [vmem:[%s8542_s0 + $0x98] sm:$0xff]  ;;  %v66_v22 = vld [vmem:[%s8542_s0 + $0x90] sm:$0xff]  ;;  %v69_v23 = vld [vmem:[%s8542_s0 + $0xa8] sm:$0xff] }
  0x30   :  { %1325 = vmatpush1.bf16.msra.mxu0 %v6023_v34  ;;  %v70_v26 = vld [vmem:[%s8542_s0 + $0xb0] sm:$0xff]  ;;  %v73_v27 = vld [vmem:[%s8542_s0 + $0xc8] sm:$0xff] }
  0x31   :  { %254 = vperm.xlu1 %6002, %v95_v24   ;;  %1326 = vmatprep.subr.bf16.mxu0 %v6024_v35  ;;  %v68_v24 = vld [vmem:[%s8542_s0 + $0xa0] sm:$0xff]  ;;  %v74_v30 = vld [vmem:[%s8542_s0 + $0xd0] sm:$0xff]  ;;  %v77_v31 = vld [vmem:[%s8542_s0 + $0xe8] sm:$0xff]  ;;  %v44_v35 = vlaneseq }
  0x32   :  { %251 = vperm.xlu0 %6001, %v94_v25   ;;  %v71_v25 = vld [vmem:[%s8542_s0 + $0xb8] sm:$0xff]  ;;  %v78_v34 = vld [vmem:[%s8542_s0 + $0xf0] sm:$0xff] }
  0x34   :  { %1327 = vmatpush1.bf16.msra.mxu0 %v6026_v38 }
  0x35   :  { %260 = vperm.xlu1 %6002, %v97_v28   ;;  %1328 = vmatprep.subr.bf16.mxu0 %v6027_v39  ;;  %v72_v28 = vld [vmem:[%s8542_s0 + $0xc0] sm:$0xff] }
  0x36   :  { %257 = vperm.xlu0 %6001, %v96_v29   ;;  %v75_v29 = vld [vmem:[%s8542_s0 + $0xd8] sm:$0xff] }
  0x38   :  { %1329 = vmatpush1.bf16.msra.mxu0 %v6029_v42  ;;  %v6051_v42 = vld [vmem:[#allocation3 + $0x100] ss:$8 sps:$4 sm:$0xff]  }
  0x39   :  { %266 = vperm.xlu1 %6002, %v99_v32   ;;  %1330 = vmatprep.subr.bf16.mxu0 %v6030_v44  ;;  %v76_v32 = vld [vmem:[%s8542_s0 + $0xe0] sm:$0xff]  ;;  %v6623_v44 = vmov 1.0|1.0  }
  0x3a   :  { %263 = vperm.xlu0 %6001, %v98_v33   ;;  %v79_v33 = vld [vmem:[%s8542_s0 + $0xf8] sm:$0xff] }
  0x3c   :  { %1331 = vmatpush1.bf16.msra.mxu0 %v6032_v46 }
  0x3d   :  { %272 = vperm.xlu1 %6002, %v101_v36   ;;  %1332 = vmatprep.subr.bf16.mxu0 %v6033_v47  ;;  %v6881_v36 = vand.u32 127, %v44_v35 }
  0x3e   :  { %269 = vperm.xlu0 %6001, %v100_v37  }
  0x3f   :  { %8554 = vst [vmem:[#allocation9_spill] sm:$0xff] %v6881_v36  ;;  %v6888_v39 = vadd.s32 128, %v6881_v36 }
  0x40   :  { %1333 = vmatpush1.bf16.msra.mxu0 %v6035_v50  ;;  %v6062_v50 = vld [vmem:[#allocation3 + $0x134] ss:$8 sps:$4 sm:$0xff]  }
  0x41   :  { %278 = vperm.xlu1 %6002, %v103_v40   ;;  %1334 = vmatprep.subr.bf16.mxu0 %v6036_v53 }
  0x42   :  { %275 = vperm.xlu0 %6001, %v102_v41  }
  0x44   :  { %1335 = vmatpush1.bf16.msra.mxu0 %v6038_v54  ;;  %v6065_v54 = vld [vmem:[#allocation3 + $0x144] ss:$8 sps:$4 sm:$0xff]  }
  0x45   :  { %284 = vperm.xlu1 %6002, %v105_v43   ;;  %1336 = vmatprep.subr.bf16.mxu0 %v6039_v55  ;;  %v6056_v43 = vld [vmem:[#allocation3 + $0x114] ss:$8 sps:$4 sm:$0xff]   ;;  %v6063_v55 = vld [vmem:[#allocation3 + $0x140] ss:$8 sps:$4 sm:$0xff]  }
  0x46   :  { %281 = vperm.xlu0 %6001, %v104_v45   ;;  %v6054_v45 = vld [vmem:[#allocation3 + $0x110] ss:$8 sps:$4 sm:$0xff]  }
  0x48   :  { %1337 = vmatpush1.bf16.msra.mxu0 %v6041_v58 }
  0x49   :  { %290 = vperm.xlu1 %6002, %v107_v48   ;;  %1338 = vmatprep.subr.bf16.mxu0 %v6042_v59  ;;  %v6059_v48 = vld [vmem:[#allocation3 + $0x124] ss:$8 sps:$4 sm:$0xff]  }
  0x4a   :  { %287 = vperm.xlu0 %6001, %v106_v49   ;;  %v6057_v49 = vld [vmem:[#allocation3 + $0x120] ss:$8 sps:$4 sm:$0xff]  }
  0x4c   :  { %1339 = vmatpush1.bf16.msra.mxu0 %v6044_v62  ;;  %v6074_v62 = vld [vmem:[#allocation3 + $0x174] ss:$8 sps:$4 sm:$0xff]  }
  0x4d   :  { %296 = vperm.xlu1 %6002, %v109_v51   ;;  %1340 = vmatprep.subr.bf16.mxu0 %v6045_v63  ;;  %v6060_v51 = vld [vmem:[#allocation3 + $0x130] ss:$8 sps:$4 sm:$0xff]  }
  0x4e   :  { %293 = vperm.xlu0 %6001, %v108_v52   ;;  %v6072_v63 = vld [vmem:[#allocation3 + $0x170] ss:$8 sps:$4 sm:$0xff]  }
  0x50   :  { %1341 = vmatpush1.bf16.msra.mxu0 %v6047_v3  ;;  %v6077_v3 = vld [vmem:[%s8543_s1 + $0x4] ss:$8 sps:$4 sm:$0xff]  }
  0x51   :  { %302 = vperm.xlu1 %6002, %v111_v56   ;;  %1342 = vmatprep.subr.bf16.mxu0 %v6048_v6  ;;  %v6068_v56 = vld [vmem:[#allocation3 + $0x154] ss:$8 sps:$4 sm:$0xff]  }
  0x52   :  { %299 = vperm.xlu0 %6001, %v110_v57   ;;  %v6066_v57 = vld [vmem:[#allocation3 + $0x150] ss:$8 sps:$4 sm:$0xff]  }
  0x54   :  { %1343 = vmatpush1.bf16.msra.mxu0 %v6050_v7 }
  0x55   :  { %116 = vperm.xlu1 %6002, %v49_v60   ;;  %1505 = vmatprep.subr.bf16.mxu0 %v6053_v8  ;;  %v6071_v60 = vld [vmem:[#allocation3 + $0x164] ss:$8 sps:$4 sm:$0xff]  }
  0x56   :  { %113 = vperm.xlu0 %6001, %v48_v61   ;;  %v6069_v61 = vld [vmem:[#allocation3 + $0x160] ss:$8 sps:$4 sm:$0xff]  }
  0x59   :  { %122 = vperm.xlu1 %6002, %v51_v1  }
  0x5a   :  { %119 = vperm.xlu0 %6001, %v50_v2  }
  0x5d   :  { %128 = vperm.xlu1 %6002, %v53_v4  }
  0x5e   :  { %125 = vperm.xlu0 %6001, %v52_v5  }
  0x61   :  { %134 = vperm.xlu1 %6002, %v55_v9  }
  0x62   :  { %131 = vperm.xlu0 %6001, %v54_v10  }
  0x65   :  { %140 = vperm.xlu1 %6002, %v57_v11  }
  0x66   :  { %137 = vperm.xlu0 %6001, %v56_v12  }
  0x69   :  { %146 = vperm.xlu1 %6002, %v59_v13  }
  0x6a   :  { %143 = vperm.xlu0 %6001, %v58_v14  }
  0x6d   :  { %152 = vperm.xlu1 %6002, %v61_v15  }
  0x6e   :  { %149 = vperm.xlu0 %6001, %v60_v16  }
  0x71   :  { %158 = vperm.xlu1 %6002, %v63_v17  }
  0x72   :  { %155 = vperm.xlu0 %6001, %v62_v18  }
  0x75   :  { %164 = vperm.xlu1 %6002, %v65_v19  }
  0x76   :  { %161 = vperm.xlu0 %6001, %v64_v20  }
  0x79   :  { %170 = vperm.xlu1 %6002, %v67_v21  }
  0x7a   :  { %167 = vperm.xlu0 %6001, %v66_v22  }
  0x7d   :  { %176 = vperm.xlu1 %6002, %v69_v23  }
  0x7e   :  { %173 = vperm.xlu0 %6001, %v68_v24   ;;  %v7115_v24 = vadd.s32 256, %v6881_v36 }
  0x81   :  { %182 = vperm.xlu1 %6002, %v71_v25   ;;  %v6075_v25 = vld [vmem:[%s8543_s1] ss:$8 sps:$4 sm:$0xff]  }
  0x82   :  { %179 = vperm.xlu0 %6001, %v70_v26   ;;  %v6080_v26 = vld [vmem:[%s8543_s1 + $0x14] ss:$8 sps:$4 sm:$0xff]  }
  0x85   :  { %188 = vperm.xlu1 %6002, %v73_v27   ;;  %v6078_v27 = vld [vmem:[%s8543_s1 + $0x10] ss:$8 sps:$4 sm:$0xff]  }
  0x86   :  { %185 = vperm.xlu0 %6001, %v72_v28   ;;  %v6083_v28 = vld [vmem:[%s8543_s1 + $0x24] ss:$8 sps:$4 sm:$0xff]  }
  0x89   :  { %194 = vperm.xlu1 %6002, %v75_v29   ;;  %v6081_v29 = vld [vmem:[%s8543_s1 + $0x20] ss:$8 sps:$4 sm:$0xff]  }
  0x8a   :  { %191 = vperm.xlu0 %6001, %v74_v30   ;;  %v6086_v30 = vld [vmem:[%s8543_s1 + $0x34] ss:$8 sps:$4 sm:$0xff]  }
  0x8d   :  { %200 = vperm.xlu1 %6002, %v77_v31   ;;  %v6084_v31 = vld [vmem:[%s8543_s1 + $0x30] ss:$8 sps:$4 sm:$0xff]  }
  0x8e   :  { %197 = vperm.xlu0 %6001, %v76_v32   ;;  %v6089_v32 = vld [vmem:[%s8543_s1 + $0x44] ss:$8 sps:$4 sm:$0xff]  }
  0x91   :  { %206 = vperm.xlu1 %6002, %v79_v33   ;;  %v6087_v33 = vld [vmem:[%s8543_s1 + $0x40] ss:$8 sps:$4 sm:$0xff]  }
  0x92   :  { %203 = vperm.xlu0 %6001, %v78_v34   ;;  %v6092_v34 = vld [vmem:[%s8543_s1 + $0x54] ss:$8 sps:$4 sm:$0xff]  }
  0x94   :  { %v6883_v37 = vpop.permute.xlu1 %215 }
  0x95   :  { %v6885_v38 = vpop.permute.xlu0 %209  ;;  %vm407_vm3 = vcmp.eq.s32.totalorder %v6888_v39, %v6883_v37  ;;  %vm406_vm9 = vcmp.eq.s32.totalorder %v6881_v36, %v6883_v37 }
  0x96   :  { %vm401_vm2 = vcmp.eq.s32.totalorder %v6888_v39, %v6885_v38  ;;  %vm400_vm6 = vcmp.eq.s32.totalorder %v6881_v36, %v6885_v38 }
  0x98   :  { %v6892_v41 = vpop.permute.xlu1 %218 }
  0x99   :  { %v6890_v40 = vpop.permute.xlu0 %212  ;;  %vm410_vm4 = vcmp.eq.s32.totalorder %v6888_v39, %v6892_v41  ;;  %vm409_vm10 = vcmp.eq.s32.totalorder %v6881_v36, %v6892_v41 }
  0x9a   :  { %vm404_vm0 = vcmp.eq.s32.totalorder %v6888_v39, %v6890_v40  ;;  %vm403_vm1 = vcmp.eq.s32.totalorder %v6881_v36, %v6890_v40  ;;  %vm5438_vm8 = vmpackc.low %vm410_vm4, %vm407_vm3 }
  0x9b   :  { %vm5434_vm5 = vmpackc.low %vm404_vm0, %vm401_vm2 }
  0x9c   :  { %5435 = vmatprep.mubr.msk.bf16.mxu0 %vm5434_vm5, %v6623_v44  ;;  %vm5436_vm7 = vmpackc.low %vm403_vm1, %vm400_vm6  ;;  %v6909_v46 = vpop.permute.xlu1 %224 }
  0x9d   :  { %5437 = vmatmul.mubr.msk.bf16.vlgmr.msra.gmra.mrb[0].mxu0 %vm5436_vm7, %v6623_v44  ;;  %v6911_v47 = vpop.permute.xlu0 %221  ;;  %vm416_vm12 = vcmp.eq.s32.totalorder %v6888_v39, %v6909_v46  ;;  %vm5440_vm13 = vmpackc.low %vm409_vm10, %vm406_vm9  ;;  %vm415_vm0 = vcmp.eq.s32.totalorder %v6881_v36, %v6909_v46 }
  0x9e   :  { %1506 = vmatpush1.bf16.msra.mxu0 %v6051_v42  ;;  %5439 = vmatprep.mubr.msk.bf16.mxu0 %vm5438_vm8, %v6623_v44  ;;  %vm413_vm11 = vcmp.eq.s32.totalorder %v6888_v39, %v6911_v47  ;;  %vm412_vm15 = vcmp.eq.s32.totalorder %v6881_v36, %v6911_v47  ;;  %v6096_v42 = vld [vmem:[%s8543_s1 + $0x70] ss:$8 sps:$4 sm:$0xff]  }
  0x9f   :  { %1507 = vmatprep.subr.bf16.mxu0 %v6056_v43  ;;  %vm5442_vm14 = vmpackc.low %vm416_vm12, %vm413_vm11  ;;  %v6101_v43 = vld [vmem:[%s8543_s1 + $0x84] ss:$8 sps:$4 sm:$0xff]  }
  0xa0   :  { %v6923_v52 = vpop.permute.xlu1 %230  ;;  %vm5444_vm3 = vmpackc.low %vm415_vm0, %vm412_vm15 }
  0xa1   :  { %v6925_v53 = vpop.permute.xlu0 %227  ;;  %vm422_vm2 = vcmp.eq.s32.totalorder %v6888_v39, %v6923_v52  ;;  %vm421_vm6 = vcmp.eq.s32.totalorder %v6881_v36, %v6923_v52 }
  0xa2   :  { %1508 = vmatpush1.bf16.msra.mxu0 %v6054_v45  ;;  %vm419_vm1 = vcmp.eq.s32.totalorder %v6888_v39, %v6925_v53  ;;  %vm418_vm5 = vcmp.eq.s32.totalorder %v6881_v36, %v6925_v53  ;;  %v6099_v45 = vld [vmem:[%s8543_s1 + $0x80] ss:$8 sps:$4 sm:$0xff]  }
  0xa3   :  { %1509 = vmatprep.subr.bf16.mxu0 %v6059_v48  ;;  %vm5446_vm4 = vmpackc.low %vm422_vm2, %vm419_vm1  ;;  %v6107_v48 = vld [vmem:[%s8543_s1 + $0xa4] ss:$8 sps:$4 sm:$0xff]  }
  0xa4   :  { %v6937_v58 = vpop.permute.xlu1 %236  ;;  %vm5448_vm9 = vmpackc.low %vm421_vm6, %vm418_vm5 }
  0xa5   :  { %5441 = vmatmul.mubr.msk.bf16.gmra.mrb[4].mxu0 %vm5440_vm13, %v6623_v44  ;;  %v6939_v59 = vpop.permute.xlu0 %233  ;;  %vm428_vm8 = vcmp.eq.s32.totalorder %v6888_v39, %v6937_v58  ;;  %vm427_vm12 = vcmp.eq.s32.totalorder %v6881_v36, %v6937_v58 }
  0xa6   :  { %5443 = vmatprep.mubr.msk.bf16.mxu0 %vm5442_vm14, %v6623_v44  ;;  %1510 = vmatpush1.bf16.msra.mxu0 %v6057_v49  ;;  %vm425_vm7 = vcmp.eq.s32.totalorder %v6888_v39, %v6939_v59  ;;  %vm424_vm11 = vcmp.eq.s32.totalorder %v6881_v36, %v6939_v59  ;;  %v6105_v49 = vld [vmem:[%s8543_s1 + $0xa0] ss:$8 sps:$4 sm:$0xff]  }
  0xa7   :  { %1511 = vmatprep.subr.bf16.mxu0 %v6062_v50  ;;  %vm5450_vm10 = vmpackc.low %vm428_vm8, %vm425_vm7  ;;  %v6110_v50 = vld [vmem:[%s8543_s1 + $0xb4] ss:$8 sps:$4 sm:$0xff]  }
  0xa8   :  { %v6951_v1 = vpop.permute.xlu1 %242  ;;  %vm5452_vm15 = vmpackc.low %vm427_vm12, %vm424_vm11 }
  0xa9   :  { %v6953_v2 = vpop.permute.xlu0 %239  ;;  %vm434_vm14 = vcmp.eq.s32.totalorder %v6888_v39, %v6951_v1  ;;  %vm433_vm2 = vcmp.eq.s32.totalorder %v6881_v36, %v6951_v1 }
  0xaa   :  { %1512 = vmatpush1.bf16.msra.mxu0 %v6060_v51  ;;  %vm431_vm13 = vcmp.eq.s32.totalorder %v6888_v39, %v6953_v2  ;;  %vm430_vm1 = vcmp.eq.s32.totalorder %v6881_v36, %v6953_v2  ;;  %v6108_v51 = vld [vmem:[%s8543_s1 + $0xb0] ss:$8 sps:$4 sm:$0xff]  }
  0xab   :  { %1513 = vmatprep.subr.bf16.mxu0 %v6065_v54  ;;  %vm5454_vm0 = vmpackc.low %vm434_vm14, %vm431_vm13  ;;  %v6116_v54 = vld [vmem:[%s8543_s1 + $0xd4] ss:$8 sps:$4 sm:$0xff]  }
  0xac   :  { %v6968_v4 = vpop.permute.xlu1 %248  ;;  %vm5456_vm5 = vmpackc.low %vm433_vm2, %vm430_vm1 }
  0xad   :  { %5445 = vmatmul.mubr.msk.bf16.gmra.mrb[8].mxu0 %vm5444_vm3, %v6623_v44  ;;  %v6970_v5 = vpop.permute.xlu0 %245  ;;  %vm439_vm8 = vcmp.eq.s32.totalorder %v6881_v36, %v6968_v4 }
  0xae   :  { %5447 = vmatprep.mubr.msk.bf16.mxu0 %vm5446_vm4, %v6623_v44  ;;  %1514 = vmatpush1.bf16.msra.mxu0 %v6063_v55  ;;  %vm437_vm3 = vcmp.eq.s32.totalorder %v6888_v39, %v6970_v5  ;;  %vm440_vm4 = vcmp.eq.s32.totalorder %v6888_v39, %v6968_v4  ;;  %vm436_vm7 = vcmp.eq.s32.totalorder %v6881_v36, %v6970_v5  ;;  %v6114_v55 = vld [vmem:[%s8543_s1 + $0xd0] ss:$8 sps:$4 sm:$0xff]  }
  0xaf   :  { %1515 = vmatprep.subr.bf16.mxu0 %v6068_v56  ;;  %vm5458_vm6 = vmpackc.low %vm440_vm4, %vm437_vm3  ;;  %v6119_v56 = vld [vmem:[%s8543_s1 + $0xe4] ss:$8 sps:$4 sm:$0xff]  }
  0xb0   :  { %v6982_v6 = vpop.permute.xlu1 %254  ;;  %vm5460_vm11 = vmpackc.low %vm439_vm8, %vm436_vm7 }
  0xb1   :  { %v6984_v7 = vpop.permute.xlu0 %251  ;;  %vm445_vm14 = vcmp.eq.s32.totalorder %v6881_v36, %v6982_v6 }
  0xb2   :  { %1516 = vmatpush1.bf16.msra.mxu0 %v6066_v57  ;;  %vm442_vm13 = vcmp.eq.s32.totalorder %v6881_v36, %v6984_v7  ;;  %v6117_v57 = vld [vmem:[%s8543_s1 + $0xe0] ss:$8 sps:$4 sm:$0xff]  }
  0xb3   :  { %1517 = vmatprep.subr.bf16.mxu0 %v6071_v60  ;;  %vm5464_vm1 = vmpackc.low %vm445_vm14, %vm442_vm13  ;;  %v6125_v60 = vld [vmem:[%s8543_s1 + $0x104] ss:$8 sps:$4 sm:$0xff]  }
  0xb4   :  { %v6996_v8 = vpop.permute.xlu1 %260 }
  0xb5   :  { %5449 = vmatmul.mubr.msk.bf16.gmra.mrb[12].mxu0 %vm5448_vm9, %v6623_v44  ;;  %vm443_vm9 = vcmp.eq.s32.totalorder %v6888_v39, %v6984_v7  ;;  %v6998_v9 = vpop.permute.xlu0 %257  ;;  %vm451_vm4 = vcmp.eq.s32.totalorder %v6881_v36, %v6996_v8 }
  0xb6   :  { %5451 = vmatprep.mubr.msk.bf16.mxu0 %vm5450_vm10, %v6623_v44  ;;  %1518 = vmatpush1.bf16.msra.mxu0 %v6069_v61  ;;  %vm446_vm10 = vcmp.eq.s32.totalorder %v6888_v39, %v6982_v6  ;;  %vm448_vm3 = vcmp.eq.s32.totalorder %v6881_v36, %v6998_v9  ;;  %v7300_v61 = vld [vmem:[%s8546_s4 + $0x4] ss:$8 sps:$4 sm:$0xff]  }
  0xb7   :  { %1519 = vmatprep.subr.bf16.mxu0 %v6074_v62  ;;  %vm5462_vm12 = vmpackc.low %vm446_vm10, %vm443_vm9  ;;  %2518 = vmatprep.subr.bf16.mxu1 %v7300_v61  ;;  %v7311_v62 = vld [vmem:[%s8546_s4] ss:$8 sps:$4 sm:$0xff]  }
  0xb8   :  { %v7010_v10 = vpop.permute.xlu1 %266  ;;  %vm5468_vm7 = vmpackc.low %vm451_vm4, %vm448_vm3  ;;  %2519 = vmatpush1.bf16.msra.mxu1 %v7311_v62 }
  0xb9   :  { %v7012_v11 = vpop.permute.xlu0 %263  ;;  %vm457_vm10 = vcmp.eq.s32.totalorder %v6881_v36, %v7010_v10 }
  0xba   :  { %1520 = vmatpush1.bf16.msra.mxu0 %v6072_v63  ;;  %vm454_vm9 = vcmp.eq.s32.totalorder %v6881_v36, %v7012_v11  ;;  %v7317_v63 = vld [vmem:[%s8546_s4 + $0x14] ss:$8 sps:$4 sm:$0xff]  }
  0xbb   :  { %1938 = vmatprep.subr.bf16.mxu0 %v6077_v3  ;;  %vm5472_vm13 = vmpackc.low %vm457_vm10, %vm454_vm9  ;;  %v7327_v3 = vld [vmem:[%s8546_s4 + $0x10] ss:$8 sps:$4 sm:$0xff]   ;;  %2520 = vmatprep.subr.bf16.mxu1 %v7317_v63 }
  0xbc   :  { %v7024_v12 = vpop.permute.xlu1 %272  ;;  %2521 = vmatpush1.bf16.msra.mxu1 %v7327_v3 }
  0xbd   :  { %5453 = vmatmul.mubr.msk.bf16.gmra.mrb[16].mxu0 %vm5452_vm15, %v6623_v44  ;;  %vm449_vm15 = vcmp.eq.s32.totalorder %v6888_v39, %v6998_v9  ;;  %v7026_v13 = vpop.permute.xlu0 %269 }
  0xbe   :  { %5455 = vmatprep.mubr.msk.bf16.mxu0 %vm5454_vm0, %v6623_v44  ;;  %vm452_vm0 = vcmp.eq.s32.totalorder %v6888_v39, %v6996_v8 }
  0xbf   :  { %vm5466_vm2 = vmpackc.low %vm452_vm0, %vm449_vm15  ;;  %vm460_vm15 = vcmp.eq.s32.totalorder %v6881_v36, %v7026_v13  ;;  %vm463_vm0 = vcmp.eq.s32.totalorder %v6881_v36, %v7024_v12 }
  0xc0   :  { %v7038_v14 = vpop.permute.xlu1 %278  ;;  %vm5476_vm3 = vmpackc.low %vm463_vm0, %vm460_vm15 }
  0xc1   :  { %v7040_v15 = vpop.permute.xlu0 %275 }
  0xc4   :  { %v7052_v16 = vpop.permute.xlu1 %284 }
  0xc5   :  { %5457 = vmatmul.mubr.msk.bf16.gmra.mrb[20].mxu0 %vm5456_vm5, %v6623_v44  ;;  %vm455_vm5 = vcmp.eq.s32.totalorder %v6888_v39, %v7012_v11  ;;  %v7054_v17 = vpop.permute.xlu0 %281 }
  0xc6   :  { %5459 = vmatprep.mubr.msk.bf16.mxu0 %vm5458_vm6, %v6623_v44  ;;  %vm458_vm6 = vcmp.eq.s32.totalorder %v6888_v39, %v7010_v10 }
  0xc7   :  { %vm5470_vm8 = vmpackc.low %vm458_vm6, %vm455_vm5  ;;  %vm466_vm5 = vcmp.eq.s32.totalorder %v6881_v36, %v7040_v15  ;;  %vm469_vm6 = vcmp.eq.s32.totalorder %v6881_v36, %v7038_v14 }
  0xc8   :  { %vm5480_vm9 = vmpackc.low %vm469_vm6, %vm466_vm5  ;;  %v7066_v18 = vpop.permute.xlu1 %290 }
  0xc9   :  { %v7068_v19 = vpop.permute.xlu0 %287 }
  0xcc   :  { %v7080_v20 = vpop.permute.xlu1 %296 }
  0xcd   :  { %5461 = vmatmul.mubr.msk.bf16.gmra.mrb[24].mxu0 %vm5460_vm11, %v6623_v44  ;;  %vm461_vm11 = vcmp.eq.s32.totalorder %v6888_v39, %v7026_v13  ;;  %v7082_v21 = vpop.permute.xlu0 %293 }
  0xce   :  { %5463 = vmatprep.mubr.msk.bf16.mxu0 %vm5462_vm12, %v6623_v44  ;;  %vm464_vm12 = vcmp.eq.s32.totalorder %v6888_v39, %v7024_v12 }
  0xcf   :  { %vm5474_vm14 = vmpackc.low %vm464_vm12, %vm461_vm11  ;;  %vm472_vm11 = vcmp.eq.s32.totalorder %v6881_v36, %v7054_v17  ;;  %vm475_vm12 = vcmp.eq.s32.totalorder %v6881_v36, %v7052_v16 }
  0xd0   :  { %vm5484_vm15 = vmpackc.low %vm475_vm12, %vm472_vm11  ;;  %v7094_v22 = vpop.permute.xlu1 %302 }
  0xd1   :  { %v7096_v23 = vpop.permute.xlu0 %299 }
  0xd5   :  { %5465 = vmatmul.mubr.msk.bf16.gmra.mrb[28].mxu0 %vm5464_vm1, %v6623_v44  ;;  %vm467_vm1 = vcmp.eq.s32.totalorder %v6888_v39, %v7040_v15 }
  0xd6   :  { %5467 = vmatprep.mubr.msk.bf16.mxu0 %vm5466_vm2, %v6623_v44  ;;  %vm470_vm2 = vcmp.eq.s32.totalorder %v6888_v39, %v7038_v14 }
  0xd7   :  { %vm5478_vm4 = vmpackc.low %vm470_vm2, %vm467_vm1  ;;  %vm478_vm1 = vcmp.eq.s32.totalorder %v6881_v36, %v7068_v19  ;;  %vm481_vm2 = vcmp.eq.s32.totalorder %v6881_v36, %v7066_v18 }
  0xd8   :  { %vm5488_vm5 = vmpackc.low %vm481_vm2, %vm478_vm1  ;;  %vm402_vm1 = vcmp.eq.s32.totalorder %v7115_v24, %v6885_v38  ;;  %v6095_v38 = vld [vmem:[%s8543_s1 + $0x64] ss:$8 sps:$4 sm:$0xff]  }
  0xdd   :  { %5469 = vmatmul.mubr.msk.bf16.gmra.mrb[32].mxu0 %vm5468_vm7, %v6623_v44  ;;  %vm473_vm7 = vcmp.eq.s32.totalorder %v6888_v39, %v7054_v17 }
  0xde   :  { %5471 = vmatprep.mubr.msk.bf16.mxu0 %vm5470_vm8, %v6623_v44  ;;  %vm476_vm8 = vcmp.eq.s32.totalorder %v6888_v39, %v7052_v16 }
  0xdf   :  { %vm5482_vm10 = vmpackc.low %vm476_vm8, %vm473_vm7  ;;  %vm484_vm7 = vcmp.eq.s32.totalorder %v6881_v36, %v7082_v21  ;;  %vm487_vm8 = vcmp.eq.s32.totalorder %v6881_v36, %v7080_v20 }
  0xe0   :  { %vm5492_vm11 = vmpackc.low %vm487_vm8, %vm484_vm7  ;;  %vm417_vm7 = vcmp.eq.s32.totalorder %v7115_v24, %v6909_v46  ;;  %v6104_v46 = vld [vmem:[%s8543_s1 + $0x94] ss:$8 sps:$4 sm:$0xff]  }
  0xe5   :  { %5473 = vmatmul.mubr.msk.bf16.gmra.mrb[36].mxu0 %vm5472_vm13, %v6623_v44  ;;  %vm479_vm13 = vcmp.eq.s32.totalorder %v6888_v39, %v7068_v19 }
  0xe6   :  { %5475 = vmatprep.mubr.msk.bf16.mxu0 %vm5474_vm14, %v6623_v44  ;;  %vm482_vm14 = vcmp.eq.s32.totalorder %v6888_v39, %v7066_v18 }
  0xe7   :  { %vm5486_vm0 = vmpackc.low %vm482_vm14, %vm479_vm13  ;;  %vm490_vm13 = vcmp.eq.s32.totalorder %v6881_v36, %v7096_v23  ;;  %vm493_vm14 = vcmp.eq.s32.totalorder %v6881_v36, %v7094_v22 }
  0xed   :  { %5477 = vmatmul.mubr.msk.bf16.gmra.mrb[40].mxu0 %vm5476_vm3, %v6623_v44  ;;  %vm485_vm3 = vcmp.eq.s32.totalorder %v6888_v39, %v7082_v21 }
  0xee   :  { %5479 = vmatprep.mubr.msk.bf16.mxu0 %vm5478_vm4, %v6623_v44  ;;  %vm488_vm4 = vcmp.eq.s32.totalorder %v6888_v39, %v7080_v20 }
  0xef   :  { %vm5490_vm6 = vmpackc.low %vm488_vm4, %vm485_vm3  ;;  %vm408_vm3 = vcmp.eq.s32.totalorder %v7115_v24, %v6883_v37  ;;  %vm411_vm4 = vcmp.eq.s32.totalorder %v7115_v24, %v6892_v41  ;;  %v6090_v37 = vld [vmem:[%s8543_s1 + $0x50] ss:$8 sps:$4 sm:$0xff]   ;;  %v6098_v41 = vld [vmem:[%s8543_s1 + $0x74] ss:$8 sps:$4 sm:$0xff]  }
  0xf5   :  { %5481 = vmatmul.mubr.msk.bf16.gmra.mrb[44].mxu0 %vm5480_vm9, %v6623_v44  ;;  %vm491_vm9 = vcmp.eq.s32.totalorder %v6888_v39, %v7096_v23 }
  0xf6   :  { %5483 = vmatprep.mubr.msk.bf16.mxu0 %vm5482_vm10, %v6623_v44  ;;  %vm494_vm10 = vcmp.eq.s32.totalorder %v6888_v39, %v7094_v22 }
  0xf7   :  { %vm5494_vm12 = vmpackc.low %vm494_vm10, %vm491_vm9  ;;  %vm420_vm9 = vcmp.eq.s32.totalorder %v7115_v24, %v6925_v53  ;;  %vm423_vm10 = vcmp.eq.s32.totalorder %v7115_v24, %v6923_v52  ;;  %v6113_v52 = vld [vmem:[%s8543_s1 + $0xc4] ss:$8 sps:$4 sm:$0xff]   ;;  %v6111_v53 = vld [vmem:[%s8543_s1 + $0xc0] ss:$8 sps:$4 sm:$0xff]  }
  0xfd   :  { %5485 = vmatmul.mubr.msk.bf16.gmra.mrb[48].mxu0 %vm5484_vm15, %v6623_v44  ;;  %vm5496_vm15 = vmpackc.low %vm493_vm14, %vm490_vm13  ;;  %vm429_vm13 = vcmp.eq.s32.totalorder %v7115_v24, %v6937_v58  ;;  %v6122_v58 = vld [vmem:[%s8543_s1 + $0xf4] ss:$8 sps:$4 sm:$0xff]  }
  0xfe   :  { %5487 = vmatprep.mubr.msk.bf16.mxu0 %vm5486_vm0, %v6623_v44  ;;  %vm405_vm0 = vcmp.eq.s32.totalorder %v7115_v24, %v6890_v40  ;;  %v6093_v40 = vld [vmem:[%s8543_s1 + $0x60] ss:$8 sps:$4 sm:$0xff]  }
  0xff   :  { %vm5498_vm2 = vmpackc.low %vm405_vm0, %vm402_vm1  ;;  %vm435_vm0 = vcmp.eq.s32.totalorder %v7115_v24, %v6951_v1  ;;  %v7319_v1 = vpop.permute.xlu1 %116 }
 0x105   :  { %5489 = vmatmul.mubr.msk.bf16.gmra.mrb[52].mxu0 %vm5488_vm5, %v6623_v44  ;;  %vm5500_vm5 = vmpackc.low %vm411_vm4, %vm408_vm3  ;;  %vm441_vm3 = vcmp.eq.s32.totalorder %v7115_v24, %v6968_v4  ;;  %v7333_v4 = vld [vmem:[%s8546_s4 + $0x24] ss:$8 sps:$4 sm:$0xff]  }
 0x106   :  { %5491 = vmatprep.mubr.msk.bf16.mxu0 %vm5490_vm6, %v6623_v44  ;;  %vm414_vm6 = vcmp.eq.s32.totalorder %v7115_v24, %v6911_v47  ;;  %v6102_v47 = vld [vmem:[%s8543_s1 + $0x90] ss:$8 sps:$4 sm:$0xff]   ;;  %2522 = vmatprep.subr.bf16.mxu1 %v7333_v4 }
 0x107   :  { %vm5502_vm8 = vmpackc.low %vm417_vm7, %vm414_vm6  ;;  %vm447_vm6 = vcmp.eq.s32.totalorder %v7115_v24, %v6982_v6  ;;  %v7354_v6 = vld [vmem:[%s8546_s4 + $0x34] ss:$8 sps:$4 sm:$0xff]  }
 0x10d   :  { %5493 = vmatmul.mubr.msk.bf16.gmra.mrb[56].mxu0 %vm5492_vm11, %v6623_v44  ;;  %vm5504_vm11 = vmpackc.low %vm423_vm10, %vm420_vm9  ;;  %vm453_vm9 = vcmp.eq.s32.totalorder %v7115_v24, %v6996_v8 }
 0x10e   :  { %5495 = vmatprep.mubr.msk.bf16.mxu0 %vm5494_vm12, %v6623_v44  ;;  %vm426_vm12 = vcmp.eq.s32.totalorder %v7115_v24, %v6939_v59  ;;  %v6120_v59 = vld [vmem:[%s8543_s1 + $0xf0] ss:$8 sps:$4 sm:$0xff]  }
 0x10f   :  { %vm5506_vm14 = vmpackc.low %vm429_vm13, %vm426_vm12  ;;  %vm459_vm12 = vcmp.eq.s32.totalorder %v7115_v24, %v7010_v10  ;;  %v6123_v10 = vld [vmem:[%s8543_s1 + $0x100] ss:$8 sps:$4 sm:$0xff]  }
 0x115   :  { %5497 = vmatmul.mubr.msk.bf16.gmra.mrb[60].mxu0 %vm5496_vm15, %v6623_v44  ;;  %vm432_vm15 = vcmp.eq.s32.totalorder %v7115_v24, %v6953_v2  ;;  %v7321_v2 = vpop.permute.xlu0 %113 }
 0x116   :  { %1537 = vmatprep.mubr.bf16.mxu0 %v8551_v0  ;;  %vm5508_vm1 = vmpackc.low %vm435_vm0, %vm432_vm15  ;;  %vm465_vm15 = vcmp.eq.s32.totalorder %v7115_v24, %v7024_v12  ;;  %v6126_v12 = vld [vmem:[%s8543_s1 + $0x110] ss:$8 sps:$4 sm:$0xff]  }
 0x119   :  { %v7359_v8 = vpop.permute.xlu0 %119 }
 0x11d   :  { %5499 = vmatmul.mubr.msk.bf16.vlgmr.msra.gmra.mrb[0].mxu0 %vm5498_vm2, %v6623_v44  ;;  %vm438_vm2 = vcmp.eq.s32.totalorder %v7115_v24, %v6970_v5  ;;  %v7349_v5 = vld [vmem:[%s8546_s4 + $0x20] ss:$8 sps:$4 sm:$0xff]  }
 0x11e   :  { %1939 = vmatpush1.bf16.msra.mxu0 %v6075_v25  ;;  %1547 = vmatprep.mubr.bf16.mxu0 %v8551_v0  ;;  %vm5510_vm4 = vmpackc.low %vm441_vm3, %vm438_vm2  ;;  %vm471_vm2 = vcmp.eq.s32.totalorder %v7115_v24, %v7038_v14  ;;  %v7391_v14 = vpop.permute.xlu0 %125  ;;  %v6138_v25 = vld [vmem:[%s8543_s1 + $0x150] ss:$8 sps:$4 sm:$0xff]  }
 0x11f   :  { %1940 = vmatprep.subr.bf16.mxu0 %v6080_v26  ;;  %2523 = vmatpush1.bf16.msra.mxu1 %v7349_v5 }
 0x120   :  { %2524 = vmatprep.subr.bf16.mxu1 %v7354_v6 }
 0x122   :  { %1941 = vmatpush1.bf16.msra.mxu0 %v6078_v27 }
 0x123   :  { %1942 = vmatprep.subr.bf16.mxu0 %v6083_v28  ;;  %v6143_v28 = vld [vmem:[%s8543_s1 + $0x164] ss:$8 sps:$4 sm:$0xff]  }
 0x125   :  { %5501 = vmatmul.mubr.msk.bf16.gmra.mrb[4].mxu0 %vm5500_vm5, %v6623_v44  ;;  %vm444_vm5 = vcmp.eq.s32.totalorder %v7115_v24, %v6984_v7  ;;  %v7357_v7 = vpop.permute.xlu1 %122 }
 0x126   :  { %1557 = vmatprep.mubr.bf16.mxu0 %v8551_v0  ;;  %1943 = vmatpush1.bf16.msra.mxu0 %v6081_v29  ;;  %vm5512_vm7 = vmpackc.low %vm447_vm6, %vm444_vm5  ;;  %vm477_vm5 = vcmp.eq.s32.totalorder %v7115_v24, %v7052_v16  ;;  %v6129_v16 = vld [vmem:[%s8543_s1 + $0x120] ss:$8 sps:$4 sm:$0xff]  }
 0x127   :  { %1944 = vmatprep.subr.bf16.mxu0 %v6086_v30  ;;  %v6141_v29 = vld [vmem:[%s8543_s1 + $0x160] ss:$8 sps:$4 sm:$0xff]   ;;  %v6146_v30 = vld [vmem:[%s8543_s1 + $0x174] ss:$8 sps:$4 sm:$0xff]  }
 0x12a   :  { %1945 = vmatpush1.bf16.msra.mxu0 %v6084_v31  ;;  %v6144_v31 = vld [vmem:[%s8543_s1 + $0x170] ss:$8 sps:$4 sm:$0xff]  }
 0x12b   :  { %1946 = vmatprep.subr.bf16.mxu0 %v6089_v32 }
 0x12d   :  { %5503 = vmatmul.mubr.msk.bf16.gmra.mrb[8].mxu0 %vm5502_vm8, %v6623_v44  ;;  %vm450_vm8 = vcmp.eq.s32.totalorder %v7115_v24, %v6998_v9  ;;  %v7365_v9 = vld [vmem:[%s8546_s4 + $0x30] ss:$8 sps:$4 sm:$0xff]  }
 0x12e   :  { %1567 = vmatprep.mubr.bf16.mxu0 %v8551_v0  ;;  %1947 = vmatpush1.bf16.msra.mxu0 %v6087_v33  ;;  %vm5514_vm10 = vmpackc.low %vm453_vm9, %vm450_vm8  ;;  %vm483_vm8 = vcmp.eq.s32.totalorder %v7115_v24, %v7066_v18  ;;  %v6132_v18 = vld [vmem:[%s8543_s1 + $0x130] ss:$8 sps:$4 sm:$0xff]  }
 0x12f   :  { %1948 = vmatprep.subr.bf16.mxu0 %v6092_v34  ;;  %2525 = vmatpush1.bf16.msra.mxu1 %v7365_v9 }
 0x130   :  { %2598 = vmatprep.subr.bf16.mxu1 %v7300_v61 }
 0x132   :  { %1949 = vmatpush1.bf16.msra.mxu0 %v6090_v37  ;;  %2551 = vmatmul.mubr.bf16.vlgmr.msra.gmra.mrb[0].mxu1 %v8551_v0 }
 0x133   :  { %1950 = vmatprep.subr.bf16.mxu0 %v6095_v38  ;;  %2599 = vmatpush1.bf16.msra.mxu1 %v7311_v62 }
 0x134   :  { %2630 = vmatprep.mubr.bf16.mxu1 %v8551_v0  ;;  %2600 = vmatprep.subr.bf16.mxu1 %v7317_v63 }
 0x135   :  { %5505 = vmatmul.mubr.msk.bf16.gmra.mrb[12].mxu0 %vm5504_vm11, %v6623_v44  ;;  %vm456_vm11 = vcmp.eq.s32.totalorder %v7115_v24, %v7012_v11  ;;  %v6128_v11 = vld [vmem:[%s8543_s1 + $0x114] ss:$8 sps:$4 sm:$0xff]  }
 0x136   :  { %1577 = vmatprep.mubr.bf16.mxu0 %v8551_v0  ;;  %1951 = vmatpush1.bf16.msra.mxu0 %v6093_v40  ;;  %vm5516_vm13 = vmpackc.low %vm459_vm12, %vm456_vm11  ;;  %vm489_vm11 = vcmp.eq.s32.totalorder %v7115_v24, %v7080_v20  ;;  %v7423_v20 = vpop.permute.xlu0 %131 }
 0x137   :  { %1952 = vmatprep.subr.bf16.mxu0 %v6098_v41  ;;  %2601 = vmatpush1.bf16.msra.mxu1 %v7327_v3 }
 0x138   :  { %2602 = vmatprep.subr.bf16.mxu1 %v7333_v4 }
 0x13a   :  { %1953 = vmatpush1.bf16.msra.mxu0 %v6096_v42  ;;  %v7453_v27 = vpop.permute.xlu0 %137 }
 0x13b   :  { %1954 = vmatprep.subr.bf16.mxu0 %v6101_v43  ;;  %2603 = vmatpush1.bf16.msra.mxu1 %v7349_v5 }
 0x13c   :  { %2604 = vmatprep.subr.bf16.mxu1 %v7354_v6 }
 0x13d   :  { %5507 = vmatmul.mubr.msk.bf16.gmra.mrb[16].mxu0 %vm5506_vm14, %v6623_v44  ;;  %vm462_vm14 = vcmp.eq.s32.totalorder %v7115_v24, %v7026_v13  ;;  %v7389_v13 = vpop.permute.xlu1 %128 }
 0x13e   :  { %1587 = vmatprep.mubr.bf16.mxu0 %v8551_v0  ;;  %1955 = vmatpush1.bf16.msra.mxu0 %v6099_v45  ;;  %vm5518_vm0 = vmpackc.low %vm465_vm15, %vm462_vm14  ;;  %vm495_vm14 = vcmp.eq.s32.totalorder %v7115_v24, %v7094_v22  ;;  %vm305_vm15 = vcmp.eq.s32.totalorder %v6888_v39, %v7321_v2  ;;  %v6135_v22 = vld [vmem:[%s8543_s1 + $0x140] ss:$8 sps:$4 sm:$0xff]   ;;  %v7479_v33 = vpop.permute.xlu0 %143 }
 0x13f   :  { %1956 = vmatprep.subr.bf16.mxu0 %v6104_v46  ;;  %2605 = vmatpush1.bf16.msra.mxu1 %v7365_v9 }
 0x140   :  { %2678 = vmatprep.subr.bf16.mxu1 %v7300_v61 }
 0x142   :  { %1957 = vmatpush1.bf16.msra.mxu0 %v6102_v47  ;;  %v7493_v37 = vpop.permute.xlu0 %149 }
 0x143   :  { %1958 = vmatprep.subr.bf16.mxu0 %v6107_v48 }
 0x145   :  { %5509 = vmatmul.mubr.msk.bf16.gmra.mrb[20].mxu0 %vm5508_vm1, %v6623_v44  ;;  %vm468_vm1 = vcmp.eq.s32.totalorder %v7115_v24, %v7040_v15  ;;  %v6131_v15 = vld [vmem:[%s8543_s1 + $0x124] ss:$8 sps:$4 sm:$0xff]  }
 0x146   :  { %1597 = vmatprep.mubr.bf16.mxu0 %v8551_v0  ;;  %1959 = vmatpush1.bf16.msra.mxu0 %v6105_v49  ;;  %vm5520_vm3 = vmpackc.low %vm471_vm2, %vm468_vm1  ;;  %v7507_v40 = vpop.permute.xlu0 %155 }
 0x147   :  { %1960 = vmatprep.subr.bf16.mxu0 %v6110_v50 }
 0x14a   :  { %1961 = vmatpush1.bf16.msra.mxu0 %v6108_v51  ;;  %v7521_v42 = vpop.permute.xlu0 %161 }
 0x14b   :  { %1962 = vmatprep.subr.bf16.mxu0 %v6113_v52 }
 0x14d   :  { %5511 = vmatmul.mubr.msk.bf16.gmra.mrb[24].mxu0 %vm5510_vm4, %v6623_v44  ;;  %vm474_vm4 = vcmp.eq.s32.totalorder %v7115_v24, %v7054_v17  ;;  %v6134_v17 = vld [vmem:[%s8543_s1 + $0x134] ss:$8 sps:$4 sm:$0xff]  }
 0x14e   :  { %1607 = vmatprep.mubr.bf16.mxu0 %v8551_v0  ;;  %1963 = vmatpush1.bf16.msra.mxu0 %v6111_v53  ;;  %vm5522_vm6 = vmpackc.low %vm477_vm5, %vm474_vm4  ;;  %vm304_vm4 = vcmp.eq.s32.totalorder %v6881_v36, %v7321_v2  ;;  %vm311_vm5 = vcmp.eq.s32.totalorder %v6888_v39, %v7359_v8  ;;  %v7535_v45 = vpop.permute.xlu0 %167 }
 0x14f   :  { %1964 = vmatprep.subr.bf16.mxu0 %v6116_v54 }
 0x152   :  { %1965 = vmatpush1.bf16.msra.mxu0 %v6114_v55  ;;  %v7549_v47 = vpop.permute.xlu0 %173 }
 0x153   :  { %1966 = vmatprep.subr.bf16.mxu0 %v6119_v56 }
 0x155   :  { %5513 = vmatmul.mubr.msk.bf16.gmra.mrb[28].mxu0 %vm5512_vm7, %v6623_v44  ;;  %vm480_vm7 = vcmp.eq.s32.totalorder %v7115_v24, %v7068_v19  ;;  %v7421_v19 = vpop.permute.xlu1 %134 }
 0x156   :  { %1617 = vmatprep.mubr.bf16.mxu0 %v8551_v0  ;;  %1967 = vmatpush1.bf16.msra.mxu0 %v6117_v57  ;;  %vm5524_vm9 = vmpackc.low %vm483_vm8, %vm480_vm7  ;;  %v7563_v49 = vpop.permute.xlu0 %179 }
 0x157   :  { %1968 = vmatprep.subr.bf16.mxu0 %v6122_v58  ;;  %v2324_v58 = vld [vmem:[%s8545_s3] sm:$0x3]  ;;  %s6624_s3 = smov 64  }
 0x159   :  { %v7451_v26 = vpop.permute.xlu1 %140 }
 0x15a   :  { %1969 = vmatpush1.bf16.msra.mxu0 %v6120_v59  ;;  %v7577_v51 = vpop.permute.xlu0 %185 }
 0x15b   :  { %2131 = vmatprep.subr.bf16.mxu0 %v6125_v60 }
 0x15d   :  { %5515 = vmatmul.mubr.msk.bf16.gmra.mrb[32].mxu0 %vm5514_vm10, %v6623_v44  ;;  %vm486_vm10 = vcmp.eq.s32.totalorder %v7115_v24, %v7082_v21  ;;  %v6137_v21 = vld [vmem:[%s8543_s1 + $0x144] ss:$8 sps:$4 sm:$0xff]   ;;  %v7477_v32 = vpop.permute.xlu1 %146 }
 0x15e   :  { %1627 = vmatprep.mubr.bf16.mxu0 %v8551_v0  ;;  %vm5526_vm12 = vmpackc.low %vm489_vm11, %vm486_vm10  ;;  %vm313_vm10 = vcmp.eq.s32.totalorder %v6881_v36, %v7357_v7  ;;  %vm317_vm11 = vcmp.eq.s32.totalorder %v6888_v39, %v7391_v14  ;;  %v7591_v53 = vpop.permute.xlu0 %191 }
 0x161   :  { %v7491_v34 = vpop.permute.xlu1 %152 }
 0x162   :  { %v7605_v55 = vpop.permute.xlu0 %197 }
 0x165   :  { %5517 = vmatmul.mubr.msk.bf16.gmra.mrb[36].mxu0 %vm5516_vm13, %v6623_v44  ;;  %vm492_vm13 = vcmp.eq.s32.totalorder %v7115_v24, %v7096_v23  ;;  %v6140_v23 = vld [vmem:[%s8543_s1 + $0x154] ss:$8 sps:$4 sm:$0xff]   ;;  %v7505_v38 = vpop.permute.xlu1 %158 }
 0x166   :  { %1637 = vmatprep.mubr.bf16.mxu0 %v8551_v0  ;;  %vm5528_vm1 = vmpackc.low %vm495_vm14, %vm492_vm13  ;;  %v7619_v57 = vpop.permute.xlu0 %203 }
 0x169   :  { %v7519_v41 = vpop.permute.xlu1 %164 }
 0x16d   :  { %5519 = vmatmul.mubr.msk.bf16.gmra.mrb[40].mxu0 %vm5518_vm0, %v6623_v44  ;;  %vm308_vm0 = vcmp.eq.s32.totalorder %v6888_v39, %v7319_v1  ;;  %v7533_v43 = vpop.permute.xlu1 %170 }
 0x16e   :  { %1647 = vmatprep.mubr.bf16.mxu0 %v8551_v0  ;;  %vm5578_vm2 = vmpackc.low %vm308_vm0, %vm305_vm15  ;;  %vm316_vm15 = vcmp.eq.s32.totalorder %v6881_v36, %v7391_v14  ;;  %vm319_vm0 = vcmp.eq.s32.totalorder %v6881_v36, %v7389_v13 }
 0x171   :  { %v7547_v46 = vpop.permute.xlu1 %176 }
 0x175   :  { %5521 = vmatmul.mubr.msk.bf16.gmra.mrb[44].mxu0 %vm5520_vm3, %v6623_v44  ;;  %vm307_vm3 = vcmp.eq.s32.totalorder %v6881_v36, %v7319_v1  ;;  %v7561_v48 = vpop.permute.xlu1 %182 }
 0x176   :  { %1657 = vmatprep.mubr.bf16.mxu0 %v8551_v0  ;;  %vm5580_vm7 = vmpackc.low %vm307_vm3, %vm304_vm4 }
 0x177   :  { %vm5588_vm3 = vmpackc.low %vm319_vm0, %vm316_vm15 }
 0x179   :  { %v7575_v50 = vpop.permute.xlu1 %188 }
 0x17d   :  { %5523 = vmatmul.mubr.msk.bf16.gmra.mrb[48].mxu0 %vm5522_vm6, %v6623_v44  ;;  %vm314_vm6 = vcmp.eq.s32.totalorder %v6888_v39, %v7357_v7  ;;  %v7589_v52 = vpop.permute.xlu1 %194 }
 0x17e   :  { %1667 = vmatprep.mubr.bf16.mxu0 %v8551_v0  ;;  %vm5582_vm8 = vmpackc.low %vm314_vm6, %vm311_vm5  ;;  %vm322_vm5 = vcmp.eq.s32.totalorder %v6881_v36, %v7423_v20  ;;  %vm325_vm6 = vcmp.eq.s32.totalorder %v6881_v36, %v7421_v19 }
 0x181   :  { %v7603_v54 = vpop.permute.xlu1 %200 }
 0x185   :  { %5525 = vmatmul.mubr.msk.bf16.gmra.mrb[52].mxu0 %vm5524_vm9, %v6623_v44  ;;  %vm310_vm9 = vcmp.eq.s32.totalorder %v6881_v36, %v7359_v8  ;;  %v7617_v56 = vpop.permute.xlu1 %206 }
 0x186   :  { %1677 = vmatprep.mubr.bf16.mxu0 %v8551_v0  ;;  %vm5584_vm13 = vmpackc.low %vm313_vm10, %vm310_vm9 }
 0x187   :  { %vm5592_vm9 = vmpackc.low %vm325_vm6, %vm322_vm5 }
 0x18d   :  { %5527 = vmatmul.mubr.msk.bf16.gmra.mrb[56].mxu0 %vm5526_vm12, %v6623_v44  ;;  %vm320_vm12 = vcmp.eq.s32.totalorder %v6888_v39, %v7389_v13 }
 0x18e   :  { %1687 = vmatprep.mubr.bf16.mxu0 %v8551_v0  ;;  %vm5586_vm14 = vmpackc.low %vm320_vm12, %vm317_vm11  ;;  %vm328_vm11 = vcmp.eq.s32.totalorder %v6881_v36, %v7453_v27  ;;  %vm331_vm12 = vcmp.eq.s32.totalorder %v6881_v36, %v7451_v26 }
 0x18f   :  { %vm5596_vm15 = vmpackc.low %vm331_vm12, %vm328_vm11 }
 0x195   :  { %5529 = vmatmul.mubr.msk.bf16.gmra.mrb[60].mxu0 %vm5528_vm1, %v6623_v44  ;;  %vm323_vm1 = vcmp.eq.s32.totalorder %v6888_v39, %v7423_v20 }
 0x196   :  { %5579 = vmatprep.mubr.msk.bf16.mxu0 %vm5578_vm2, %v6623_v44  ;;  %vm326_vm2 = vcmp.eq.s32.totalorder %v6888_v39, %v7421_v19 }
 0x197   :  { %vm5590_vm4 = vmpackc.low %vm326_vm2, %vm323_vm1  ;;  %vm334_vm1 = vcmp.eq.s32.totalorder %v6881_v36, %v7479_v33  ;;  %vm337_vm2 = vcmp.eq.s32.totalorder %v6881_v36, %v7477_v32 }
 0x198   :  { %vm5600_vm5 = vmpackc.low %vm337_vm2, %vm334_vm1 }
 0x19d   :  { %5581 = vmatmul.mubr.msk.bf16.vlgmr.msra.gmra.mrb[0].mxu0 %vm5580_vm7, %v6623_v44  ;;  %vm329_vm7 = vcmp.eq.s32.totalorder %v6888_v39, %v7453_v27 }
 0x19e   :  { %2132 = vmatpush1.bf16.msra.mxu0 %v6123_v10  ;;  %5583 = vmatprep.mubr.msk.bf16.mxu0 %vm5582_vm8, %v6623_v44  ;;  %vm332_vm8 = vcmp.eq.s32.totalorder %v6888_v39, %v7451_v26 }
 0x19f   :  { %2133 = vmatprep.subr.bf16.mxu0 %v6128_v11  ;;  %vm5594_vm10 = vmpackc.low %vm332_vm8, %vm329_vm7  ;;  %vm340_vm7 = vcmp.eq.s32.totalorder %v6881_v36, %v7493_v37  ;;  %vm343_vm8 = vcmp.eq.s32.totalorder %v6881_v36, %v7491_v34 }
 0x1a0   :  { %vm5604_vm11 = vmpackc.low %vm343_vm8, %vm340_vm7 }
 0x1a2   :  { %2134 = vmatpush1.bf16.msra.mxu0 %v6126_v12 }
 0x1a3   :  { %2135 = vmatprep.subr.bf16.mxu0 %v6131_v15 }
 0x1a5   :  { %5585 = vmatmul.mubr.msk.bf16.gmra.mrb[4].mxu0 %vm5584_vm13, %v6623_v44  ;;  %vm335_vm13 = vcmp.eq.s32.totalorder %v6888_v39, %v7479_v33 }
 0x1a6   :  { %5587 = vmatprep.mubr.msk.bf16.mxu0 %vm5586_vm14, %v6623_v44  ;;  %2136 = vmatpush1.bf16.msra.mxu0 %v6129_v16  ;;  %vm338_vm14 = vcmp.eq.s32.totalorder %v6888_v39, %v7477_v32 }
 0x1a7   :  { %2137 = vmatprep.subr.bf16.mxu0 %v6134_v17  ;;  %vm5598_vm0 = vmpackc.low %vm338_vm14, %vm335_vm13  ;;  %vm346_vm13 = vcmp.eq.s32.totalorder %v6881_v36, %v7507_v40  ;;  %vm349_vm14 = vcmp.eq.s32.totalorder %v6881_v36, %v7505_v38 }
 0x1a8   :  { %vm5608_vm1 = vmpackc.low %vm349_vm14, %vm346_vm13 }
 0x1aa   :  { %2138 = vmatpush1.bf16.msra.mxu0 %v6132_v18 }
 0x1ab   :  { %2139 = vmatprep.subr.bf16.mxu0 %v6137_v21 }
 0x1ad   :  { %5589 = vmatmul.mubr.msk.bf16.gmra.mrb[8].mxu0 %vm5588_vm3, %v6623_v44  ;;  %vm341_vm3 = vcmp.eq.s32.totalorder %v6888_v39, %v7493_v37 }
 0x1ae   :  { %5591 = vmatprep.mubr.msk.bf16.mxu0 %vm5590_vm4, %v6623_v44  ;;  %2140 = vmatpush1.bf16.msra.mxu0 %v6135_v22  ;;  %vm344_vm4 = vcmp.eq.s32.totalorder %v6888_v39, %v7491_v34 }
 0x1af   :  { %2141 = vmatprep.subr.bf16.mxu0 %v6140_v23  ;;  %vm5602_vm6 = vmpackc.low %vm344_vm4, %vm341_vm3  ;;  %vm352_vm3 = vcmp.eq.s32.totalorder %v6881_v36, %v7521_v42  ;;  %vm355_vm4 = vcmp.eq.s32.totalorder %v6881_v36, %v7519_v41 }
 0x1b0   :  { %vm5612_vm7 = vmpackc.low %vm355_vm4, %vm352_vm3 }
 0x1b2   :  { %2142 = vmatpush1.bf16.msra.mxu0 %v6138_v25 }
 0x1b3   :  { %2143 = vmatprep.subr.bf16.mxu0 %v6143_v28 }
 0x1b5   :  { %5593 = vmatmul.mubr.msk.bf16.gmra.mrb[12].mxu0 %vm5592_vm9, %v6623_v44  ;;  %vm347_vm9 = vcmp.eq.s32.totalorder %v6888_v39, %v7507_v40 }
 0x1b6   :  { %5595 = vmatprep.mubr.msk.bf16.mxu0 %vm5594_vm10, %v6623_v44  ;;  %2144 = vmatpush1.bf16.msra.mxu0 %v6141_v29  ;;  %vm350_vm10 = vcmp.eq.s32.totalorder %v6888_v39, %v7505_v38 }
 0x1b7   :  { %2145 = vmatprep.subr.bf16.mxu0 %v6146_v30  ;;  %vm5606_vm12 = vmpackc.low %vm350_vm10, %vm347_vm9  ;;  %vm358_vm9 = vcmp.eq.s32.totalorder %v6881_v36, %v7535_v45  ;;  %vm361_vm10 = vcmp.eq.s32.totalorder %v6881_v36, %v7533_v43 }
 0x1b8   :  { %vm5616_vm13 = vmpackc.low %vm361_vm10, %vm358_vm9 }
 0x1ba   :  { %2146 = vmatpush1.bf16.msra.mxu0 %v6144_v31 }
 0x1bd   :  { %5597 = vmatmul.mubr.msk.bf16.gmra.mrb[16].mxu0 %vm5596_vm15, %v6623_v44  ;;  %vm353_vm15 = vcmp.eq.s32.totalorder %v6888_v39, %v7521_v42 }
 0x1be   :  { %5599 = vmatprep.mubr.msk.bf16.mxu0 %vm5598_vm0, %v6623_v44  ;;  %vm356_vm0 = vcmp.eq.s32.totalorder %v6888_v39, %v7519_v41 }
 0x1bf   :  { %vm5610_vm2 = vmpackc.low %vm356_vm0, %vm353_vm15  ;;  %vm364_vm15 = vcmp.eq.s32.totalorder %v6881_v36, %v7549_v47  ;;  %vm367_vm0 = vcmp.eq.s32.totalorder %v6881_v36, %v7547_v46 }
 0x1c0   :  { %vm5620_vm3 = vmpackc.low %vm367_vm0, %vm364_vm15 }
 0x1c5   :  { %5601 = vmatmul.mubr.msk.bf16.gmra.mrb[20].mxu0 %vm5600_vm5, %v6623_v44  ;;  %vm359_vm5 = vcmp.eq.s32.totalorder %v6888_v39, %v7535_v45 }
 0x1c6   :  { %5603 = vmatprep.mubr.msk.bf16.mxu0 %vm5602_vm6, %v6623_v44  ;;  %vm362_vm6 = vcmp.eq.s32.totalorder %v6888_v39, %v7533_v43 }
 0x1c7   :  { %vm5614_vm8 = vmpackc.low %vm362_vm6, %vm359_vm5  ;;  %vm370_vm5 = vcmp.eq.s32.totalorder %v6881_v36, %v7563_v49  ;;  %vm373_vm6 = vcmp.eq.s32.totalorder %v6881_v36, %v7561_v48 }
 0x1c8   :  { %vm5624_vm9 = vmpackc.low %vm373_vm6, %vm370_vm5 }
 0x1cd   :  { %5605 = vmatmul.mubr.msk.bf16.gmra.mrb[24].mxu0 %vm5604_vm11, %v6623_v44  ;;  %vm365_vm11 = vcmp.eq.s32.totalorder %v6888_v39, %v7549_v47 }
 0x1ce   :  { %5607 = vmatprep.mubr.msk.bf16.mxu0 %vm5606_vm12, %v6623_v44  ;;  %vm368_vm12 = vcmp.eq.s32.totalorder %v6888_v39, %v7547_v46 }
 0x1cf   :  { %vm5618_vm14 = vmpackc.low %vm368_vm12, %vm365_vm11  ;;  %vm376_vm11 = vcmp.eq.s32.totalorder %v6881_v36, %v7577_v51  ;;  %vm379_vm12 = vcmp.eq.s32.totalorder %v6881_v36, %v7575_v50 }
 0x1d0   :  { %vm5628_vm15 = vmpackc.low %vm379_vm12, %vm376_vm11 }
 0x1d5   :  { %5609 = vmatmul.mubr.msk.bf16.gmra.mrb[28].mxu0 %vm5608_vm1, %v6623_v44  ;;  %vm371_vm1 = vcmp.eq.s32.totalorder %v6888_v39, %v7563_v49 }
 0x1d6   :  { %5611 = vmatprep.mubr.msk.bf16.mxu0 %vm5610_vm2, %v6623_v44  ;;  %vm374_vm2 = vcmp.eq.s32.totalorder %v6888_v39, %v7561_v48 }
 0x1d7   :  { %vm5622_vm4 = vmpackc.low %vm374_vm2, %vm371_vm1  ;;  %vm382_vm1 = vcmp.eq.s32.totalorder %v6881_v36, %v7591_v53  ;;  %vm385_vm2 = vcmp.eq.s32.totalorder %v6881_v36, %v7589_v52 }
 0x1d8   :  { %vm5632_vm5 = vmpackc.low %vm385_vm2, %vm382_vm1  ;;  %vm306_vm1 = vcmp.eq.s32.totalorder %v7115_v24, %v7321_v2 }
 0x1dd   :  { %5613 = vmatmul.mubr.msk.bf16.gmra.mrb[32].mxu0 %vm5612_vm7, %v6623_v44  ;;  %vm377_vm7 = vcmp.eq.s32.totalorder %v6888_v39, %v7577_v51 }
 0x1de   :  { %5615 = vmatprep.mubr.msk.bf16.mxu0 %vm5614_vm8, %v6623_v44  ;;  %vm380_vm8 = vcmp.eq.s32.totalorder %v6888_v39, %v7575_v50 }
 0x1df   :  { %vm5626_vm10 = vmpackc.low %vm380_vm8, %vm377_vm7  ;;  %vm388_vm7 = vcmp.eq.s32.totalorder %v6881_v36, %v7605_v55  ;;  %vm391_vm8 = vcmp.eq.s32.totalorder %v6881_v36, %v7603_v54 }
 0x1e0   :  { %vm5636_vm11 = vmpackc.low %vm391_vm8, %vm388_vm7  ;;  %vm321_vm7 = vcmp.eq.s32.totalorder %v7115_v24, %v7389_v13 }
 0x1e5   :  { %5617 = vmatmul.mubr.msk.bf16.gmra.mrb[36].mxu0 %vm5616_vm13, %v6623_v44  ;;  %vm383_vm13 = vcmp.eq.s32.totalorder %v6888_v39, %v7591_v53 }
 0x1e6   :  { %5619 = vmatprep.mubr.msk.bf16.mxu0 %vm5618_vm14, %v6623_v44  ;;  %vm386_vm14 = vcmp.eq.s32.totalorder %v6888_v39, %v7589_v52 }
 0x1e7   :  { %vm5630_vm0 = vmpackc.low %vm386_vm14, %vm383_vm13  ;;  %vm394_vm13 = vcmp.eq.s32.totalorder %v6881_v36, %v7619_v57  ;;  %vm397_vm14 = vcmp.eq.s32.totalorder %v6881_v36, %v7617_v56 }
 0x1ed   :  { %5621 = vmatmul.mubr.msk.bf16.gmra.mrb[40].mxu0 %vm5620_vm3, %v6623_v44  ;;  %vm389_vm3 = vcmp.eq.s32.totalorder %v6888_v39, %v7605_v55 }
 0x1ee   :  { %5623 = vmatprep.mubr.msk.bf16.mxu0 %vm5622_vm4, %v6623_v44  ;;  %vm392_vm4 = vcmp.eq.s32.totalorder %v6888_v39, %v7603_v54 }
 0x1ef   :  { %vm5634_vm6 = vmpackc.low %vm392_vm4, %vm389_vm3  ;;  %vm312_vm3 = vcmp.eq.s32.totalorder %v7115_v24, %v7359_v8  ;;  %vm315_vm4 = vcmp.eq.s32.totalorder %v7115_v24, %v7357_v7 }
 0x1f5   :  { %5625 = vmatmul.mubr.msk.bf16.gmra.mrb[44].mxu0 %vm5624_vm9, %v6623_v44  ;;  %vm395_vm9 = vcmp.eq.s32.totalorder %v6888_v39, %v7619_v57 }
 0x1f6   :  { %5627 = vmatprep.mubr.msk.bf16.mxu0 %vm5626_vm10, %v6623_v44  ;;  %vm398_vm10 = vcmp.eq.s32.totalorder %v6888_v39, %v7617_v56  ;;  %v2327_v39 = vshrl.u32 %v44_v35, 7 }
 0x1f7   :  { %vm5638_vm12 = vmpackc.low %vm398_vm10, %vm395_vm9  ;;  %vm324_vm9 = vcmp.eq.s32.totalorder %v7115_v24, %v7423_v20  ;;  %vm327_vm10 = vcmp.eq.s32.totalorder %v7115_v24, %v7421_v19 }
 0x1f8   :  { %v2328_v60 = vsub.s32 0, %v2327_v39  ;;  %v2332_v8 = vsub.s32 1, %v2327_v39 }
 0x1fa   :  { %v7738_v10 = vrot.slane %v2324_v58, %v2332_v8 }
 0x1fd   :  { %5629 = vmatmul.mubr.msk.bf16.gmra.mrb[48].mxu0 %vm5628_vm15, %v6623_v44  ;;  %vm5640_vm15 = vmpackc.low %vm397_vm14, %vm394_vm13  ;;  %vm333_vm13 = vcmp.eq.s32.totalorder %v7115_v24, %v7451_v26 }
 0x1fe   :  { %5631 = vmatprep.mubr.msk.bf16.mxu0 %vm5630_vm0, %v6623_v44  ;;  %vm309_vm0 = vcmp.eq.s32.totalorder %v7115_v24, %v7319_v1  ;;  %v7711_v1 = vrot.slane %v2324_v58, %v2328_v60 }
 0x1ff   :  { %vm5642_vm2 = vmpackc.low %vm309_vm0, %vm306_vm1  ;;  %vm339_vm0 = vcmp.eq.s32.totalorder %v7115_v24, %v7477_v32 }
 0x205   :  { %5633 = vmatmul.mubr.msk.bf16.gmra.mrb[52].mxu0 %vm5632_vm5, %v6623_v44  ;;  %vm5644_vm5 = vmpackc.low %vm315_vm4, %vm312_vm3  ;;  %vm345_vm3 = vcmp.eq.s32.totalorder %v7115_v24, %v7491_v34  ;;  %v2552_v59 = vpop.f32.mrb[0].mxu1 }
 0x206   :  { %5635 = vmatprep.mubr.msk.bf16.mxu0 %vm5634_vm6, %v6623_v44  ;;  %vm318_vm6 = vcmp.eq.s32.totalorder %v7115_v24, %v7391_v14  ;;  %v2554_v2 = vpop.f32.mrb[1].mxu1 }
 0x207   :  { %vm5646_vm8 = vmpackc.low %vm321_vm7, %vm318_vm6  ;;  %vm351_vm6 = vcmp.eq.s32.totalorder %v7115_v24, %v7505_v38  ;;  %v2556_v35 = vpop.f32.mrb[2].mxu1 }
 0x208   :  { %v2557_v7 = vpop.f32.mrb[3].mxu1 }
 0x20d   :  { %5637 = vmatmul.mubr.msk.bf16.gmra.mrb[56].mxu0 %vm5636_vm11, %v6623_v44  ;;  %vm5648_vm11 = vmpackc.low %vm327_vm10, %vm324_vm9  ;;  %vm357_vm9 = vcmp.eq.s32.totalorder %v7115_v24, %v7519_v41 }
 0x20e   :  { %5639 = vmatprep.mubr.msk.bf16.mxu0 %vm5638_vm12, %v6623_v44  ;;  %vm330_vm12 = vcmp.eq.s32.totalorder %v7115_v24, %v7453_v27 }
 0x20f   :  { %vm5650_vm14 = vmpackc.low %vm333_vm13, %vm330_vm12  ;;  %vm363_vm12 = vcmp.eq.s32.totalorder %v7115_v24, %v7533_v43 }
 0x215   :  { %5641 = vmatmul.mubr.msk.bf16.gmra.mrb[60].mxu0 %vm5640_vm15, %v6623_v44  ;;  %vm336_vm15 = vcmp.eq.s32.totalorder %v7115_v24, %v7479_v33 }
 0x216   :  { %2163 = vmatprep.mubr.bf16.mxu0 %v8551_v0  ;;  %vm5652_vm1 = vmpackc.low %vm339_vm0, %vm336_vm15  ;;  %vm369_vm15 = vcmp.eq.s32.totalorder %v7115_v24, %v7547_v46 }
 0x21d   :  { %5643 = vmatmul.mubr.msk.bf16.vlgmr.msra.gmra.mrb[0].mxu0 %vm5642_vm2, %v6623_v44  ;;  %vm342_vm2 = vcmp.eq.s32.totalorder %v7115_v24, %v7493_v37 }
 0x21e   :  { %2173 = vmatprep.mubr.bf16.mxu0 %v8551_v0  ;;  %vm5654_vm4 = vmpackc.low %vm345_vm3, %vm342_vm2  ;;  %vm375_vm2 = vcmp.eq.s32.totalorder %v7115_v24, %v7561_v48 }
 0x225   :  { %5645 = vmatmul.mubr.msk.bf16.gmra.mrb[4].mxu0 %vm5644_vm5, %v6623_v44  ;;  %vm348_vm5 = vcmp.eq.s32.totalorder %v7115_v24, %v7507_v40 }
 0x226   :  { %2183 = vmatprep.mubr.bf16.mxu0 %v8551_v0  ;;  %vm5656_vm7 = vmpackc.low %vm351_vm6, %vm348_vm5  ;;  %vm381_vm5 = vcmp.eq.s32.totalorder %v7115_v24, %v7575_v50 }
 0x22d   :  { %5647 = vmatmul.mubr.msk.bf16.gmra.mrb[8].mxu0 %vm5646_vm8, %v6623_v44  ;;  %vm354_vm8 = vcmp.eq.s32.totalorder %v7115_v24, %v7521_v42 }
 0x22e   :  { %2193 = vmatprep.mubr.bf16.mxu0 %v8551_v0  ;;  %vm5658_vm10 = vmpackc.low %vm357_vm9, %vm354_vm8  ;;  %vm387_vm8 = vcmp.eq.s32.totalorder %v7115_v24, %v7589_v52 }
 0x235   :  { %5649 = vmatmul.mubr.msk.bf16.gmra.mrb[12].mxu0 %vm5648_vm11, %v6623_v44  ;;  %vm360_vm11 = vcmp.eq.s32.totalorder %v7115_v24, %v7535_v45 }
 0x236   :  { %2203 = vmatprep.mubr.bf16.mxu0 %v8551_v0  ;;  %vm5660_vm13 = vmpackc.low %vm363_vm12, %vm360_vm11  ;;  %vm393_vm11 = vcmp.eq.s32.totalorder %v7115_v24, %v7603_v54 }
 0x23d   :  { %5651 = vmatmul.mubr.msk.bf16.gmra.mrb[16].mxu0 %vm5650_vm14, %v6623_v44  ;;  %vm366_vm14 = vcmp.eq.s32.totalorder %v7115_v24, %v7549_v47 }
 0x23e   :  { %2213 = vmatprep.mubr.bf16.mxu0 %v8551_v0  ;;  %vm5662_vm0 = vmpackc.low %vm369_vm15, %vm366_vm14  ;;  %vm399_vm14 = vcmp.eq.s32.totalorder %v7115_v24, %v7617_v56 }
 0x245   :  { %5653 = vmatmul.mubr.msk.bf16.gmra.mrb[20].mxu0 %vm5652_vm1, %v6623_v44  ;;  %vm372_vm1 = vcmp.eq.s32.totalorder %v7115_v24, %v7563_v49 }
 0x246   :  { %2223 = vmatprep.mubr.bf16.mxu0 %v8551_v0  ;;  %vm5664_vm3 = vmpackc.low %vm375_vm2, %vm372_vm1  ;;  %vm6626_vm1 = vmmov 0  }
 0x24d   :  { %5655 = vmatmul.mubr.msk.bf16.gmra.mrb[24].mxu0 %vm5654_vm4, %v6623_v44  ;;  %vm378_vm4 = vcmp.eq.s32.totalorder %v7115_v24, %v7577_v51 }
 0x24e   :  { %2233 = vmatprep.mubr.bf16.mxu0 %v8551_v0  ;;  %vm5666_vm6 = vmpackc.low %vm381_vm5, %vm378_vm4 }
 0x255   :  { %5657 = vmatmul.mubr.msk.bf16.gmra.mrb[28].mxu0 %vm5656_vm7, %v6623_v44  ;;  %vm384_vm7 = vcmp.eq.s32.totalorder %v7115_v24, %v7591_v53 }
 0x256   :  { %2243 = vmatprep.mubr.bf16.mxu0 %v8551_v0  ;;  %vm5668_vm9 = vmpackc.low %vm387_vm8, %vm384_vm7 }
 0x25d   :  { %5659 = vmatmul.mubr.msk.bf16.gmra.mrb[32].mxu0 %vm5658_vm10, %v6623_v44  ;;  %vm390_vm10 = vcmp.eq.s32.totalorder %v7115_v24, %v7605_v55 }
 0x25e   :  { %2253 = vmatprep.mubr.bf16.mxu0 %v8551_v0  ;;  %vm5670_vm12 = vmpackc.low %vm393_vm11, %vm390_vm10 }
 0x265   :  { %5661 = vmatmul.mubr.msk.bf16.gmra.mrb[36].mxu0 %vm5660_vm13, %v6623_v44  ;;  %vm396_vm13 = vcmp.eq.s32.totalorder %v7115_v24, %v7619_v57 }
 0x266   :  { %2263 = vmatprep.mubr.bf16.mxu0 %v8551_v0  ;;  %vm5672_vm15 = vmpackc.low %vm399_vm14, %vm396_vm13 }
 0x26d   :  { %5663 = vmatmul.mubr.msk.bf16.gmra.mrb[40].mxu0 %vm5662_vm0, %v6623_v44  ;;  %vm2514_vm0 = vcmask 523264  }
 0x26e   :  { %2273 = vmatprep.mubr.bf16.mxu0 %v8551_v0 }
 0x275   :  { %5665 = vmatmul.mubr.msk.bf16.gmra.mrb[44].mxu0 %vm5664_vm3, %v6623_v44 }
 0x276   :  { %2283 = vmatprep.mubr.bf16.mxu0 %v8551_v0 }
 0x27d   :  { %5667 = vmatmul.mubr.msk.bf16.gmra.mrb[48].mxu0 %vm5666_vm6, %v6623_v44 }
 0x27e   :  { %2293 = vmatprep.mubr.bf16.mxu0 %v8551_v0 }
 0x285   :  { %5669 = vmatmul.mubr.msk.bf16.gmra.mrb[52].mxu0 %vm5668_vm9, %v6623_v44 }
 0x286   :  { %2303 = vmatprep.mubr.bf16.mxu0 %v8551_v0 }
 0x28d   :  { %5671 = vmatmul.mubr.msk.bf16.gmra.mrb[56].mxu0 %vm5670_vm12, %v6623_v44 }
 0x28e   :  { %2313 = vmatprep.mubr.bf16.mxu0 %v8551_v0 }
 0x295   :  { %5673 = vmatmul.mubr.msk.bf16.gmra.mrb[60].mxu0 %vm5672_vm15, %v6623_v44 }
 0x2f0   :  { %v2165_v11 = vpop.f32.mrb[0].mxu0 }
 0x2f1   :  { %v2336_v12 = vadd.f32 %v7711_v1, %v2165_v11  ;;  %v2167_v13 = vpop.f32.mrb[1].mxu0 }
 0x2f2   :  { %v2337_v14 = vadd.f32 %v7738_v10, %v2167_v13  ;;  %v7742_v15 = vpop.f32.mrb[2].mxu0 }
 0x2f3   :  { %v2559_v16 = vadd.f32 %v2552_v59, %v2336_v12  ;;  %v7744_v17 = vpop.f32.mrb[3].mxu0 }
 0x2f4   :  { %v7746_v18 = vadd.f32 %v2554_v2, %v2337_v14 }
 0x2f5   :  { %v5682_v0 = vmul.f32 -1.442695, %v2559_v16 }
 0x2f6   :  { %6163 = vtanh.f32 %v7746_v18 }
 0x2f7   :  { %6165 = vpow2.f32 %v5682_v0 }
 0x2f8   :  { %v7749_v24 = vpop.f32.mrb[4].mxu0 }
 0x2f9   :  { %v7751_v44 = vpop.f32.mrb[5].mxu0 }
 0x2fa   :  { %v7753_v19 = vpop.f32.mrb[6].mxu0 }
 0x2fb   :  { %v7755_v20 = vpop.f32.mrb[7].mxu0 }
 0x300   :  { %v6164_v21 = vpop.eup %6163  ;;  %v7757_v22 = vpop.f32.mrb[8].mxu0 }
 0x301   :  { %2576 = vrot.lane.b32.xlu0 %v6164_v21, %s6624_s3  ;;  %v7760_v23 = vpop.f32.mrb[9].mxu0 }
 0x302   :  { %v7762_v25 = vpop.f32.mrb[10].mxu0 }
 0x303   :  { %v7764_v26 = vpop.f32.mrb[11].mxu0 }
 0x308   :  { %v7766_v27 = vpop.f32.mrb[12].mxu0 }
 0x309   :  { %v7768_v28 = vpop.f32.mrb[13].mxu0 }
 0x30a   :  { %v7770_v29 = vpop.f32.mrb[14].mxu0 }
 0x30b   :  { %v7772_v30 = vpop.f32.mrb[15].mxu0 }
 0x310   :  { %v7774_v31 = vpop.f32.mrb[16].mxu0 }
 0x311   :  { %v7776_v32 = vpop.f32.mrb[17].mxu0 }
 0x312   :  { %v7778_v33 = vpop.f32.mrb[18].mxu0 }
 0x313   :  { %v7780_v34 = vpop.f32.mrb[19].mxu0 }
 0x318   :  { %v7782_v37 = vpop.f32.mrb[20].mxu0 }
 0x319   :  { %v7784_v38 = vpop.f32.mrb[21].mxu0 }
 0x31a   :  { %v7786_v40 = vpop.f32.mrb[22].mxu0 }
 0x31b   :  { %v7788_v41 = vpop.f32.mrb[23].mxu0 }
 0x320   :  { %v7790_v42 = vpop.f32.mrb[24].mxu0 }
 0x321   :  { %v7792_v43 = vpop.f32.mrb[25].mxu0 }
 0x322   :  { %v7794_v45 = vpop.f32.mrb[26].mxu0 }
 0x323   :  { %v7796_v46 = vpop.f32.mrb[27].mxu0 }
 0x328   :  { %v7798_v47 = vpop.f32.mrb[28].mxu0 }
 0x329   :  { %v7800_v48 = vpop.f32.mrb[29].mxu0 }
 0x32a   :  { %v7802_v49 = vpop.f32.mrb[30].mxu0 }
 0x32b   :  { %v7804_v50 = vpop.f32.mrb[31].mxu0 }
 0x330   :  { %v7806_v51 = vpop.f32.mrb[32].mxu0 }
 0x331   :  { %v7808_v52 = vpop.f32.mrb[33].mxu0 }
 0x332   :  { %v7810_v53 = vpop.f32.mrb[34].mxu0 }
 0x333   :  { %v7812_v54 = vpop.f32.mrb[35].mxu0 }
 0x338   :  { %v7814_v55 = vpop.f32.mrb[36].mxu0 }
 0x339   :  { %v7816_v56 = vpop.f32.mrb[37].mxu0 }
 0x33a   :  { %v7818_v57 = vpop.f32.mrb[38].mxu0 }
 0x33b   :  { %v7820_v39 = vpop.f32.mrb[39].mxu0 }
 0x340   :  { %v7822_v58 = vpop.f32.mrb[40].mxu0 }
 0x341   :  { %8555 = vst [vmem:[#allocation10_spill] sm:$0xff] %v7822_v58  ;;  %v7824_v59 = vpop.f32.mrb[41].mxu0 }
 0x342   :  { %8556 = vst [vmem:[#allocation11_spill] sm:$0xff] %v7824_v59  ;;  %v7826_v60 = vpop.f32.mrb[42].mxu0 }
 0x343   :  { %8557 = vst [vmem:[#allocation12_spill] sm:$0xff] %v7826_v60  ;;  %v7828_v2 = vpop.f32.mrb[43].mxu0 }
 0x344   :  { %8558 = vst [vmem:[#allocation13_spill] sm:$0xff] %v7828_v2 }
 0x348   :  { %v7830_v35 = vpop.f32.mrb[44].mxu0 }
 0x349   :  { %8559 = vst [vmem:[#allocation14_spill] sm:$0xff] %v7830_v35  ;;  %v7832_v7 = vpop.f32.mrb[45].mxu0 }
 0x34a   :  { %8560 = vst [vmem:[#allocation15_spill] sm:$0xff] %v7832_v7  ;;  %v7834_v8 = vpop.f32.mrb[46].mxu0 }
 0x34b   :  { %8561 = vst [vmem:[#allocation16_spill] sm:$0xff] %v7834_v8  ;;  %v7836_v11 = vpop.f32.mrb[47].mxu0 }
 0x34c   :  { %8562 = vst [vmem:[#allocation17_spill] sm:$0xff] %v7836_v11 }
 0x350   :  { %v7838_v12 = vpop.f32.mrb[48].mxu0 }
 0x351   :  { %8563 = vst [vmem:[#allocation18_spill] sm:$0xff] %v7838_v12  ;;  %v7840_v13 = vpop.f32.mrb[49].mxu0  ;;  %v6166_v12 = vpop.eup %6165 }
 0x352   :  { %8564 = vst [vmem:[#allocation19_spill] sm:$0xff] %v7840_v13  ;;  %v7842_v14 = vpop.f32.mrb[50].mxu0 }
 0x353   :  { %8565 = vst [vmem:[#allocation20_spill] sm:$0xff] %v7842_v14  ;;  %v7844_v21 = vpop.f32.mrb[51].mxu0 }
 0x354   :  { %8566 = vst [vmem:[#allocation21_spill] sm:$0xff] %v7844_v21  ;;  %v2567_v21 = vadd.f32 1.0, %v6166_v12  ;;  %v5683_v12 = vmul.f32 -1.442695, %v7746_v18  ;;  %v2338_v18 = vadd.f32 %v7711_v1, %v7742_v15 }
 0x356   :  { %6167 = vrcp.f32 %v2567_v21 }
 0x358   :  { %v7846_v36 = vpop.f32.mrb[52].mxu0 }
 0x359   :  { %8567 = vst [vmem:[#allocation22_spill] sm:$0xff] %v7846_v36  ;;  %v7848_v2 = vpop.f32.mrb[53].mxu0 }
 0x35a   :  { %8568 = vst [vmem:[#allocation23_spill] sm:$0xff] %v7848_v2  ;;  %v7850_v35 = vpop.f32.mrb[54].mxu0 }
 0x35b   :  { %8569 = vst [vmem:[#allocation24_spill] sm:$0xff] %v7850_v35  ;;  %v7852_v7 = vpop.f32.mrb[55].mxu0 }
 0x35c   :  { %8570 = vst [vmem:[#allocation25_spill] sm:$0xff] %v7852_v7 }
 0x360   :  { %v7854_v8 = vpop.f32.mrb[56].mxu0  ;;  %v6168_v7 = vpop.eup %6167 }
 0x361   :  { %8571 = vst [vmem:[#allocation26_spill] sm:$0xff] %v7854_v8  ;;  %v7856_v11 = vpop.f32.mrb[57].mxu0 }
 0x362   :  { %8572 = vst [vmem:[#allocation27_spill] sm:$0xff] %v7856_v11  ;;  %v7858_v13 = vpop.f32.mrb[58].mxu0  ;;  %v2574_v11 = vmul.f32 0.0, %v6168_v7 }
 0x363   :  { %8573 = vst [vmem:[#allocation28_spill] sm:$0xff] %v7858_v13  ;;  %v7860_v14 = vpop.f32.mrb[59].mxu0 }
 0x364   :  { %8574 = vst [vmem:[#allocation29_spill] sm:$0xff] %v7860_v14 }
 0x368   :  { %v7862_v16 = vpop.f32.mrb[60].mxu0 }
 0x369   :  { %8575 = vst [vmem:[#allocation30_spill] sm:$0xff] %v7862_v16  ;;  %v7864_v0 = vpop.f32.mrb[61].mxu0 }
 0x36a   :  { %8576 = vst [vmem:[#allocation31_spill] sm:$0xff] %v7864_v0  ;;  %v7866_v2 = vpop.f32.mrb[62].mxu0 }
 0x36b   :  { %8577 = vst [vmem:[#allocation32_spill] sm:$0xff] %v7866_v2  ;;  %v7868_v35 = vpop.f32.mrb[63].mxu0 }
 0x36c   :  { %8578 = vst [vmem:[#allocation33_spill] sm:$0xff] %v7868_v35 }
 0x373   :  { %v2577_v36 = vpop.permute.xlu0 %2576 }
 0x374   :  { %v2579_v8 = vmul.f32 %v6168_v7, %v2577_v36 }
 0x376   :  { %2581 = vrot.lane.b32.xlu1 %v2579_v8, %s6624_s3 }
 0x3e8   :  { %v2582_v60 = vpop.permute.xlu1 %2581 }
 0x3e9   :  { %v2584_v13 = vadd.f32 %v2582_v60, %v2574_v11  ;;  %v8579_v60 = vmov 0  }
 0x3eb   :  { %6169 = vtanh.f32 %v2584_v13 }
 0x3ec   :  { %6171 = vpow2.f32 %v5683_v12 }
 0x3f5   :  { %v6170_v14 = vpop.eup %6169 }
 0x3f6   :  { %2587 = vrot.lane.b32.xlu0 %v6170_v14, %s6624_s3  ;;  %v6172_v21 = vpop.eup %6171 }
 0x3f7   :  { %v2568_v0 = vadd.f32 1.0, %v6172_v21 }
 0x3f9   :  { %6173 = vrcp.f32 %v2568_v0 }
 0x403   :  { %v6174_v2 = vpop.eup %6173 }
 0x468   :  { %v2588_v35 = vpop.permute.xlu0 %2587 }
 0x469   :  { %v2590_v16 = vmul.f32 %v6174_v2, %v2588_v35  ;;  %v2339_v2 = vadd.f32 %v7738_v10, %v7744_v17 }
 0x46b   :  { %v2594_v36 = vpack.c.bf16 %v2590_v16, %v2590_v16 }
 0x46d   :  { %5684 = vmatmul.mubr.msk.bf16.vlgmr.msra.gmra.mrb[4].mxu1 %vm2514_vm0, %v2594_v36 }
 0x46e   :  { %2679 = vmatpush1.bf16.msra.mxu1 %v7311_v62  ;;  %2710 = vmatprep.mubr.bf16.mxu1 %v8579_v60 }
 0x46f   :  { %2680 = vmatprep.subr.bf16.mxu1 %v7317_v63 }
 0x472   :  { %2681 = vmatpush1.bf16.msra.mxu1 %v7327_v3 }
 0x473   :  { %2682 = vmatprep.subr.bf16.mxu1 %v7333_v4 }
 0x476   :  { %2683 = vmatpush1.bf16.msra.mxu1 %v7349_v5 }
 0x477   :  { %2684 = vmatprep.subr.bf16.mxu1 %v7354_v6 }
 0x47a   :  { %2685 = vmatpush1.bf16.msra.mxu1 %v7365_v9 }
 0x47b   :  { %2758 = vmatprep.subr.bf16.mxu1 %v7300_v61 }
 0x540   :  { %v2632_v35 = vpop.f32.mrb[4].mxu1 }
 0x541   :  { %v2639_v7 = vadd.f32 %v2632_v35, %v2338_v18  ;;  %v2634_v8 = vpop.f32.mrb[5].mxu1 }
 0x542   :  { %v2640_v11 = vadd.f32 %v2634_v8, %v2339_v2  ;;  %v2636_v14 = vpop.f32.mrb[6].mxu1 }
 0x543   :  { %v2637_v16 = vpop.f32.mrb[7].mxu1  ;;  %v5685_v12 = vmul.f32 -1.442695, %v2639_v7 }
 0x544   :  { %6175 = vtanh.f32 %v2640_v11  ;;  %v5686_v8 = vmul.f32 -1.442695, %v2640_v11 }
 0x545   :  { %6177 = vpow2.f32 %v5685_v12 }
 0x54e   :  { %v6176_v0 = vpop.eup %6175 }
 0x54f   :  { %2656 = vrot.lane.b32.xlu1 %v6176_v0, %s6624_s3  ;;  %v6178_v21 = vpop.eup %6177 }
 0x550   :  { %v2647_v36 = vadd.f32 1.0, %v6178_v21 }
 0x552   :  { %6179 = vrcp.f32 %v2647_v36 }
 0x55c   :  { %v6180_v59 = vpop.eup %6179 }
 0x55d   :  { %v2654_v17 = vmul.f32 %v6180_v59, %v2584_v13 }
 0x5c1   :  { %v2657_v15 = vpop.permute.xlu1 %2656 }
 0x5c2   :  { %v2659_v58 = vmul.f32 %v6180_v59, %v2657_v15  ;;  %v2341_v59 = vadd.f32 %v7738_v10, %v7751_v44 }
 0x5c4   :  { %2661 = vrot.lane.b32.xlu0 %v2659_v58, %s6624_s3  ;;  %v2340_v58 = vadd.f32 %v7711_v1, %v7749_v24 }
 0x636   :  { %v2662_v18 = vpop.permute.xlu0 %2661 }
 0x637   :  { %v2664_v35 = vadd.f32 %v2662_v18, %v2654_v17 }
 0x639   :  { %6181 = vtanh.f32 %v2664_v35 }
 0x63a   :  { %6183 = vpow2.f32 %v5686_v8 }
 0x643   :  { %v6182_v2 = vpop.eup %6181 }
 0x644   :  { %2667 = vrot.lane.b32.xlu1 %v6182_v2, %s6624_s3  ;;  %v6184_v14 = vpop.eup %6183 }
 0x645   :  { %v2648_v7 = vadd.f32 1.0, %v6184_v14 }
 0x647   :  { %6185 = vrcp.f32 %v2648_v7 }
 0x651   :  { %v6186_v16 = vpop.eup %6185 }
 0x6b6   :  { %v2668_v0 = vpop.permute.xlu1 %2667 }
 0x6b7   :  { %v2670_v12 = vmul.f32 %v6186_v16, %v2668_v0 }
 0x6b9   :  { %v2674_v21 = vpack.c.bf16 %v2670_v12, %v2670_v12 }
 0x6bb   :  { %5687 = vmatmul.mubr.msk.bf16.vlgmr.msra.gmra.mrb[8].mxu1 %vm2514_vm0, %v2674_v21 }
 0x6bc   :  { %2759 = vmatpush1.bf16.msra.mxu1 %v7311_v62  ;;  %2790 = vmatprep.mubr.bf16.mxu1 %v8579_v60 }
 0x6bd   :  { %2760 = vmatprep.subr.bf16.mxu1 %v7317_v63 }
 0x6c0   :  { %2761 = vmatpush1.bf16.msra.mxu1 %v7327_v3 }
 0x6c1   :  { %2762 = vmatprep.subr.bf16.mxu1 %v7333_v4 }
 0x6c4   :  { %2763 = vmatpush1.bf16.msra.mxu1 %v7349_v5 }
 0x6c5   :  { %2764 = vmatprep.subr.bf16.mxu1 %v7354_v6 }
 0x6c8   :  { %2765 = vmatpush1.bf16.msra.mxu1 %v7365_v9 }
 0x6c9   :  { %2838 = vmatprep.subr.bf16.mxu1 %v7300_v61 }
 0x78e   :  { %v2712_v13 = vpop.f32.mrb[8].mxu1 }
 0x78f   :  { %v2719_v11 = vadd.f32 %v2712_v13, %v2340_v58  ;;  %v2714_v36 = vpop.f32.mrb[9].mxu1 }
 0x790   :  { %v2720_v15 = vadd.f32 %v2714_v36, %v2341_v59  ;;  %v2716_v17 = vpop.f32.mrb[10].mxu1 }
 0x791   :  { %v2717_v18 = vpop.f32.mrb[11].mxu1  ;;  %v5688_v8 = vmul.f32 -1.442695, %v2719_v11 }
 0x792   :  { %6187 = vtanh.f32 %v2720_v15  ;;  %v5689_v58 = vmul.f32 -1.442695, %v2720_v15 }
 0x793   :  { %6189 = vpow2.f32 %v5688_v8 }
 0x79c   :  { %v6188_v2 = vpop.eup %6187 }
 0x79d   :  { %2736 = vrot.lane.b32.xlu0 %v6188_v2, %s6624_s3  ;;  %v6190_v14 = vpop.eup %6189 }
 0x79e   :  { %v2727_v61 = vadd.f32 1.0, %v6190_v14 }
 0x7a0   :  { %6191 = vrcp.f32 %v2727_v61 }
 0x7aa   :  { %v6192_v7 = vpop.eup %6191 }
 0x7ab   :  { %v2734_v44 = vmul.f32 %v6192_v7, %v2664_v35  ;;  %v7919_v35 = vld [vmem:[%s8546_s4 + $0x4] ss:$8 sps:$4 sm:$0xff]  }
 0x80f   :  { %v2737_v24 = vpop.permute.xlu0 %2736 }
 0x810   :  { %v2739_v16 = vmul.f32 %v6192_v7, %v2737_v24 }
 0x812   :  { %2741 = vrot.lane.b32.xlu1 %v2739_v16, %s6624_s3 }
 0x884   :  { %v2742_v0 = vpop.permute.xlu1 %2741 }
 0x885   :  { %v2744_v12 = vadd.f32 %v2742_v0, %v2734_v44 }
 0x887   :  { %6193 = vtanh.f32 %v2744_v12 }
 0x888   :  { %6195 = vpow2.f32 %v5689_v58 }
 0x891   :  { %v6194_v21 = vpop.eup %6193 }
 0x892   :  { %2747 = vrot.lane.b32.xlu0 %v6194_v21, %s6624_s3  ;;  %v6196_v59 = vpop.eup %6195 }
 0x893   :  { %v2728_v13 = vadd.f32 1.0, %v6196_v59 }
 0x895   :  { %6197 = vrcp.f32 %v2728_v13 }
 0x89f   :  { %v6198_v11 = vpop.eup %6197 }
 0x904   :  { %v2748_v36 = vpop.permute.xlu0 %2747 }
 0x905   :  { %v2750_v17 = vmul.f32 %v6198_v11, %v2748_v36 }
 0x907   :  { %v2754_v18 = vpack.c.bf16 %v2750_v17, %v2750_v17 }
 0x909   :  { %5690 = vmatmul.mubr.msk.bf16.vlgmr.msra.gmra.mrb[12].mxu1 %vm2514_vm0, %v2754_v18  ;;  %v7940_v18 = vld [vmem:[%s8546_s4 + $0x14] ss:$8 sps:$4 sm:$0xff]  }
 0x90a   :  { %2839 = vmatpush1.bf16.msra.mxu1 %v7311_v62  ;;  %2870 = vmatprep.mubr.bf16.mxu1 %v8579_v60  ;;  %v2342_v62 = vadd.f32 %v7711_v1, %v7753_v19 }
 0x90b   :  { %2840 = vmatprep.subr.bf16.mxu1 %v7317_v63  ;;  %v2343_v63 = vadd.f32 %v7738_v10, %v7755_v20 }
 0x90e   :  { %2841 = vmatpush1.bf16.msra.mxu1 %v7327_v3 }
 0x90f   :  { %2842 = vmatprep.subr.bf16.mxu1 %v7333_v4 }
 0x912   :  { %2843 = vmatpush1.bf16.msra.mxu1 %v7349_v5 }
 0x913   :  { %2844 = vmatprep.subr.bf16.mxu1 %v7354_v6 }
 0x916   :  { %2845 = vmatpush1.bf16.msra.mxu1 %v7365_v9 }
 0x917   :  { %2918 = vmatprep.subr.bf16.mxu1 %v7919_v35 }
 0x9dc   :  { %v2792_v3 = vpop.f32.mrb[12].mxu1 }
 0x9dd   :  { %v2799_v4 = vadd.f32 %v2792_v3, %v2342_v62  ;;  %v2794_v5 = vpop.f32.mrb[13].mxu1  ;;  %v7946_v62 = vld [vmem:[%s8546_s4 + $0x10] ss:$8 sps:$4 sm:$0xff]   ;;  %v7958_v3 = vld [vmem:[%s8546_s4 + $0x20] ss:$8 sps:$4 sm:$0xff]  }
 0x9de   :  { %v2800_v15 = vadd.f32 %v2794_v5, %v2343_v63  ;;  %v2796_v6 = vpop.f32.mrb[14].mxu1  ;;  %v7952_v63 = vld [vmem:[%s8546_s4 + $0x24] ss:$8 sps:$4 sm:$0xff]   ;;  %v7970_v5 = vld [vmem:[%s8546_s4 + $0x30] ss:$8 sps:$4 sm:$0xff]  }
 0x9df   :  { %v2797_v2 = vpop.f32.mrb[15].mxu1  ;;  %v5691_v8 = vmul.f32 -1.442695, %v2799_v4  ;;  %v7964_v4 = vld [vmem:[%s8546_s4 + $0x34] ss:$8 sps:$4 sm:$0xff]   ;;  %v2345_v6 = vadd.f32 %v7738_v10, %v7760_v23 }
 0x9e0   :  { %6199 = vtanh.f32 %v2800_v15  ;;  %v5692_v21 = vmul.f32 -1.442695, %v2800_v15  ;;  %v2344_v15 = vadd.f32 %v7711_v1, %v7757_v22 }
 0x9e1   :  { %6201 = vpow2.f32 %v5691_v8 }
 0x9ea   :  { %v6200_v9 = vpop.eup %6199 }
 0x9eb   :  { %2816 = vrot.lane.b32.xlu1 %v6200_v9, %s6624_s3  ;;  %v6202_v14 = vpop.eup %6201 }
 0x9ec   :  { %v2807_v61 = vadd.f32 1.0, %v6202_v14 }
 0x9ee   :  { %6203 = vrcp.f32 %v2807_v61 }
 0x9f8   :  { %v6204_v7 = vpop.eup %6203 }
 0x9f9   :  { %v2814_v20 = vmul.f32 %v6204_v7, %v2744_v12  ;;  %v7933_v12 = vld [vmem:[%s8546_s4] ss:$8 sps:$4 sm:$0xff]  }
 0xa5d   :  { %v2817_v19 = vpop.permute.xlu1 %2816 }
 0xa5e   :  { %v2819_v24 = vmul.f32 %v6204_v7, %v2817_v19 }
 0xa60   :  { %2821 = vrot.lane.b32.xlu0 %v2819_v24, %s6624_s3 }
 0xad2   :  { %v2822_v16 = vpop.permute.xlu0 %2821 }
 0xad3   :  { %v2824_v44 = vadd.f32 %v2822_v16, %v2814_v20 }
 0xad5   :  { %6205 = vtanh.f32 %v2824_v44 }
 0xad6   :  { %6207 = vpow2.f32 %v5692_v21 }
 0xadf   :  { %v6206_v0 = vpop.eup %6205 }
 0xae0   :  { %2827 = vrot.lane.b32.xlu1 %v6206_v0, %s6624_s3  ;;  %v6208_v58 = vpop.eup %6207 }
 0xae1   :  { %v2808_v59 = vadd.f32 1.0, %v6208_v58 }
 0xae3   :  { %6209 = vrcp.f32 %v2808_v59 }
 0xaed   :  { %v6210_v13 = vpop.eup %6209 }
 0xb52   :  { %v2828_v11 = vpop.permute.xlu1 %2827 }
 0xb53   :  { %v2830_v36 = vmul.f32 %v6210_v13, %v2828_v11 }
 0xb55   :  { %v2834_v17 = vpack.c.bf16 %v2830_v36, %v2830_v36 }
 0xb57   :  { %5693 = vmatmul.mubr.msk.bf16.vlgmr.msra.gmra.mrb[16].mxu1 %vm2514_vm0, %v2834_v17 }
 0xb58   :  { %2919 = vmatpush1.bf16.msra.mxu1 %v7933_v12  ;;  %2950 = vmatprep.mubr.bf16.mxu1 %v8579_v60 }
 0xb59   :  { %2920 = vmatprep.subr.bf16.mxu1 %v7940_v18 }
 0xb5c   :  { %2921 = vmatpush1.bf16.msra.mxu1 %v7946_v62 }
 0xb5d   :  { %2922 = vmatprep.subr.bf16.mxu1 %v7952_v63 }
 0xb60   :  { %2923 = vmatpush1.bf16.msra.mxu1 %v7958_v3 }
 0xb61   :  { %2924 = vmatprep.subr.bf16.mxu1 %v7964_v4 }
 0xb64   :  { %2925 = vmatpush1.bf16.msra.mxu1 %v7970_v5 }
 0xb65   :  { %2998 = vmatprep.subr.bf16.mxu1 %v7919_v35 }
 0xc2a   :  { %v2872_v2 = vpop.f32.mrb[16].mxu1 }
 0xc2b   :  { %v2879_v9 = vadd.f32 %v2872_v2, %v2344_v15  ;;  %v2874_v8 = vpop.f32.mrb[17].mxu1 }
 0xc2c   :  { %v2880_v14 = vadd.f32 %v2874_v8, %v2345_v6  ;;  %v2876_v61 = vpop.f32.mrb[18].mxu1  ;;  %v2347_v8 = vadd.f32 %v7738_v10, %v7764_v26 }
 0xc2d   :  { %v2877_v7 = vpop.f32.mrb[19].mxu1  ;;  %v5694_v24 = vmul.f32 -1.442695, %v2879_v9 }
 0xc2e   :  { %6211 = vtanh.f32 %v2880_v14  ;;  %v5695_v11 = vmul.f32 -1.442695, %v2880_v14 }
 0xc2f   :  { %6213 = vpow2.f32 %v5694_v24 }
 0xc38   :  { %v6212_v19 = vpop.eup %6211 }
 0xc39   :  { %2896 = vrot.lane.b32.xlu0 %v6212_v19, %s6624_s3  ;;  %v6214_v20 = vpop.eup %6213 }
 0xc3a   :  { %v2887_v16 = vadd.f32 1.0, %v6214_v20 }
 0xc3c   :  { %6215 = vrcp.f32 %v2887_v16 }
 0xc46   :  { %v6216_v0 = vpop.eup %6215 }
 0xc47   :  { %v2894_v23 = vmul.f32 %v6216_v0, %v2824_v44  ;;  %v2346_v44 = vadd.f32 %v7711_v1, %v7762_v25 }
 0xcab   :  { %v2897_v22 = vpop.permute.xlu0 %2896 }
 0xcac   :  { %v2899_v21 = vmul.f32 %v6216_v0, %v2897_v22 }
 0xcae   :  { %2901 = vrot.lane.b32.xlu1 %v2899_v21, %s6624_s3 }
 0xd20   :  { %v2902_v58 = vpop.permute.xlu1 %2901 }
 0xd21   :  { %v2904_v59 = vadd.f32 %v2902_v58, %v2894_v23 }
 0xd23   :  { %6217 = vtanh.f32 %v2904_v59 }
 0xd24   :  { %6219 = vpow2.f32 %v5695_v11 }
 0xd2d   :  { %v6218_v13 = vpop.eup %6217 }
 0xd2e   :  { %2907 = vrot.lane.b32.xlu0 %v6218_v13, %s6624_s3  ;;  %v6220_v36 = vpop.eup %6219 }
 0xd2f   :  { %v2888_v17 = vadd.f32 1.0, %v6220_v36 }
 0xd31   :  { %6221 = vrcp.f32 %v2888_v17 }
 0xd3b   :  { %v6222_v15 = vpop.eup %6221 }
 0xda0   :  { %v2908_v6 = vpop.permute.xlu0 %2907 }
 0xda1   :  { %v2910_v2 = vmul.f32 %v6222_v15, %v2908_v6 }
 0xda3   :  { %v2914_v9 = vpack.c.bf16 %v2910_v2, %v2910_v2 }
 0xda5   :  { %5696 = vmatmul.mubr.msk.bf16.vlgmr.msra.gmra.mrb[20].mxu1 %vm2514_vm0, %v2914_v9 }
 0xda6   :  { %2999 = vmatpush1.bf16.msra.mxu1 %v7933_v12  ;;  %3030 = vmatprep.mubr.bf16.mxu1 %v8579_v60 }
 0xda7   :  { %3000 = vmatprep.subr.bf16.mxu1 %v7940_v18 }
 0xdaa   :  { %3001 = vmatpush1.bf16.msra.mxu1 %v7946_v62 }
 0xdab   :  { %3002 = vmatprep.subr.bf16.mxu1 %v7952_v63 }
 0xdae   :  { %3003 = vmatpush1.bf16.msra.mxu1 %v7958_v3 }
 0xdaf   :  { %3004 = vmatprep.subr.bf16.mxu1 %v7964_v4 }
 0xdb2   :  { %3005 = vmatpush1.bf16.msra.mxu1 %v7970_v5 }
 0xdb3   :  { %3078 = vmatprep.subr.bf16.mxu1 %v7919_v35 }
 0xe78   :  { %v2952_v14 = vpop.f32.mrb[20].mxu1 }
 0xe79   :  { %v2959_v61 = vadd.f32 %v2952_v14, %v2346_v44  ;;  %v2954_v7 = vpop.f32.mrb[21].mxu1  ;;  %v2349_v14 = vadd.f32 %v7738_v10, %v7768_v28 }
 0xe7a   :  { %v2960_v19 = vadd.f32 %v2954_v7, %v2347_v8  ;;  %v2956_v24 = vpop.f32.mrb[22].mxu1 }
 0xe7b   :  { %v2957_v20 = vpop.f32.mrb[23].mxu1  ;;  %v5697_v0 = vmul.f32 -1.442695, %v2959_v61 }
 0xe7c   :  { %6223 = vtanh.f32 %v2960_v19  ;;  %v5698_v17 = vmul.f32 -1.442695, %v2960_v19 }
 0xe7d   :  { %6225 = vpow2.f32 %v5697_v0 }
 0xe86   :  { %v6224_v16 = vpop.eup %6223 }
 0xe87   :  { %2976 = vrot.lane.b32.xlu1 %v6224_v16, %s6624_s3  ;;  %v6226_v22 = vpop.eup %6225 }
 0xe88   :  { %v2967_v21 = vadd.f32 1.0, %v6226_v22 }
 0xe8a   :  { %6227 = vrcp.f32 %v2967_v21 }
 0xe94   :  { %v6228_v23 = vpop.eup %6227 }
 0xe95   :  { %v2974_v26 = vmul.f32 %v6228_v23, %v2904_v59  ;;  %v2348_v59 = vadd.f32 %v7711_v1, %v7766_v27 }
 0xef9   :  { %v2977_v25 = vpop.permute.xlu1 %2976 }
 0xefa   :  { %v2979_v58 = vmul.f32 %v6228_v23, %v2977_v25 }
 0xefc   :  { %2981 = vrot.lane.b32.xlu0 %v2979_v58, %s6624_s3 }
 0xf6e   :  { %v2982_v13 = vpop.permute.xlu0 %2981 }
 0xf6f   :  { %v2984_v11 = vadd.f32 %v2982_v13, %v2974_v26 }
 0xf71   :  { %6229 = vtanh.f32 %v2984_v11 }
 0xf72   :  { %6231 = vpow2.f32 %v5698_v17 }
 0xf7b   :  { %v6230_v36 = vpop.eup %6229 }
 0xf7c   :  { %2987 = vrot.lane.b32.xlu1 %v6230_v36, %s6624_s3  ;;  %v6232_v15 = vpop.eup %6231 }
 0xf7d   :  { %v2968_v6 = vadd.f32 1.0, %v6232_v15 }
 0xf7f   :  { %6233 = vrcp.f32 %v2968_v6 }
 0xf89   :  { %v6234_v2 = vpop.eup %6233 }
 0xfee   :  { %v2988_v9 = vpop.permute.xlu1 %2987 }
 0xfef   :  { %v2990_v44 = vmul.f32 %v6234_v2, %v2988_v9 }
 0xff1   :  { %v2994_v8 = vpack.c.bf16 %v2990_v44, %v2990_v44 }
 0xff3   :  { %5699 = vmatmul.mubr.msk.bf16.vlgmr.msra.gmra.mrb[24].mxu1 %vm2514_vm0, %v2994_v8 }
 0xff4   :  { %3079 = vmatpush1.bf16.msra.mxu1 %v7933_v12  ;;  %3110 = vmatprep.mubr.bf16.mxu1 %v8579_v60 }
 0xff5   :  { %3080 = vmatprep.subr.bf16.mxu1 %v7940_v18 }
 0xff8   :  { %3081 = vmatpush1.bf16.msra.mxu1 %v7946_v62 }
 0xff9   :  { %3082 = vmatprep.subr.bf16.mxu1 %v7952_v63 }
 0xffc   :  { %3083 = vmatpush1.bf16.msra.mxu1 %v7958_v3 }
 0xffd   :  { %3084 = vmatprep.subr.bf16.mxu1 %v7964_v4 }
0x1000   :  { %3085 = vmatpush1.bf16.msra.mxu1 %v7970_v5 }
0x1001   :  { %3158 = vmatprep.subr.bf16.mxu1 %v7919_v35 }
0x10c6   :  { %v3032_v61 = vpop.f32.mrb[24].mxu1 }
0x10c7   :  { %v3039_v7 = vadd.f32 %v3032_v61, %v2348_v59  ;;  %v3034_v19 = vpop.f32.mrb[25].mxu1  ;;  %v2351_v59 = vadd.f32 %v7738_v10, %v7772_v30 }
0x10c8   :  { %v3040_v24 = vadd.f32 %v3034_v19, %v2349_v14  ;;  %v3036_v20 = vpop.f32.mrb[26].mxu1 }
0x10c9   :  { %v3037_v16 = vpop.f32.mrb[27].mxu1  ;;  %v5700_v22 = vmul.f32 -1.442695, %v3039_v7 }
0x10ca   :  { %6235 = vtanh.f32 %v3040_v24  ;;  %v5701_v17 = vmul.f32 -1.442695, %v3040_v24 }
0x10cb   :  { %6237 = vpow2.f32 %v5700_v22 }
0x10d4   :  { %v6236_v0 = vpop.eup %6235 }
0x10d5   :  { %3056 = vrot.lane.b32.xlu0 %v6236_v0, %s6624_s3  ;;  %v6238_v21 = vpop.eup %6237 }
0x10d6   :  { %v3047_v23 = vadd.f32 1.0, %v6238_v21 }
0x10d8   :  { %6239 = vrcp.f32 %v3047_v23 }
0x10e2   :  { %v6240_v25 = vpop.eup %6239 }
0x10e3   :  { %v3054_v28 = vmul.f32 %v6240_v25, %v2984_v11  ;;  %v2350_v11 = vadd.f32 %v7711_v1, %v7770_v29 }
0x1147   :  { %v3057_v27 = vpop.permute.xlu0 %3056 }
0x1148   :  { %v3059_v58 = vmul.f32 %v6240_v25, %v3057_v27 }
0x114a   :  { %3061 = vrot.lane.b32.xlu1 %v3059_v58, %s6624_s3 }
0x11bc   :  { %v3062_v26 = vpop.permute.xlu1 %3061 }
0x11bd   :  { %v3064_v13 = vadd.f32 %v3062_v26, %v3054_v28 }
0x11bf   :  { %6241 = vtanh.f32 %v3064_v13 }
0x11c0   :  { %6243 = vpow2.f32 %v5701_v17 }
0x11c9   :  { %v6242_v36 = vpop.eup %6241 }
0x11ca   :  { %3067 = vrot.lane.b32.xlu0 %v6242_v36, %s6624_s3  ;;  %v6244_v15 = vpop.eup %6243 }
0x11cb   :  { %v3048_v6 = vadd.f32 1.0, %v6244_v15 }
0x11cd   :  { %6245 = vrcp.f32 %v3048_v6 }
0x11d7   :  { %v6246_v2 = vpop.eup %6245 }
0x123c   :  { %v3068_v9 = vpop.permute.xlu0 %3067 }
0x123d   :  { %v3070_v44 = vmul.f32 %v6246_v2, %v3068_v9 }
0x123f   :  { %v3074_v8 = vpack.c.bf16 %v3070_v44, %v3070_v44  ;;  %v2353_v44 = vadd.f32 %v7738_v10, %v7776_v32 }
0x1241   :  { %5702 = vmatmul.mubr.msk.bf16.vlgmr.msra.gmra.mrb[28].mxu1 %vm2514_vm0, %v3074_v8 }
0x1242   :  { %3159 = vmatpush1.bf16.msra.mxu1 %v7933_v12  ;;  %3190 = vmatprep.mubr.bf16.mxu1 %v8579_v60 }
0x1243   :  { %3160 = vmatprep.subr.bf16.mxu1 %v7940_v18 }
0x1246   :  { %3161 = vmatpush1.bf16.msra.mxu1 %v7946_v62 }
0x1247   :  { %3162 = vmatprep.subr.bf16.mxu1 %v7952_v63 }
0x124a   :  { %3163 = vmatpush1.bf16.msra.mxu1 %v7958_v3 }
0x124b   :  { %3164 = vmatprep.subr.bf16.mxu1 %v7964_v4 }
0x124e   :  { %3165 = vmatpush1.bf16.msra.mxu1 %v7970_v5 }
0x124f   :  { %3238 = vmatprep.subr.bf16.mxu1 %v7919_v35 }
0x1314   :  { %v3112_v14 = vpop.f32.mrb[28].mxu1 }
0x1315   :  { %v3119_v61 = vadd.f32 %v3112_v14, %v2350_v11  ;;  %v3114_v7 = vpop.f32.mrb[29].mxu1 }
0x1316   :  { %v3120_v19 = vadd.f32 %v3114_v7, %v2351_v59  ;;  %v3116_v24 = vpop.f32.mrb[30].mxu1 }
0x1317   :  { %v3117_v20 = vpop.f32.mrb[31].mxu1  ;;  %v5703_v0 = vmul.f32 -1.442695, %v3119_v61 }
0x1318   :  { %6247 = vtanh.f32 %v3120_v19  ;;  %v5704_v26 = vmul.f32 -1.442695, %v3120_v19 }
0x1319   :  { %6249 = vpow2.f32 %v5703_v0 }
0x1322   :  { %v6248_v16 = vpop.eup %6247 }
0x1323   :  { %3136 = vrot.lane.b32.xlu1 %v6248_v16, %s6624_s3  ;;  %v6250_v22 = vpop.eup %6249 }
0x1324   :  { %v3127_v21 = vadd.f32 1.0, %v6250_v22 }
0x1326   :  { %6251 = vrcp.f32 %v3127_v21 }
0x1330   :  { %v6252_v23 = vpop.eup %6251 }
0x1331   :  { %v3134_v30 = vmul.f32 %v6252_v23, %v3064_v13  ;;  %v2352_v13 = vadd.f32 %v7711_v1, %v7774_v31 }
0x1395   :  { %v3137_v29 = vpop.permute.xlu1 %3136 }
0x1396   :  { %v3139_v25 = vmul.f32 %v6252_v23, %v3137_v29 }
0x1398   :  { %3141 = vrot.lane.b32.xlu0 %v3139_v25, %s6624_s3 }
0x140a   :  { %v3142_v27 = vpop.permute.xlu0 %3141 }
0x140b   :  { %v3144_v58 = vadd.f32 %v3142_v27, %v3134_v30 }
0x140d   :  { %6253 = vtanh.f32 %v3144_v58 }
0x140e   :  { %6255 = vpow2.f32 %v5704_v26 }
0x1417   :  { %v6254_v28 = vpop.eup %6253 }
0x1418   :  { %3147 = vrot.lane.b32.xlu1 %v6254_v28, %s6624_s3  ;;  %v6256_v36 = vpop.eup %6255 }
0x1419   :  { %v3128_v17 = vadd.f32 1.0, %v6256_v36 }
0x141b   :  { %6257 = vrcp.f32 %v3128_v17 }
0x1425   :  { %v6258_v15 = vpop.eup %6257 }
0x148a   :  { %v3148_v6 = vpop.permute.xlu1 %3147 }
0x148b   :  { %v3150_v2 = vmul.f32 %v6258_v15, %v3148_v6  ;;  %v2355_v15 = vadd.f32 %v7738_v10, %v7780_v34 }
0x148d   :  { %v3154_v9 = vpack.c.bf16 %v3150_v2, %v3150_v2 }
0x148f   :  { %5705 = vmatmul.mubr.msk.bf16.vlgmr.msra.gmra.mrb[32].mxu1 %vm2514_vm0, %v3154_v9 }
0x1490   :  { %3239 = vmatpush1.bf16.msra.mxu1 %v7933_v12  ;;  %3270 = vmatprep.mubr.bf16.mxu1 %v8579_v60 }
0x1491   :  { %3240 = vmatprep.subr.bf16.mxu1 %v7940_v18 }
0x1494   :  { %3241 = vmatpush1.bf16.msra.mxu1 %v7946_v62 }
0x1495   :  { %3242 = vmatprep.subr.bf16.mxu1 %v7952_v63 }
0x1498   :  { %3243 = vmatpush1.bf16.msra.mxu1 %v7958_v3 }
0x1499   :  { %3244 = vmatprep.subr.bf16.mxu1 %v7964_v4 }
0x149c   :  { %3245 = vmatpush1.bf16.msra.mxu1 %v7970_v5 }
0x149d   :  { %3318 = vmatprep.subr.bf16.mxu1 %v7919_v35 }
0x1562   :  { %v3192_v8 = vpop.f32.mrb[32].mxu1 }
0x1563   :  { %v3199_v11 = vadd.f32 %v3192_v8, %v2352_v13  ;;  %v3194_v59 = vpop.f32.mrb[33].mxu1 }
0x1564   :  { %v3200_v14 = vadd.f32 %v3194_v59, %v2353_v44  ;;  %v3196_v61 = vpop.f32.mrb[34].mxu1 }
0x1565   :  { %v3197_v7 = vpop.f32.mrb[35].mxu1  ;;  %v5706_v24 = vmul.f32 -1.442695, %v3199_v11 }
0x1566   :  { %6259 = vtanh.f32 %v3200_v14  ;;  %v5707_v25 = vmul.f32 -1.442695, %v3200_v14 }
0x1567   :  { %6261 = vpow2.f32 %v5706_v24 }
0x1570   :  { %v6260_v19 = vpop.eup %6259 }
0x1571   :  { %3216 = vrot.lane.b32.xlu0 %v6260_v19, %s6624_s3  ;;  %v6262_v20 = vpop.eup %6261 }
0x1572   :  { %v3207_v16 = vadd.f32 1.0, %v6262_v20 }
0x1574   :  { %6263 = vrcp.f32 %v3207_v16 }
0x157e   :  { %v6264_v0 = vpop.eup %6263 }
0x157f   :  { %v3214_v32 = vmul.f32 %v6264_v0, %v3144_v58  ;;  %v2354_v58 = vadd.f32 %v7711_v1, %v7778_v33 }
0x15e3   :  { %v3217_v31 = vpop.permute.xlu0 %3216 }
0x15e4   :  { %v3219_v22 = vmul.f32 %v6264_v0, %v3217_v31 }
0x15e6   :  { %3221 = vrot.lane.b32.xlu1 %v3219_v22, %s6624_s3 }
0x1658   :  { %v3222_v21 = vpop.permute.xlu1 %3221 }
0x1659   :  { %v3224_v23 = vadd.f32 %v3222_v21, %v3214_v32 }
0x165b   :  { %6265 = vtanh.f32 %v3224_v23 }
0x165c   :  { %6267 = vpow2.f32 %v5707_v25 }
0x1665   :  { %v6266_v29 = vpop.eup %6265 }
0x1666   :  { %3227 = vrot.lane.b32.xlu0 %v6266_v29, %s6624_s3  ;;  %v6268_v30 = vpop.eup %6267 }
0x1667   :  { %v3208_v27 = vadd.f32 1.0, %v6268_v30  ;;  %v2357_v30 = vadd.f32 %v7738_v10, %v7784_v38 }
0x1669   :  { %6269 = vrcp.f32 %v3208_v27 }
0x1673   :  { %v6270_v28 = vpop.eup %6269 }
0x16d8   :  { %v3228_v26 = vpop.permute.xlu0 %3227 }
0x16d9   :  { %v3230_v36 = vmul.f32 %v6270_v28, %v3228_v26 }
0x16db   :  { %v3234_v17 = vpack.c.bf16 %v3230_v36, %v3230_v36 }
0x16dd   :  { %5708 = vmatmul.mubr.msk.bf16.vlgmr.msra.gmra.mrb[36].mxu1 %vm2514_vm0, %v3234_v17 }
0x16de   :  { %3319 = vmatpush1.bf16.msra.mxu1 %v7933_v12  ;;  %3350 = vmatprep.mubr.bf16.mxu1 %v8579_v60 }
0x16df   :  { %3320 = vmatprep.subr.bf16.mxu1 %v7940_v18 }
0x16e2   :  { %3321 = vmatpush1.bf16.msra.mxu1 %v7946_v62 }
0x16e3   :  { %3322 = vmatprep.subr.bf16.mxu1 %v7952_v63 }
0x16e6   :  { %3323 = vmatpush1.bf16.msra.mxu1 %v7958_v3 }
0x16e7   :  { %3324 = vmatprep.subr.bf16.mxu1 %v7964_v4 }
0x16ea   :  { %3325 = vmatpush1.bf16.msra.mxu1 %v7970_v5 }
0x16eb   :  { %3398 = vmatprep.subr.bf16.mxu1 %v7919_v35 }
0x17b0   :  { %v3272_v6 = vpop.f32.mrb[36].mxu1 }
0x17b1   :  { %v3279_v2 = vadd.f32 %v3272_v6, %v2354_v58  ;;  %v3274_v9 = vpop.f32.mrb[37].mxu1 }
0x17b2   :  { %v3280_v13 = vadd.f32 %v3274_v9, %v2355_v15  ;;  %v3276_v44 = vpop.f32.mrb[38].mxu1 }
0x17b3   :  { %v3277_v8 = vpop.f32.mrb[39].mxu1  ;;  %v5709_v59 = vmul.f32 -1.442695, %v3279_v2 }
0x17b4   :  { %6271 = vtanh.f32 %v3280_v13  ;;  %v5710_v0 = vmul.f32 -1.442695, %v3280_v13 }
0x17b5   :  { %6273 = vpow2.f32 %v5709_v59 }
0x17be   :  { %v6272_v11 = vpop.eup %6271 }
0x17bf   :  { %3296 = vrot.lane.b32.xlu1 %v6272_v11, %s6624_s3  ;;  %v6274_v14 = vpop.eup %6273 }
0x17c0   :  { %v3287_v61 = vadd.f32 1.0, %v6274_v14 }
0x17c2   :  { %6275 = vrcp.f32 %v3287_v61 }
0x17cc   :  { %v6276_v7 = vpop.eup %6275 }
0x17cd   :  { %v3294_v34 = vmul.f32 %v6276_v7, %v3224_v23  ;;  %v2356_v23 = vadd.f32 %v7711_v1, %v7782_v37 }
0x1831   :  { %v3297_v33 = vpop.permute.xlu1 %3296 }
0x1832   :  { %v3299_v19 = vmul.f32 %v6276_v7, %v3297_v33 }
0x1834   :  { %3301 = vrot.lane.b32.xlu0 %v3299_v19, %s6624_s3 }
0x18a6   :  { %v3302_v24 = vpop.permute.xlu0 %3301 }
0x18a7   :  { %v3304_v20 = vadd.f32 %v3302_v24, %v3294_v34 }
0x18a9   :  { %6277 = vtanh.f32 %v3304_v20 }
0x18aa   :  { %6279 = vpow2.f32 %v5710_v0 }
0x18b3   :  { %v6278_v16 = vpop.eup %6277 }
0x18b4   :  { %3307 = vrot.lane.b32.xlu1 %v6278_v16, %s6624_s3  ;;  %v6280_v31 = vpop.eup %6279  ;;  %v2359_v16 = vadd.f32 %v7738_v10, %v7788_v41 }
0x18b5   :  { %v3288_v22 = vadd.f32 1.0, %v6280_v31 }
0x18b7   :  { %6281 = vrcp.f32 %v3288_v22 }
0x18c1   :  { %v6282_v32 = vpop.eup %6281 }
0x1926   :  { %v3308_v21 = vpop.permute.xlu1 %3307 }
0x1927   :  { %v3310_v29 = vmul.f32 %v6282_v32, %v3308_v21 }
0x1929   :  { %v3314_v25 = vpack.c.bf16 %v3310_v29, %v3310_v29 }
0x192b   :  { %5711 = vmatmul.mubr.msk.bf16.vlgmr.msra.gmra.mrb[40].mxu1 %vm2514_vm0, %v3314_v25 }
0x192c   :  { %3399 = vmatpush1.bf16.msra.mxu1 %v7933_v12  ;;  %3430 = vmatprep.mubr.bf16.mxu1 %v8579_v60 }
0x192d   :  { %3400 = vmatprep.subr.bf16.mxu1 %v7940_v18 }
0x1930   :  { %3401 = vmatpush1.bf16.msra.mxu1 %v7946_v62 }
0x1931   :  { %3402 = vmatprep.subr.bf16.mxu1 %v7952_v63 }
0x1934   :  { %3403 = vmatpush1.bf16.msra.mxu1 %v7958_v3 }
0x1935   :  { %3404 = vmatprep.subr.bf16.mxu1 %v7964_v4 }
0x1938   :  { %3405 = vmatpush1.bf16.msra.mxu1 %v7970_v5 }
0x1939   :  { %3478 = vmatprep.subr.bf16.mxu1 %v7919_v35 }
0x19fe   :  { %v3352_v27 = vpop.f32.mrb[40].mxu1 }
0x19ff   :  { %v3359_v28 = vadd.f32 %v3352_v27, %v2356_v23  ;;  %v3354_v26 = vpop.f32.mrb[41].mxu1 }
0x1a00   :  { %v3360_v36 = vadd.f32 %v3354_v26, %v2357_v30  ;;  %v3356_v17 = vpop.f32.mrb[42].mxu1 }
0x1a01   :  { %v3357_v58 = vpop.f32.mrb[43].mxu1  ;;  %v5712_v6 = vmul.f32 -1.442695, %v3359_v28 }
0x1a02   :  { %6283 = vtanh.f32 %v3360_v36  ;;  %v5713_v14 = vmul.f32 -1.442695, %v3360_v36 }
0x1a03   :  { %6285 = vpow2.f32 %v5712_v6 }
0x1a0c   :  { %v6284_v15 = vpop.eup %6283 }
0x1a0d   :  { %3376 = vrot.lane.b32.xlu0 %v6284_v15, %s6624_s3  ;;  %v6286_v2 = vpop.eup %6285 }
0x1a0e   :  { %v3367_v9 = vadd.f32 1.0, %v6286_v2 }
0x1a10   :  { %6287 = vrcp.f32 %v3367_v9 }
0x1a1a   :  { %v6288_v13 = vpop.eup %6287 }
0x1a1b   :  { %v3374_v38 = vmul.f32 %v6288_v13, %v3304_v20  ;;  %v2358_v20 = vadd.f32 %v7711_v1, %v7786_v40 }
0x1a7f   :  { %v3377_v37 = vpop.permute.xlu0 %3376 }
0x1a80   :  { %v3379_v44 = vmul.f32 %v6288_v13, %v3377_v37 }
0x1a82   :  { %3381 = vrot.lane.b32.xlu1 %v3379_v44, %s6624_s3 }
0x1af4   :  { %v3382_v8 = vpop.permute.xlu1 %3381 }
0x1af5   :  { %v3384_v11 = vadd.f32 %v3382_v8, %v3374_v38  ;;  %v2360_v38 = vadd.f32 %v7711_v1, %v7790_v42  ;;  %v2361_v8 = vadd.f32 %v7738_v10, %v7792_v43 }
0x1af7   :  { %6289 = vtanh.f32 %v3384_v11 }
0x1af8   :  { %6291 = vpow2.f32 %v5713_v14 }
0x1b01   :  { %v6290_v59 = vpop.eup %6289 }
0x1b02   :  { %3387 = vrot.lane.b32.xlu0 %v6290_v59, %s6624_s3  ;;  %v6292_v61 = vpop.eup %6291 }
0x1b03   :  { %v3368_v7 = vadd.f32 1.0, %v6292_v61 }
0x1b05   :  { %6293 = vrcp.f32 %v3368_v7 }
0x1b0f   :  { %v6294_v33 = vpop.eup %6293 }
0x1b74   :  { %v3388_v19 = vpop.permute.xlu0 %3387 }
0x1b75   :  { %v3390_v34 = vmul.f32 %v6294_v33, %v3388_v19 }
0x1b77   :  { %v3394_v24 = vpack.c.bf16 %v3390_v34, %v3390_v34 }
0x1b79   :  { %5714 = vmatmul.mubr.msk.bf16.vlgmr.msra.gmra.mrb[44].mxu1 %vm2514_vm0, %v3394_v24 }
0x1b7a   :  { %3479 = vmatpush1.bf16.msra.mxu1 %v7933_v12  ;;  %3510 = vmatprep.mubr.bf16.mxu1 %v8579_v60 }
0x1b7b   :  { %3480 = vmatprep.subr.bf16.mxu1 %v7940_v18 }
0x1b7e   :  { %3481 = vmatpush1.bf16.msra.mxu1 %v7946_v62 }
0x1b7f   :  { %3482 = vmatprep.subr.bf16.mxu1 %v7952_v63 }
0x1b82   :  { %3483 = vmatpush1.bf16.msra.mxu1 %v7958_v3 }
0x1b83   :  { %3484 = vmatprep.subr.bf16.mxu1 %v7964_v4 }
0x1b86   :  { %3485 = vmatpush1.bf16.msra.mxu1 %v7970_v5 }
0x1b87   :  { %3558 = vmatprep.subr.bf16.mxu1 %v7919_v35 }
0x1c4c   :  { %v3432_v0 = vpop.f32.mrb[44].mxu1 }
0x1c4d   :  { %v3439_v31 = vadd.f32 %v3432_v0, %v2358_v20  ;;  %v3434_v22 = vpop.f32.mrb[45].mxu1 }
0x1c4e   :  { %v3440_v32 = vadd.f32 %v3434_v22, %v2359_v16  ;;  %v3436_v21 = vpop.f32.mrb[46].mxu1 }
0x1c4f   :  { %v3437_v29 = vpop.f32.mrb[47].mxu1  ;;  %v5715_v23 = vmul.f32 -1.442695, %v3439_v31 }
0x1c50   :  { %6295 = vtanh.f32 %v3440_v32  ;;  %v5716_v15 = vmul.f32 -1.442695, %v3440_v32 }
0x1c51   :  { %6297 = vpow2.f32 %v5715_v23 }
0x1c5a   :  { %v6296_v25 = vpop.eup %6295 }
0x1c5b   :  { %3456 = vrot.lane.b32.xlu1 %v6296_v25, %s6624_s3  ;;  %v6298_v30 = vpop.eup %6297 }
0x1c5c   :  { %v3447_v27 = vadd.f32 1.0, %v6298_v30 }
0x1c5e   :  { %6299 = vrcp.f32 %v3447_v27 }
0x1c68   :  { %v6300_v28 = vpop.eup %6299 }
0x1c69   :  { %v3454_v41 = vmul.f32 %v6300_v28, %v3384_v11 }
0x1ccd   :  { %v3457_v40 = vpop.permute.xlu1 %3456 }
0x1cce   :  { %v3459_v26 = vmul.f32 %v6300_v28, %v3457_v40  ;;  %v2362_v40 = vadd.f32 %v7711_v1, %v7794_v45 }
0x1cd0   :  { %3461 = vrot.lane.b32.xlu0 %v3459_v26, %s6624_s3  ;;  %v2363_v26 = vadd.f32 %v7738_v10, %v7796_v46 }
0x1d42   :  { %v3462_v36 = vpop.permute.xlu0 %3461 }
0x1d43   :  { %v3464_v17 = vadd.f32 %v3462_v36, %v3454_v41 }
0x1d45   :  { %6301 = vtanh.f32 %v3464_v17 }
0x1d46   :  { %6303 = vpow2.f32 %v5716_v15 }
0x1d4f   :  { %v6302_v58 = vpop.eup %6301 }
0x1d50   :  { %3467 = vrot.lane.b32.xlu1 %v6302_v58, %s6624_s3  ;;  %v6304_v6 = vpop.eup %6303 }
0x1d51   :  { %v3448_v2 = vadd.f32 1.0, %v6304_v6 }
0x1d53   :  { %6305 = vrcp.f32 %v3448_v2 }
0x1d5d   :  { %v6306_v9 = vpop.eup %6305 }
0x1dc2   :  { %v3468_v13 = vpop.permute.xlu1 %3467 }
0x1dc3   :  { %v3470_v37 = vmul.f32 %v6306_v9, %v3468_v13 }
0x1dc5   :  { %v3474_v44 = vpack.c.bf16 %v3470_v37, %v3470_v37 }
0x1dc7   :  { %5717 = vmatmul.mubr.msk.bf16.vlgmr.msra.gmra.mrb[48].mxu1 %vm2514_vm0, %v3474_v44 }
0x1dc8   :  { %3559 = vmatpush1.bf16.msra.mxu1 %v7933_v12  ;;  %3590 = vmatprep.mubr.bf16.mxu1 %v8579_v60 }
0x1dc9   :  { %3560 = vmatprep.subr.bf16.mxu1 %v7940_v18 }
0x1dcc   :  { %3561 = vmatpush1.bf16.msra.mxu1 %v7946_v62 }
0x1dcd   :  { %3562 = vmatprep.subr.bf16.mxu1 %v7952_v63 }
0x1dd0   :  { %3563 = vmatpush1.bf16.msra.mxu1 %v7958_v3 }
0x1dd1   :  { %3564 = vmatprep.subr.bf16.mxu1 %v7964_v4 }
0x1dd4   :  { %3565 = vmatpush1.bf16.msra.mxu1 %v7970_v5 }
0x1dd5   :  { %3638 = vmatprep.subr.bf16.mxu1 %v7919_v35 }
0x1e9a   :  { %v3512_v11 = vpop.f32.mrb[48].mxu1 }
0x1e9b   :  { %v3519_v59 = vadd.f32 %v3512_v11, %v2360_v38  ;;  %v3514_v14 = vpop.f32.mrb[49].mxu1 }
0x1e9c   :  { %v3520_v61 = vadd.f32 %v3514_v14, %v2361_v8  ;;  %v3516_v7 = vpop.f32.mrb[50].mxu1 }
0x1e9d   :  { %v3517_v33 = vpop.f32.mrb[51].mxu1  ;;  %v5718_v34 = vmul.f32 -1.442695, %v3519_v59 }
0x1e9e   :  { %6307 = vtanh.f32 %v3520_v61  ;;  %v5719_v21 = vmul.f32 -1.442695, %v3520_v61 }
0x1e9f   :  { %6309 = vpow2.f32 %v5718_v34 }
0x1ea8   :  { %v6308_v19 = vpop.eup %6307 }
0x1ea9   :  { %3536 = vrot.lane.b32.xlu0 %v6308_v19, %s6624_s3  ;;  %v6310_v24 = vpop.eup %6309 }
0x1eaa   :  { %v3527_v20 = vadd.f32 1.0, %v6310_v24 }
0x1eac   :  { %6311 = vrcp.f32 %v3527_v20  ;;  %v2364_v20 = vadd.f32 %v7711_v1, %v7798_v47 }
0x1eb6   :  { %v6312_v16 = vpop.eup %6311 }
0x1eb7   :  { %v3534_v43 = vmul.f32 %v6312_v16, %v3464_v17 }
0x1f1b   :  { %v3537_v42 = vpop.permute.xlu0 %3536 }
0x1f1c   :  { %v3539_v0 = vmul.f32 %v6312_v16, %v3537_v42  ;;  %v2365_v16 = vadd.f32 %v7738_v10, %v7800_v48 }
0x1f1e   :  { %3541 = vrot.lane.b32.xlu1 %v3539_v0, %s6624_s3 }
0x1f90   :  { %v3542_v31 = vpop.permute.xlu1 %3541 }
0x1f91   :  { %v3544_v22 = vadd.f32 %v3542_v31, %v3534_v43 }
0x1f93   :  { %6313 = vtanh.f32 %v3544_v22 }
0x1f94   :  { %6315 = vpow2.f32 %v5719_v21 }
0x1f9d   :  { %v6314_v32 = vpop.eup %6313 }
0x1f9e   :  { %3547 = vrot.lane.b32.xlu0 %v6314_v32, %s6624_s3  ;;  %v6316_v29 = vpop.eup %6315 }
0x1f9f   :  { %v3528_v25 = vadd.f32 1.0, %v6316_v29 }
0x1fa1   :  { %6317 = vrcp.f32 %v3528_v25 }
0x1fab   :  { %v6318_v23 = vpop.eup %6317 }
0x2010   :  { %v3548_v30 = vpop.permute.xlu0 %3547 }
0x2011   :  { %v3550_v27 = vmul.f32 %v6318_v23, %v3548_v30 }
0x2013   :  { %v3554_v28 = vpack.c.bf16 %v3550_v27, %v3550_v27 }
0x2015   :  { %5720 = vmatmul.mubr.msk.bf16.vlgmr.msra.gmra.mrb[52].mxu1 %vm2514_vm0, %v3554_v28 }
0x2016   :  { %3639 = vmatpush1.bf16.msra.mxu1 %v7933_v12  ;;  %3670 = vmatprep.mubr.bf16.mxu1 %v8579_v60 }
0x2017   :  { %3640 = vmatprep.subr.bf16.mxu1 %v7940_v18 }
0x201a   :  { %3641 = vmatpush1.bf16.msra.mxu1 %v7946_v62 }
0x201b   :  { %3642 = vmatprep.subr.bf16.mxu1 %v7952_v63 }
0x201e   :  { %3643 = vmatpush1.bf16.msra.mxu1 %v7958_v3 }
0x201f   :  { %3644 = vmatprep.subr.bf16.mxu1 %v7964_v4 }
0x2022   :  { %3645 = vmatpush1.bf16.msra.mxu1 %v7970_v5 }
0x2023   :  { %3718 = vmatprep.subr.bf16.mxu1 %v7919_v35 }
0x20e8   :  { %v3592_v41 = vpop.f32.mrb[52].mxu1 }
0x20e9   :  { %v3599_v36 = vadd.f32 %v3592_v41, %v2362_v40  ;;  %v3594_v17 = vpop.f32.mrb[53].mxu1 }
0x20ea   :  { %v3600_v58 = vadd.f32 %v3594_v17, %v2363_v26  ;;  %v3596_v15 = vpop.f32.mrb[54].mxu1 }
0x20eb   :  { %v3597_v6 = vpop.f32.mrb[55].mxu1  ;;  %v5721_v9 = vmul.f32 -1.442695, %v3599_v36 }
0x20ec   :  { %6319 = vtanh.f32 %v3600_v58  ;;  %v5722_v14 = vmul.f32 -1.442695, %v3600_v58 }
0x20ed   :  { %6321 = vpow2.f32 %v5721_v9 }
0x20f6   :  { %v6320_v2 = vpop.eup %6319 }
0x20f7   :  { %3616 = vrot.lane.b32.xlu1 %v6320_v2, %s6624_s3  ;;  %v6322_v13 = vpop.eup %6321  ;;  %v8163_v2 = vld [vmem:[%s8546_s4 + $0x4] ss:$8 sps:$4 sm:$0xff]  }
0x20f8   :  { %v3607_v37 = vadd.f32 1.0, %v6322_v13 }
0x20fa   :  { %6323 = vrcp.f32 %v3607_v37 }
0x2104   :  { %v6324_v44 = vpop.eup %6323 }
0x2105   :  { %v3614_v46 = vmul.f32 %v6324_v44, %v3544_v22 }
0x2169   :  { %v3617_v45 = vpop.permute.xlu1 %3616 }
0x216a   :  { %v3619_v38 = vmul.f32 %v6324_v44, %v3617_v45 }
0x216c   :  { %3621 = vrot.lane.b32.xlu0 %v3619_v38, %s6624_s3 }
0x21de   :  { %v3622_v8 = vpop.permute.xlu0 %3621 }
0x21df   :  { %v3624_v11 = vadd.f32 %v3622_v8, %v3614_v46 }
0x21e1   :  { %6325 = vtanh.f32 %v3624_v11 }
0x21e2   :  { %6327 = vpow2.f32 %v5722_v14 }
0x21eb   :  { %v6326_v59 = vpop.eup %6325 }
0x21ec   :  { %3627 = vrot.lane.b32.xlu1 %v6326_v59, %s6624_s3  ;;  %v6328_v61 = vpop.eup %6327 }
0x21ed   :  { %v3608_v7 = vadd.f32 1.0, %v6328_v61 }
0x21ef   :  { %6329 = vrcp.f32 %v3608_v7 }
0x21f9   :  { %v6330_v33 = vpop.eup %6329 }
0x225e   :  { %v3628_v19 = vpop.permute.xlu1 %3627 }
0x225f   :  { %v3630_v34 = vmul.f32 %v6330_v33, %v3628_v19 }
0x2261   :  { %v3634_v24 = vpack.c.bf16 %v3630_v34, %v3630_v34 }
0x2263   :  { %5723 = vmatmul.mubr.msk.bf16.vlgmr.msra.gmra.mrb[56].mxu1 %vm2514_vm0, %v3634_v24 }
0x2264   :  { %3719 = vmatpush1.bf16.msra.mxu1 %v7933_v12  ;;  %3750 = vmatprep.mubr.bf16.mxu1 %v8579_v60 }
0x2265   :  { %3720 = vmatprep.subr.bf16.mxu1 %v7940_v18 }
0x2268   :  { %3721 = vmatpush1.bf16.msra.mxu1 %v7946_v62 }
0x2269   :  { %3722 = vmatprep.subr.bf16.mxu1 %v7952_v63 }
0x226c   :  { %3723 = vmatpush1.bf16.msra.mxu1 %v7958_v3 }
0x226d   :  { %3724 = vmatprep.subr.bf16.mxu1 %v7964_v4 }
0x2270   :  { %3725 = vmatpush1.bf16.msra.mxu1 %v7970_v5 }
0x2271   :  { %3798 = vmatprep.subr.bf16.mxu1 %v7919_v35 }
0x2336   :  { %v3672_v42 = vpop.f32.mrb[56].mxu1 }
0x2337   :  { %v3679_v0 = vadd.f32 %v3672_v42, %v2364_v20  ;;  %v3674_v43 = vpop.f32.mrb[57].mxu1  ;;  %v8177_v20 = vld [vmem:[%s8546_s4] ss:$8 sps:$4 sm:$0xff]   ;;  %v8190_v42 = vld [vmem:[%s8546_s4 + $0x10] ss:$8 sps:$4 sm:$0xff]  }
0x2338   :  { %v3680_v31 = vadd.f32 %v3674_v43, %v2365_v16  ;;  %v3676_v22 = vpop.f32.mrb[58].mxu1  ;;  %v8184_v16 = vld [vmem:[%s8546_s4 + $0x14] ss:$8 sps:$4 sm:$0xff]   ;;  %v8202_v43 = vld [vmem:[%s8546_s4 + $0x20] ss:$8 sps:$4 sm:$0xff]  }
0x2339   :  { %v3677_v32 = vpop.f32.mrb[59].mxu1  ;;  %v5724_v29 = vmul.f32 -1.442695, %v3679_v0  ;;  %v8196_v0 = vld [vmem:[%s8546_s4 + $0x24] ss:$8 sps:$4 sm:$0xff]  }
0x233a   :  { %6331 = vtanh.f32 %v3680_v31  ;;  %v5725_v26 = vmul.f32 -1.442695, %v3680_v31  ;;  %v8208_v31 = vld [vmem:[%s8546_s4 + $0x34] ss:$8 sps:$4 sm:$0xff]   ;;  %v8214_v22 = vld [vmem:[%s8546_s4 + $0x30] ss:$8 sps:$4 sm:$0xff]   ;;  %v2368_v32 = vadd.f32 %v7711_v1, %v7806_v51 }
0x233b   :  { %6333 = vpow2.f32 %v5724_v29 }
0x2344   :  { %v6332_v21 = vpop.eup %6331 }
0x2345   :  { %3696 = vrot.lane.b32.xlu0 %v6332_v21, %s6624_s3  ;;  %v6334_v25 = vpop.eup %6333  ;;  %v2369_v21 = vadd.f32 %v7738_v10, %v7808_v52 }
0x2346   :  { %v3687_v35 = vadd.f32 1.0, %v6334_v25 }
0x2348   :  { %6335 = vrcp.f32 %v3687_v35 }
0x2352   :  { %v6336_v23 = vpop.eup %6335 }
0x2353   :  { %v3694_v48 = vmul.f32 %v6336_v23, %v3624_v11 }
0x23b7   :  { %v3697_v47 = vpop.permute.xlu0 %3696 }
0x23b8   :  { %v3699_v30 = vmul.f32 %v6336_v23, %v3697_v47 }
0x23ba   :  { %3701 = vrot.lane.b32.xlu1 %v3699_v30, %s6624_s3 }
0x242c   :  { %v3702_v27 = vpop.permute.xlu1 %3701 }
0x242d   :  { %v3704_v28 = vadd.f32 %v3702_v27, %v3694_v48 }
0x242f   :  { %6337 = vtanh.f32 %v3704_v28 }
0x2430   :  { %6339 = vpow2.f32 %v5725_v26 }
0x2439   :  { %v6338_v40 = vpop.eup %6337 }
0x243a   :  { %3707 = vrot.lane.b32.xlu0 %v6338_v40, %s6624_s3  ;;  %v6340_v41 = vpop.eup %6339 }
0x243b   :  { %v3688_v36 = vadd.f32 1.0, %v6340_v41 }
0x243d   :  { %6341 = vrcp.f32 %v3688_v36 }
0x2447   :  { %v6342_v17 = vpop.eup %6341 }
0x24ac   :  { %v3708_v58 = vpop.permute.xlu0 %3707 }
0x24ad   :  { %v3710_v15 = vmul.f32 %v6342_v17, %v3708_v58 }
0x24af   :  { %v3714_v6 = vpack.c.bf16 %v3710_v15, %v3710_v15 }
0x24b1   :  { %5726 = vmatmul.mubr.msk.bf16.vlgmr.msra.gmra.mrb[60].mxu1 %vm2514_vm0, %v3714_v6 }
0x24b2   :  { %3799 = vmatpush1.bf16.msra.mxu1 %v7933_v12  ;;  %3830 = vmatprep.mubr.bf16.mxu1 %v8579_v60  ;;  %v2366_v12 = vadd.f32 %v7711_v1, %v7802_v49 }
0x24b3   :  { %3800 = vmatprep.subr.bf16.mxu1 %v7940_v18  ;;  %v2367_v18 = vadd.f32 %v7738_v10, %v7804_v50 }
0x24b6   :  { %3801 = vmatpush1.bf16.msra.mxu1 %v7946_v62 }
0x24b7   :  { %3802 = vmatprep.subr.bf16.mxu1 %v7952_v63 }
0x24ba   :  { %3803 = vmatpush1.bf16.msra.mxu1 %v7958_v3 }
0x24bb   :  { %3804 = vmatprep.subr.bf16.mxu1 %v7964_v4 }
0x24be   :  { %3805 = vmatpush1.bf16.msra.mxu1 %v7970_v5 }
0x24bf   :  { %3878 = vmatprep.subr.bf16.mxu1 %v8163_v2 }
0x2584   :  { %v3752_v62 = vpop.f32.mrb[60].mxu1 }
0x2585   :  { %v3759_v63 = vadd.f32 %v3752_v62, %v2366_v12  ;;  %v3754_v3 = vpop.f32.mrb[61].mxu1 }
0x2586   :  { %v3760_v9 = vadd.f32 %v3754_v3, %v2367_v18  ;;  %v3756_v4 = vpop.f32.mrb[62].mxu1 }
0x2587   :  { %v3757_v13 = vpop.f32.mrb[63].mxu1  ;;  %v5727_v37 = vmul.f32 -1.442695, %v3759_v63  ;;  %v2371_v4 = vadd.f32 %v7738_v10, %v7812_v54 }
0x2588   :  { %6343 = vtanh.f32 %v3760_v9  ;;  %v5728_v14 = vmul.f32 -1.442695, %v3760_v9  ;;  %v2370_v9 = vadd.f32 %v7711_v1, %v7810_v53 }
0x2589   :  { %6345 = vpow2.f32 %v5727_v37 }
0x2592   :  { %v6344_v5 = vpop.eup %6343 }
0x2593   :  { %3776 = vrot.lane.b32.xlu1 %v6344_v5, %s6624_s3  ;;  %v6346_v44 = vpop.eup %6345 }
0x2594   :  { %v3767_v45 = vadd.f32 1.0, %v6346_v44 }
0x2596   :  { %6347 = vrcp.f32 %v3767_v45 }
0x25a0   :  { %v6348_v38 = vpop.eup %6347 }
0x25a1   :  { %v3774_v50 = vmul.f32 %v6348_v38, %v3704_v28 }
0x2605   :  { %v3777_v49 = vpop.permute.xlu1 %3776 }
0x2606   :  { %v3779_v46 = vmul.f32 %v6348_v38, %v3777_v49 }
0x2608   :  { %3781 = vrot.lane.b32.xlu0 %v3779_v46, %s6624_s3 }
0x267a   :  { %v3782_v8 = vpop.permute.xlu0 %3781 }
0x267b   :  { %v3784_v11 = vadd.f32 %v3782_v8, %v3774_v50 }
0x267d   :  { %6349 = vtanh.f32 %v3784_v11 }
0x267e   :  { %6351 = vpow2.f32 %v5728_v14 }
0x2687   :  { %v6350_v59 = vpop.eup %6349 }
0x2688   :  { %3787 = vrot.lane.b32.xlu1 %v6350_v59, %s6624_s3  ;;  %v6352_v61 = vpop.eup %6351 }
0x2689   :  { %v3768_v7 = vadd.f32 1.0, %v6352_v61 }
0x268b   :  { %6353 = vrcp.f32 %v3768_v7 }
0x2695   :  { %v6354_v33 = vpop.eup %6353 }
0x26fa   :  { %v3788_v19 = vpop.permute.xlu1 %3787 }
0x26fb   :  { %v3790_v34 = vmul.f32 %v6354_v33, %v3788_v19 }
0x26fd   :  { %v3794_v24 = vpack.c.bf16 %v3790_v34, %v3790_v34 }
0x26ff   :  { %5729 = vmatmul.mubr.msk.bf16.vlgmr.msra.gmra.mrb[64].mxu1 %vm2514_vm0, %v3794_v24 }
0x2700   :  { %3879 = vmatpush1.bf16.msra.mxu1 %v8177_v20  ;;  %3910 = vmatprep.mubr.bf16.mxu1 %v8579_v60 }
0x2701   :  { %3880 = vmatprep.subr.bf16.mxu1 %v8184_v16 }
0x2704   :  { %3881 = vmatpush1.bf16.msra.mxu1 %v8190_v42 }
0x2705   :  { %3882 = vmatprep.subr.bf16.mxu1 %v8196_v0 }
0x2708   :  { %3883 = vmatpush1.bf16.msra.mxu1 %v8202_v43 }
0x2709   :  { %3884 = vmatprep.subr.bf16.mxu1 %v8208_v31 }
0x270c   :  { %3885 = vmatpush1.bf16.msra.mxu1 %v8214_v22 }
0x270d   :  { %3958 = vmatprep.subr.bf16.mxu1 %v8163_v2 }
0x27d2   :  { %v3832_v29 = vpop.f32.mrb[64].mxu1 }
0x27d3   :  { %v3839_v25 = vadd.f32 %v3832_v29, %v2368_v32  ;;  %v3834_v35 = vpop.f32.mrb[65].mxu1 }
0x27d4   :  { %v3840_v23 = vadd.f32 %v3834_v35, %v2369_v21  ;;  %v3836_v47 = vpop.f32.mrb[66].mxu1  ;;  %v2373_v35 = vadd.f32 %v7738_v10, %v7816_v56 }
0x27d5   :  { %v3837_v30 = vpop.f32.mrb[67].mxu1  ;;  %v5730_v27 = vmul.f32 -1.442695, %v3839_v25  ;;  %v2372_v25 = vadd.f32 %v7711_v1, %v7814_v55 }
0x27d6   :  { %6355 = vtanh.f32 %v3840_v23  ;;  %v5731_v15 = vmul.f32 -1.442695, %v3840_v23 }
0x27d7   :  { %6357 = vpow2.f32 %v5730_v27 }
0x27e0   :  { %v6356_v48 = vpop.eup %6355 }
0x27e1   :  { %3856 = vrot.lane.b32.xlu0 %v6356_v48, %s6624_s3  ;;  %v6358_v28 = vpop.eup %6357 }
0x27e2   :  { %v3847_v40 = vadd.f32 1.0, %v6358_v28 }
0x27e4   :  { %6359 = vrcp.f32 %v3847_v40 }
0x27ee   :  { %v6360_v26 = vpop.eup %6359 }
0x27ef   :  { %v3854_v52 = vmul.f32 %v6360_v26, %v3784_v11 }
0x2853   :  { %v3857_v51 = vpop.permute.xlu0 %3856 }
0x2854   :  { %v3859_v41 = vmul.f32 %v6360_v26, %v3857_v51 }
0x2856   :  { %3861 = vrot.lane.b32.xlu1 %v3859_v41, %s6624_s3 }
0x28c8   :  { %v3862_v36 = vpop.permute.xlu1 %3861 }
0x28c9   :  { %v3864_v17 = vadd.f32 %v3862_v36, %v3854_v52 }
0x28cb   :  { %6361 = vtanh.f32 %v3864_v17 }
0x28cc   :  { %6363 = vpow2.f32 %v5731_v15 }
0x28d5   :  { %v6362_v58 = vpop.eup %6361 }
0x28d6   :  { %3867 = vrot.lane.b32.xlu0 %v6362_v58, %s6624_s3  ;;  %v6364_v6 = vpop.eup %6363 }
0x28d7   :  { %v3848_v12 = vadd.f32 1.0, %v6364_v6 }
0x28d9   :  { %6365 = vrcp.f32 %v3848_v12 }
0x28e3   :  { %v6366_v18 = vpop.eup %6365 }
0x2948   :  { %v3868_v62 = vpop.permute.xlu0 %3867 }
0x2949   :  { %v3870_v63 = vmul.f32 %v6366_v18, %v3868_v62 }
0x294b   :  { %v3874_v3 = vpack.c.bf16 %v3870_v63, %v3870_v63 }
0x294d   :  { %5732 = vmatmul.mubr.msk.bf16.vlgmr.msra.gmra.mrb[68].mxu1 %vm2514_vm0, %v3874_v3 }
0x294e   :  { %3959 = vmatpush1.bf16.msra.mxu1 %v8177_v20  ;;  %3990 = vmatprep.mubr.bf16.mxu1 %v8579_v60 }
0x294f   :  { %3960 = vmatprep.subr.bf16.mxu1 %v8184_v16 }
0x2952   :  { %3961 = vmatpush1.bf16.msra.mxu1 %v8190_v42 }
0x2953   :  { %3962 = vmatprep.subr.bf16.mxu1 %v8196_v0 }
0x2956   :  { %3963 = vmatpush1.bf16.msra.mxu1 %v8202_v43 }
0x2957   :  { %3964 = vmatprep.subr.bf16.mxu1 %v8208_v31 }
0x295a   :  { %3965 = vmatpush1.bf16.msra.mxu1 %v8214_v22 }
0x295b   :  { %4038 = vmatprep.subr.bf16.mxu1 %v8163_v2 }
0x2a20   :  { %v3912_v13 = vpop.f32.mrb[68].mxu1 }
0x2a21   :  { %v3919_v5 = vadd.f32 %v3912_v13, %v2370_v9  ;;  %v3914_v37 = vpop.f32.mrb[69].mxu1  ;;  %v2375_v13 = vadd.f32 %v7738_v10, %v7820_v39 }
0x2a22   :  { %v3920_v44 = vadd.f32 %v3914_v37, %v2371_v4  ;;  %v3916_v45 = vpop.f32.mrb[70].mxu1  ;;  %v2374_v4 = vadd.f32 %v7711_v1, %v7818_v57 }
0x2a23   :  { %v3917_v38 = vpop.f32.mrb[71].mxu1  ;;  %v5733_v46 = vmul.f32 -1.442695, %v3919_v5 }
0x2a24   :  { %6367 = vtanh.f32 %v3920_v44  ;;  %v5734_v33 = vmul.f32 -1.442695, %v3920_v44 }
0x2a25   :  { %6369 = vpow2.f32 %v5733_v46 }
0x2a2e   :  { %v6368_v49 = vpop.eup %6367 }
0x2a2f   :  { %3936 = vrot.lane.b32.xlu1 %v6368_v49, %s6624_s3  ;;  %v6370_v50 = vpop.eup %6369 }
0x2a30   :  { %v3927_v8 = vadd.f32 1.0, %v6370_v50 }
0x2a32   :  { %6371 = vrcp.f32 %v3927_v8 }
0x2a3c   :  { %v6372_v11 = vpop.eup %6371 }
0x2a3d   :  { %v3934_v54 = vmul.f32 %v6372_v11, %v3864_v17 }
0x2aa1   :  { %v3937_v53 = vpop.permute.xlu1 %3936 }
0x2aa2   :  { %v3939_v59 = vmul.f32 %v6372_v11, %v3937_v53 }
0x2aa4   :  { %3941 = vrot.lane.b32.xlu0 %v3939_v59, %s6624_s3 }
0x2b16   :  { %v3942_v14 = vpop.permute.xlu0 %3941 }
0x2b17   :  { %v3944_v61 = vadd.f32 %v3942_v14, %v3934_v54 }
0x2b19   :  { %6373 = vtanh.f32 %v3944_v61 }
0x2b1a   :  { %6375 = vpow2.f32 %v5734_v33 }
0x2b23   :  { %v6374_v7 = vpop.eup %6373 }
0x2b24   :  { %3947 = vrot.lane.b32.xlu1 %v6374_v7, %s6624_s3  ;;  %v6376_v19 = vpop.eup %6375 }
0x2b25   :  { %v3928_v34 = vadd.f32 1.0, %v6376_v19 }
0x2b27   :  { %6377 = vrcp.f32 %v3928_v34 }
0x2b31   :  { %v6378_v24 = vpop.eup %6377 }
0x2b96   :  { %v3948_v32 = vpop.permute.xlu1 %3947 }
0x2b97   :  { %v3950_v21 = vmul.f32 %v6378_v24, %v3948_v32 }
0x2b99   :  { %v3954_v29 = vpack.c.bf16 %v3950_v21, %v3950_v21 }
0x2b9b   :  { %5735 = vmatmul.mubr.msk.bf16.vlgmr.msra.gmra.mrb[72].mxu1 %vm2514_vm0, %v3954_v29  ;;  %v8580_v29 = vld [vmem:[#allocation10_spill] sm:$0xff] }
0x2b9c   :  { %4039 = vmatpush1.bf16.msra.mxu1 %v8177_v20  ;;  %4070 = vmatprep.mubr.bf16.mxu1 %v8579_v60 }
0x2b9d   :  { %4040 = vmatprep.subr.bf16.mxu1 %v8184_v16 }
0x2ba0   :  { %4041 = vmatpush1.bf16.msra.mxu1 %v8190_v42 }
0x2ba1   :  { %4042 = vmatprep.subr.bf16.mxu1 %v8196_v0 }
0x2ba4   :  { %4043 = vmatpush1.bf16.msra.mxu1 %v8202_v43 }
0x2ba5   :  { %4044 = vmatprep.subr.bf16.mxu1 %v8208_v31 }
0x2ba8   :  { %4045 = vmatpush1.bf16.msra.mxu1 %v8214_v22 }
0x2ba9   :  { %4118 = vmatprep.subr.bf16.mxu1 %v8163_v2 }
0x2c6e   :  { %v3992_v23 = vpop.f32.mrb[72].mxu1 }
0x2c6f   :  { %v3999_v47 = vadd.f32 %v3992_v23, %v2372_v25  ;;  %v3994_v30 = vpop.f32.mrb[73].mxu1  ;;  %v2376_v25 = vadd.f32 %v7711_v1, %v8580_v29 }
0x2c70   :  { %v4000_v48 = vadd.f32 %v3994_v30, %v2373_v35  ;;  %v3996_v27 = vpop.f32.mrb[74].mxu1  ;;  %v8581_v35 = vld [vmem:[#allocation11_spill] sm:$0xff] }
0x2c71   :  { %v3997_v28 = vpop.f32.mrb[75].mxu1  ;;  %v5736_v26 = vmul.f32 -1.442695, %v3999_v47  ;;  %v2377_v23 = vadd.f32 %v7738_v10, %v8581_v35 }
0x2c72   :  { %6379 = vtanh.f32 %v4000_v48  ;;  %v5737_v6 = vmul.f32 -1.442695, %v4000_v48 }
0x2c73   :  { %6381 = vpow2.f32 %v5736_v26 }
0x2c7c   :  { %v6380_v40 = vpop.eup %6379 }
0x2c7d   :  { %4016 = vrot.lane.b32.xlu0 %v6380_v40, %s6624_s3  ;;  %v6382_v51 = vpop.eup %6381 }
0x2c7e   :  { %v4007_v41 = vadd.f32 1.0, %v6382_v51 }
0x2c80   :  { %6383 = vrcp.f32 %v4007_v41 }
0x2c8a   :  { %v6384_v52 = vpop.eup %6383 }
0x2c8b   :  { %v4014_v56 = vmul.f32 %v6384_v52, %v3944_v61 }
0x2cef   :  { %v4017_v55 = vpop.permute.xlu0 %4016 }
0x2cf0   :  { %v4019_v36 = vmul.f32 %v6384_v52, %v4017_v55 }
0x2cf2   :  { %4021 = vrot.lane.b32.xlu1 %v4019_v36, %s6624_s3 }
0x2d64   :  { %v4022_v17 = vpop.permute.xlu1 %4021 }
0x2d65   :  { %v4024_v58 = vadd.f32 %v4022_v17, %v4014_v56 }
0x2d67   :  { %6385 = vtanh.f32 %v4024_v58 }
0x2d68   :  { %6387 = vpow2.f32 %v5737_v6 }
0x2d71   :  { %v6386_v15 = vpop.eup %6385 }
0x2d72   :  { %4027 = vrot.lane.b32.xlu0 %v6386_v15, %s6624_s3  ;;  %v6388_v12 = vpop.eup %6387 }
0x2d73   :  { %v4008_v18 = vadd.f32 1.0, %v6388_v12 }
0x2d75   :  { %6389 = vrcp.f32 %v4008_v18 }
0x2d7f   :  { %v6390_v62 = vpop.eup %6389 }
0x2de4   :  { %v4028_v63 = vpop.permute.xlu0 %4027 }
0x2de5   :  { %v4030_v3 = vmul.f32 %v6390_v62, %v4028_v63 }
0x2de7   :  { %v4034_v9 = vpack.c.bf16 %v4030_v3, %v4030_v3 }
0x2de9   :  { %5738 = vmatmul.mubr.msk.bf16.vlgmr.msra.gmra.mrb[76].mxu1 %vm2514_vm0, %v4034_v9 }
0x2dea   :  { %4119 = vmatpush1.bf16.msra.mxu1 %v8177_v20  ;;  %4150 = vmatprep.mubr.bf16.mxu1 %v8579_v60 }
0x2deb   :  { %4120 = vmatprep.subr.bf16.mxu1 %v8184_v16 }
0x2dee   :  { %4121 = vmatpush1.bf16.msra.mxu1 %v8190_v42 }
0x2def   :  { %4122 = vmatprep.subr.bf16.mxu1 %v8196_v0 }
0x2df2   :  { %4123 = vmatpush1.bf16.msra.mxu1 %v8202_v43 }
0x2df3   :  { %4124 = vmatprep.subr.bf16.mxu1 %v8208_v31 }
0x2df6   :  { %4125 = vmatpush1.bf16.msra.mxu1 %v8214_v22 }
0x2df7   :  { %4198 = vmatprep.subr.bf16.mxu1 %v8163_v2 }
0x2ebc   :  { %v4072_v5 = vpop.f32.mrb[76].mxu1 }
0x2ebd   :  { %v4079_v37 = vadd.f32 %v4072_v5, %v2374_v4  ;;  %v4074_v44 = vpop.f32.mrb[77].mxu1 }
0x2ebe   :  { %v4080_v45 = vadd.f32 %v4074_v44, %v2375_v13  ;;  %v4076_v38 = vpop.f32.mrb[78].mxu1  ;;  %v8582_v13 = vld [vmem:[#allocation12_spill] sm:$0xff] }
0x2ebf   :  { %v4077_v49 = vpop.f32.mrb[79].mxu1  ;;  %v5739_v50 = vmul.f32 -1.442695, %v4079_v37  ;;  %v2378_v5 = vadd.f32 %v7711_v1, %v8582_v13  ;;  %v8583_v37 = vld [vmem:[#allocation13_spill] sm:$0xff] }
0x2ec0   :  { %6391 = vtanh.f32 %v4080_v45  ;;  %v5740_v7 = vmul.f32 -1.442695, %v4080_v45  ;;  %v2379_v44 = vadd.f32 %v7738_v10, %v8583_v37 }
0x2ec1   :  { %6393 = vpow2.f32 %v5739_v50 }
0x2eca   :  { %v6392_v46 = vpop.eup %6391 }
0x2ecb   :  { %4096 = vrot.lane.b32.xlu1 %v6392_v46, %s6624_s3  ;;  %v6394_v8 = vpop.eup %6393 }
0x2ecc   :  { %v4087_v11 = vadd.f32 1.0, %v6394_v8 }
0x2ece   :  { %6395 = vrcp.f32 %v4087_v11 }
0x2ed8   :  { %v6396_v53 = vpop.eup %6395 }
0x2ed9   :  { %v4094_v39 = vmul.f32 %v6396_v53, %v4024_v58 }
0x2f3d   :  { %v4097_v57 = vpop.permute.xlu1 %4096 }
0x2f3e   :  { %v4099_v59 = vmul.f32 %v6396_v53, %v4097_v57 }
0x2f40   :  { %4101 = vrot.lane.b32.xlu0 %v4099_v59, %s6624_s3 }
0x2fb2   :  { %v4102_v54 = vpop.permute.xlu0 %4101 }
0x2fb3   :  { %v4104_v14 = vadd.f32 %v4102_v54, %v4094_v39 }
0x2fb5   :  { %6397 = vtanh.f32 %v4104_v14 }
0x2fb6   :  { %6399 = vpow2.f32 %v5740_v7 }
0x2fbf   :  { %v6398_v61 = vpop.eup %6397 }
0x2fc0   :  { %4107 = vrot.lane.b32.xlu1 %v6398_v61, %s6624_s3  ;;  %v6400_v33 = vpop.eup %6399 }
0x2fc1   :  { %v4088_v19 = vadd.f32 1.0, %v6400_v33 }
0x2fc3   :  { %6401 = vrcp.f32 %v4088_v19 }
0x2fcd   :  { %v6402_v34 = vpop.eup %6401 }
0x3032   :  { %v4108_v24 = vpop.permute.xlu1 %4107 }
0x3033   :  { %v4110_v32 = vmul.f32 %v6402_v34, %v4108_v24 }
0x3035   :  { %v4114_v21 = vpack.c.bf16 %v4110_v32, %v4110_v32 }
0x3037   :  { %5741 = vmatmul.mubr.msk.bf16.vlgmr.msra.gmra.mrb[80].mxu1 %vm2514_vm0, %v4114_v21 }
0x3038   :  { %4199 = vmatpush1.bf16.msra.mxu1 %v8177_v20  ;;  %4230 = vmatprep.mubr.bf16.mxu1 %v8579_v60 }
0x3039   :  { %4200 = vmatprep.subr.bf16.mxu1 %v8184_v16 }
0x303c   :  { %4201 = vmatpush1.bf16.msra.mxu1 %v8190_v42 }
0x303d   :  { %4202 = vmatprep.subr.bf16.mxu1 %v8196_v0 }
0x3040   :  { %4203 = vmatpush1.bf16.msra.mxu1 %v8202_v43 }
0x3041   :  { %4204 = vmatprep.subr.bf16.mxu1 %v8208_v31 }
0x3044   :  { %4205 = vmatpush1.bf16.msra.mxu1 %v8214_v22 }
0x3045   :  { %4278 = vmatprep.subr.bf16.mxu1 %v8163_v2 }
0x310a   :  { %v4152_v47 = vpop.f32.mrb[80].mxu1 }
0x310b   :  { %v4159_v30 = vadd.f32 %v4152_v47, %v2376_v25  ;;  %v4154_v48 = vpop.f32.mrb[81].mxu1 }
0x310c   :  { %v4160_v27 = vadd.f32 %v4154_v48, %v2377_v23  ;;  %v4156_v28 = vpop.f32.mrb[82].mxu1  ;;  %v8584_v23 = vld [vmem:[#allocation14_spill] sm:$0xff] }
0x310d   :  { %v4157_v40 = vpop.f32.mrb[83].mxu1  ;;  %v5742_v51 = vmul.f32 -1.442695, %v4159_v30  ;;  %v2380_v47 = vadd.f32 %v7711_v1, %v8584_v23  ;;  %v8585_v30 = vld [vmem:[#allocation15_spill] sm:$0xff] }
0x310e   :  { %6403 = vtanh.f32 %v4160_v27  ;;  %v5743_v12 = vmul.f32 -1.442695, %v4160_v27  ;;  %v2381_v48 = vadd.f32 %v7738_v10, %v8585_v30 }
0x310f   :  { %6405 = vpow2.f32 %v5742_v51 }
0x3118   :  { %v6404_v26 = vpop.eup %6403 }
0x3119   :  { %4176 = vrot.lane.b32.xlu0 %v6404_v26, %s6624_s3  ;;  %v6406_v41 = vpop.eup %6405 }
0x311a   :  { %v4167_v52 = vadd.f32 1.0, %v6406_v41 }
0x311c   :  { %6407 = vrcp.f32 %v4167_v52 }
0x3126   :  { %v6408_v55 = vpop.eup %6407 }
0x3127   :  { %v4174_v17 = vmul.f32 %v6408_v55, %v4104_v14 }
0x318b   :  { %v4177_v36 = vpop.permute.xlu0 %4176 }
0x318c   :  { %v4179_v56 = vmul.f32 %v6408_v55, %v4177_v36 }
0x318e   :  { %4181 = vrot.lane.b32.xlu1 %v4179_v56, %s6624_s3 }
0x3200   :  { %v4182_v58 = vpop.permute.xlu1 %4181 }
0x3201   :  { %v4184_v15 = vadd.f32 %v4182_v58, %v4174_v17 }
0x3203   :  { %6409 = vtanh.f32 %v4184_v15 }
0x3204   :  { %6411 = vpow2.f32 %v5743_v12 }
0x320d   :  { %v6410_v6 = vpop.eup %6409 }
0x320e   :  { %4187 = vrot.lane.b32.xlu0 %v6410_v6, %s6624_s3  ;;  %v6412_v18 = vpop.eup %6411 }
0x320f   :  { %v4168_v62 = vadd.f32 1.0, %v6412_v18 }
0x3211   :  { %6413 = vrcp.f32 %v4168_v62 }
0x321b   :  { %v6414_v63 = vpop.eup %6413 }
0x3280   :  { %v4188_v3 = vpop.permute.xlu0 %4187 }
0x3281   :  { %v4190_v9 = vmul.f32 %v6414_v63, %v4188_v3 }
0x3283   :  { %v4194_v4 = vpack.c.bf16 %v4190_v9, %v4190_v9 }
0x3285   :  { %5744 = vmatmul.mubr.msk.bf16.vlgmr.msra.gmra.mrb[84].mxu1 %vm2514_vm0, %v4194_v4 }
0x3286   :  { %4279 = vmatpush1.bf16.msra.mxu1 %v8177_v20  ;;  %4310 = vmatprep.mubr.bf16.mxu1 %v8579_v60 }
0x3287   :  { %4280 = vmatprep.subr.bf16.mxu1 %v8184_v16 }
0x328a   :  { %4281 = vmatpush1.bf16.msra.mxu1 %v8190_v42 }
0x328b   :  { %4282 = vmatprep.subr.bf16.mxu1 %v8196_v0 }
0x328e   :  { %4283 = vmatpush1.bf16.msra.mxu1 %v8202_v43 }
0x328f   :  { %4284 = vmatprep.subr.bf16.mxu1 %v8208_v31 }
0x3292   :  { %4285 = vmatpush1.bf16.msra.mxu1 %v8214_v22 }
0x3293   :  { %4358 = vmatprep.subr.bf16.mxu1 %v8163_v2 }
0x3358   :  { %v4232_v45 = vpop.f32.mrb[84].mxu1 }
0x3359   :  { %v4239_v38 = vadd.f32 %v4232_v45, %v2378_v5  ;;  %v4234_v49 = vpop.f32.mrb[85].mxu1 }
0x335a   :  { %v4240_v46 = vadd.f32 %v4234_v49, %v2379_v44  ;;  %v4236_v50 = vpop.f32.mrb[86].mxu1  ;;  %v8586_v44 = vld [vmem:[#allocation16_spill] sm:$0xff] }
0x335b   :  { %v4237_v8 = vpop.f32.mrb[87].mxu1  ;;  %v5745_v53 = vmul.f32 -1.442695, %v4239_v38  ;;  %v2382_v45 = vadd.f32 %v7711_v1, %v8586_v44  ;;  %v8587_v38 = vld [vmem:[#allocation17_spill] sm:$0xff] }
0x335c   :  { %6415 = vtanh.f32 %v4240_v46  ;;  %v5746_v34 = vmul.f32 -1.442695, %v4240_v46  ;;  %v2383_v49 = vadd.f32 %v7738_v10, %v8587_v38 }
0x335d   :  { %6417 = vpow2.f32 %v5745_v53 }
0x3366   :  { %v6416_v11 = vpop.eup %6415 }
0x3367   :  { %4256 = vrot.lane.b32.xlu1 %v6416_v11, %s6624_s3  ;;  %v6418_v57 = vpop.eup %6417 }
0x3368   :  { %v4247_v59 = vadd.f32 1.0, %v6418_v57 }
0x336a   :  { %6419 = vrcp.f32 %v4247_v59 }
0x3374   :  { %v6420_v39 = vpop.eup %6419 }
0x3375   :  { %v4254_v61 = vmul.f32 %v6420_v39, %v4184_v15 }
0x33d9   :  { %v4257_v54 = vpop.permute.xlu1 %4256 }
0x33da   :  { %v4259_v14 = vmul.f32 %v6420_v39, %v4257_v54 }
0x33dc   :  { %4261 = vrot.lane.b32.xlu0 %v4259_v14, %s6624_s3 }
0x344e   :  { %v4262_v7 = vpop.permute.xlu0 %4261 }
0x344f   :  { %v4264_v33 = vadd.f32 %v4262_v7, %v4254_v61 }
0x3451   :  { %6421 = vtanh.f32 %v4264_v33 }
0x3452   :  { %6423 = vpow2.f32 %v5746_v34 }
0x345b   :  { %v6422_v19 = vpop.eup %6421 }
0x345c   :  { %4267 = vrot.lane.b32.xlu1 %v6422_v19, %s6624_s3  ;;  %v6424_v24 = vpop.eup %6423 }
0x345d   :  { %v4248_v32 = vadd.f32 1.0, %v6424_v24 }
0x345f   :  { %6425 = vrcp.f32 %v4248_v32 }
0x3469   :  { %v6426_v21 = vpop.eup %6425 }
0x34ce   :  { %v4268_v29 = vpop.permute.xlu1 %4267 }
0x34cf   :  { %v4270_v25 = vmul.f32 %v6426_v21, %v4268_v29 }
0x34d1   :  { %v4274_v35 = vpack.c.bf16 %v4270_v25, %v4270_v25 }
0x34d3   :  { %5747 = vmatmul.mubr.msk.bf16.vlgmr.msra.gmra.mrb[88].mxu1 %vm2514_vm0, %v4274_v35 }
0x34d4   :  { %4359 = vmatpush1.bf16.msra.mxu1 %v8177_v20  ;;  %4390 = vmatprep.mubr.bf16.mxu1 %v8579_v60 }
0x34d5   :  { %4360 = vmatprep.subr.bf16.mxu1 %v8184_v16 }
0x34d8   :  { %4361 = vmatpush1.bf16.msra.mxu1 %v8190_v42 }
0x34d9   :  { %4362 = vmatprep.subr.bf16.mxu1 %v8196_v0 }
0x34dc   :  { %4363 = vmatpush1.bf16.msra.mxu1 %v8202_v43 }
0x34dd   :  { %4364 = vmatprep.subr.bf16.mxu1 %v8208_v31 }
0x34e0   :  { %4365 = vmatpush1.bf16.msra.mxu1 %v8214_v22 }
0x34e1   :  { %4438 = vmatprep.subr.bf16.mxu1 %v8163_v2 }
0x35a6   :  { %v4312_v27 = vpop.f32.mrb[88].mxu1 }
0x35a7   :  { %v4319_v28 = vadd.f32 %v4312_v27, %v2380_v47  ;;  %v4314_v40 = vpop.f32.mrb[89].mxu1 }
0x35a8   :  { %v4320_v26 = vadd.f32 %v4314_v40, %v2381_v48  ;;  %v4316_v51 = vpop.f32.mrb[90].mxu1  ;;  %v8588_v48 = vld [vmem:[#allocation18_spill] sm:$0xff] }
0x35a9   :  { %v4317_v41 = vpop.f32.mrb[91].mxu1  ;;  %v5748_v55 = vmul.f32 -1.442695, %v4319_v28  ;;  %v2384_v27 = vadd.f32 %v7711_v1, %v8588_v48  ;;  %v8589_v28 = vld [vmem:[#allocation19_spill] sm:$0xff] }
0x35aa   :  { %6427 = vtanh.f32 %v4320_v26  ;;  %v5749_v63 = vmul.f32 -1.442695, %v4320_v26  ;;  %v2385_v40 = vadd.f32 %v7738_v10, %v8589_v28 }
0x35ab   :  { %6429 = vpow2.f32 %v5748_v55 }
0x35b4   :  { %v6428_v52 = vpop.eup %6427 }
0x35b5   :  { %4336 = vrot.lane.b32.xlu0 %v6428_v52, %s6624_s3  ;;  %v6430_v36 = vpop.eup %6429 }
0x35b6   :  { %v4327_v56 = vadd.f32 1.0, %v6430_v36 }
0x35b8   :  { %6431 = vrcp.f32 %v4327_v56 }
0x35c2   :  { %v6432_v17 = vpop.eup %6431 }
0x35c3   :  { %v4334_v6 = vmul.f32 %v6432_v17, %v4264_v33 }
0x3627   :  { %v4337_v58 = vpop.permute.xlu0 %4336 }
0x3628   :  { %v4339_v15 = vmul.f32 %v6432_v17, %v4337_v58 }
0x362a   :  { %4341 = vrot.lane.b32.xlu1 %v4339_v15, %s6624_s3 }
0x369c   :  { %v4342_v12 = vpop.permute.xlu1 %4341 }
0x369d   :  { %v4344_v18 = vadd.f32 %v4342_v12, %v4334_v6 }
0x369f   :  { %6433 = vtanh.f32 %v4344_v18 }
0x36a0   :  { %6435 = vpow2.f32 %v5749_v63 }
0x36a9   :  { %v6434_v62 = vpop.eup %6433 }
0x36aa   :  { %4347 = vrot.lane.b32.xlu0 %v6434_v62, %s6624_s3  ;;  %v6436_v3 = vpop.eup %6435 }
0x36ab   :  { %v4328_v9 = vadd.f32 1.0, %v6436_v3 }
0x36ad   :  { %6437 = vrcp.f32 %v4328_v9 }
0x36b7   :  { %v6438_v4 = vpop.eup %6437 }
0x371c   :  { %v4348_v13 = vpop.permute.xlu0 %4347 }
0x371d   :  { %v4350_v5 = vmul.f32 %v6438_v4, %v4348_v13 }
0x371f   :  { %v4354_v37 = vpack.c.bf16 %v4350_v5, %v4350_v5 }
0x3721   :  { %5750 = vmatmul.mubr.msk.bf16.vlgmr.msra.gmra.mrb[92].mxu1 %vm2514_vm0, %v4354_v37 }
0x3722   :  { %4439 = vmatpush1.bf16.msra.mxu1 %v8177_v20  ;;  %4470 = vmatprep.mubr.bf16.mxu1 %v8579_v60 }
0x3723   :  { %4440 = vmatprep.subr.bf16.mxu1 %v8184_v16 }
0x3726   :  { %4441 = vmatpush1.bf16.msra.mxu1 %v8190_v42 }
0x3727   :  { %4442 = vmatprep.subr.bf16.mxu1 %v8196_v0 }
0x372a   :  { %4443 = vmatpush1.bf16.msra.mxu1 %v8202_v43 }
0x372b   :  { %4444 = vmatprep.subr.bf16.mxu1 %v8208_v31 }
0x372e   :  { %4445 = vmatpush1.bf16.msra.mxu1 %v8214_v22 }
0x372f   :  { %4518 = vmatprep.subr.bf16.mxu1 %v8163_v2 }
0x37f4   :  { %v4392_v46 = vpop.f32.mrb[92].mxu1 }
0x37f5   :  { %v4399_v50 = vadd.f32 %v4392_v46, %v2382_v45  ;;  %v4394_v8 = vpop.f32.mrb[93].mxu1 }
0x37f6   :  { %v4400_v11 = vadd.f32 %v4394_v8, %v2383_v49  ;;  %v4396_v53 = vpop.f32.mrb[94].mxu1  ;;  %v8590_v49 = vld [vmem:[#allocation20_spill] sm:$0xff] }
0x37f7   :  { %v4397_v57 = vpop.f32.mrb[95].mxu1  ;;  %v5751_v39 = vmul.f32 -1.442695, %v4399_v50  ;;  %v2386_v46 = vadd.f32 %v7711_v1, %v8590_v49  ;;  %v8591_v50 = vld [vmem:[#allocation21_spill] sm:$0xff] }
0x37f8   :  { %6439 = vtanh.f32 %v4400_v11  ;;  %v5752_v21 = vmul.f32 -1.442695, %v4400_v11  ;;  %v2387_v8 = vadd.f32 %v7738_v10, %v8591_v50  ;;  %v8407_v50 = vld [vmem:[%s8546_s4 + $0x4] ss:$8 sps:$4 sm:$0xff]  }
0x37f9   :  { %6441 = vpow2.f32 %v5751_v39 }
0x3802   :  { %v6440_v59 = vpop.eup %6439 }
0x3803   :  { %4416 = vrot.lane.b32.xlu1 %v6440_v59, %s6624_s3  ;;  %v6442_v54 = vpop.eup %6441 }
0x3804   :  { %v4407_v14 = vadd.f32 1.0, %v6442_v54 }
0x3806   :  { %6443 = vrcp.f32 %v4407_v14 }
0x3810   :  { %v6444_v61 = vpop.eup %6443 }
0x3811   :  { %v4414_v19 = vmul.f32 %v6444_v61, %v4344_v18 }
0x3875   :  { %v4417_v7 = vpop.permute.xlu1 %4416 }
0x3876   :  { %v4419_v33 = vmul.f32 %v6444_v61, %v4417_v7 }
0x3878   :  { %4421 = vrot.lane.b32.xlu0 %v4419_v33, %s6624_s3 }
0x38ea   :  { %v4422_v34 = vpop.permute.xlu0 %4421 }
0x38eb   :  { %v4424_v24 = vadd.f32 %v4422_v34, %v4414_v19 }
0x38ed   :  { %6445 = vtanh.f32 %v4424_v24 }
0x38ee   :  { %6447 = vpow2.f32 %v5752_v21 }
0x38f7   :  { %v6446_v32 = vpop.eup %6445 }
0x38f8   :  { %4427 = vrot.lane.b32.xlu1 %v6446_v32, %s6624_s3  ;;  %v6448_v29 = vpop.eup %6447 }
0x38f9   :  { %v4408_v25 = vadd.f32 1.0, %v6448_v29 }
0x38fb   :  { %6449 = vrcp.f32 %v4408_v25 }
0x3905   :  { %v6450_v35 = vpop.eup %6449 }
0x396a   :  { %v4428_v23 = vpop.permute.xlu1 %4427 }
0x396b   :  { %v4430_v47 = vmul.f32 %v6450_v35, %v4428_v23 }
0x396d   :  { %v4434_v30 = vpack.c.bf16 %v4430_v47, %v4430_v47 }
0x396f   :  { %5753 = vmatmul.mubr.msk.bf16.vlgmr.msra.gmra.mrb[96].mxu1 %vm2514_vm0, %v4434_v30 }
0x3970   :  { %4519 = vmatpush1.bf16.msra.mxu1 %v8177_v20  ;;  %4550 = vmatprep.mubr.bf16.mxu1 %v8579_v60 }
0x3971   :  { %4520 = vmatprep.subr.bf16.mxu1 %v8184_v16 }
0x3974   :  { %4521 = vmatpush1.bf16.msra.mxu1 %v8190_v42 }
0x3975   :  { %4522 = vmatprep.subr.bf16.mxu1 %v8196_v0 }
0x3978   :  { %4523 = vmatpush1.bf16.msra.mxu1 %v8202_v43 }
0x3979   :  { %4524 = vmatprep.subr.bf16.mxu1 %v8208_v31 }
0x397c   :  { %4525 = vmatpush1.bf16.msra.mxu1 %v8214_v22 }
0x397d   :  { %4598 = vmatprep.subr.bf16.mxu1 %v8163_v2 }
0x3a42   :  { %v4472_v26 = vpop.f32.mrb[96].mxu1 }
0x3a43   :  { %v4479_v51 = vadd.f32 %v4472_v26, %v2384_v27  ;;  %v4474_v41 = vpop.f32.mrb[97].mxu1 }
0x3a44   :  { %v4480_v52 = vadd.f32 %v4474_v41, %v2385_v40  ;;  %v4476_v55 = vpop.f32.mrb[98].mxu1  ;;  %v8592_v40 = vld [vmem:[#allocation22_spill] sm:$0xff] }
0x3a45   :  { %v4477_v36 = vpop.f32.mrb[99].mxu1  ;;  %v5754_v17 = vmul.f32 -1.442695, %v4479_v51  ;;  %v2388_v26 = vadd.f32 %v7711_v1, %v8592_v40  ;;  %v8593_v51 = vld [vmem:[#allocation23_spill] sm:$0xff]  ;;  %v8446_v40 = vld [vmem:[%s8546_s4 + $0x20] ss:$8 sps:$4 sm:$0xff]  }
0x3a46   :  { %6451 = vtanh.f32 %v4480_v52  ;;  %v5755_v4 = vmul.f32 -1.442695, %v4480_v52  ;;  %v2389_v41 = vadd.f32 %v7738_v10, %v8593_v51  ;;  %v8458_v51 = vld [vmem:[%s8546_s4 + $0x30] ss:$8 sps:$4 sm:$0xff]  }
0x3a47   :  { %6453 = vpow2.f32 %v5754_v17 }
0x3a50   :  { %v6452_v56 = vpop.eup %6451 }
0x3a51   :  { %4496 = vrot.lane.b32.xlu0 %v6452_v56, %s6624_s3  ;;  %v6454_v58 = vpop.eup %6453 }
0x3a52   :  { %v4487_v15 = vadd.f32 1.0, %v6454_v58 }
0x3a54   :  { %6455 = vrcp.f32 %v4487_v15 }
0x3a5e   :  { %v6456_v6 = vpop.eup %6455 }
0x3a5f   :  { %v4494_v62 = vmul.f32 %v6456_v6, %v4424_v24 }
0x3ac3   :  { %v4497_v12 = vpop.permute.xlu0 %4496 }
0x3ac4   :  { %v4499_v18 = vmul.f32 %v6456_v6, %v4497_v12 }
0x3ac6   :  { %4501 = vrot.lane.b32.xlu1 %v4499_v18, %s6624_s3 }
0x3b38   :  { %v4502_v63 = vpop.permute.xlu1 %4501 }
0x3b39   :  { %v4504_v3 = vadd.f32 %v4502_v63, %v4494_v62 }
0x3b3b   :  { %6457 = vtanh.f32 %v4504_v3 }
0x3b3c   :  { %6459 = vpow2.f32 %v5755_v4 }
0x3b45   :  { %v6458_v9 = vpop.eup %6457 }
0x3b46   :  { %4507 = vrot.lane.b32.xlu0 %v6458_v9, %s6624_s3  ;;  %v6460_v13 = vpop.eup %6459 }
0x3b47   :  { %v4488_v5 = vadd.f32 1.0, %v6460_v13 }
0x3b49   :  { %6461 = vrcp.f32 %v4488_v5 }
0x3b53   :  { %v6462_v37 = vpop.eup %6461 }
0x3bb8   :  { %v4508_v44 = vpop.permute.xlu0 %4507 }
0x3bb9   :  { %v4510_v45 = vmul.f32 %v6462_v37, %v4508_v44 }
0x3bbb   :  { %v4514_v38 = vpack.c.bf16 %v4510_v45, %v4510_v45 }
0x3bbd   :  { %5756 = vmatmul.mubr.msk.bf16.vlgmr.msra.gmra.mrb[100].mxu1 %vm2514_vm0, %v4514_v38 }
0x3bbe   :  { %4599 = vmatpush1.bf16.msra.mxu1 %v8177_v20  ;;  %4630 = vmatprep.mubr.bf16.mxu1 %v8579_v60 }
0x3bbf   :  { %4600 = vmatprep.subr.bf16.mxu1 %v8184_v16 }
0x3bc2   :  { %4601 = vmatpush1.bf16.msra.mxu1 %v8190_v42 }
0x3bc3   :  { %4602 = vmatprep.subr.bf16.mxu1 %v8196_v0 }
0x3bc6   :  { %4603 = vmatpush1.bf16.msra.mxu1 %v8202_v43 }
0x3bc7   :  { %4604 = vmatprep.subr.bf16.mxu1 %v8208_v31 }
0x3bca   :  { %4605 = vmatpush1.bf16.msra.mxu1 %v8214_v22 }
0x3bcb   :  { %4678 = vmatprep.subr.bf16.mxu1 %v8163_v2 }
0x3c90   :  { %v4552_v11 = vpop.f32.mrb[100].mxu1 }
0x3c91   :  { %v4559_v53 = vadd.f32 %v4552_v11, %v2386_v46  ;;  %v4554_v57 = vpop.f32.mrb[101].mxu1 }
0x3c92   :  { %v4560_v59 = vadd.f32 %v4554_v57, %v2387_v8  ;;  %v4556_v39 = vpop.f32.mrb[102].mxu1  ;;  %v8595_v8 = vld [vmem:[#allocation25_spill] sm:$0xff] }
0x3c93   :  { %v4557_v54 = vpop.f32.mrb[103].mxu1  ;;  %v5757_v61 = vmul.f32 -1.442695, %v4559_v53 }
0x3c94   :  { %6463 = vtanh.f32 %v4560_v59  ;;  %v5758_v35 = vmul.f32 -1.442695, %v4560_v59 }
0x3c95   :  { %6465 = vpow2.f32 %v5757_v61 }
0x3c9e   :  { %v6464_v14 = vpop.eup %6463 }
0x3c9f   :  { %4576 = vrot.lane.b32.xlu1 %v6464_v14, %s6624_s3  ;;  %v6466_v7 = vpop.eup %6465 }
0x3ca0   :  { %v4567_v33 = vadd.f32 1.0, %v6466_v7 }
0x3ca2   :  { %6467 = vrcp.f32 %v4567_v33 }
0x3cac   :  { %v6468_v19 = vpop.eup %6467 }
0x3cad   :  { %v4574_v32 = vmul.f32 %v6468_v19, %v4504_v3 }
0x3d11   :  { %v4577_v34 = vpop.permute.xlu1 %4576 }
0x3d12   :  { %v4579_v24 = vmul.f32 %v6468_v19, %v4577_v34 }
0x3d14   :  { %4581 = vrot.lane.b32.xlu0 %v4579_v24, %s6624_s3 }
0x3d86   :  { %v4582_v21 = vpop.permute.xlu0 %4581 }
0x3d87   :  { %v4584_v29 = vadd.f32 %v4582_v21, %v4574_v32 }
0x3d89   :  { %6469 = vtanh.f32 %v4584_v29 }
0x3d8a   :  { %6471 = vpow2.f32 %v5758_v35 }
0x3d93   :  { %v6470_v25 = vpop.eup %6469 }
0x3d94   :  { %4587 = vrot.lane.b32.xlu1 %v6470_v25, %s6624_s3  ;;  %v6472_v23 = vpop.eup %6471 }
0x3d95   :  { %v4568_v47 = vadd.f32 1.0, %v6472_v23 }
0x3d97   :  { %6473 = vrcp.f32 %v4568_v47 }
0x3da1   :  { %v6474_v30 = vpop.eup %6473 }
0x3e06   :  { %v4588_v48 = vpop.permute.xlu1 %4587 }
0x3e07   :  { %v4590_v27 = vmul.f32 %v6474_v30, %v4588_v48  ;;  %v8421_v30 = vld [vmem:[%s8546_s4] ss:$8 sps:$4 sm:$0xff]   ;;  %v8428_v48 = vld [vmem:[%s8546_s4 + $0x14] ss:$8 sps:$4 sm:$0xff]  }
0x3e09   :  { %v4594_v28 = vpack.c.bf16 %v4590_v27, %v4590_v27  ;;  %v8434_v27 = vld [vmem:[%s8546_s4 + $0x10] ss:$8 sps:$4 sm:$0xff]  }
0x3e0b   :  { %5759 = vmatmul.mubr.msk.bf16.vlgmr.msra.gmra.mrb[104].mxu1 %vm2514_vm0, %v4594_v28  ;;  %v8440_v28 = vld [vmem:[%s8546_s4 + $0x24] ss:$8 sps:$4 sm:$0xff]  }
0x3e0c   :  { %4679 = vmatpush1.bf16.msra.mxu1 %v8177_v20  ;;  %4710 = vmatprep.mubr.bf16.mxu1 %v8579_v60 }
0x3e0d   :  { %4680 = vmatprep.subr.bf16.mxu1 %v8184_v16 }
0x3e10   :  { %4681 = vmatpush1.bf16.msra.mxu1 %v8190_v42 }
0x3e11   :  { %4682 = vmatprep.subr.bf16.mxu1 %v8196_v0 }
0x3e14   :  { %4683 = vmatpush1.bf16.msra.mxu1 %v8202_v43 }
0x3e15   :  { %4684 = vmatprep.subr.bf16.mxu1 %v8208_v31 }
0x3e18   :  { %4685 = vmatpush1.bf16.msra.mxu1 %v8214_v22 }
0x3e19   :  { %4758 = vmatprep.subr.bf16.mxu1 %v8163_v2 }
0x3ede   :  { %v4632_v52 = vpop.f32.mrb[104].mxu1 }
0x3edf   :  { %v4639_v55 = vadd.f32 %v4632_v52, %v2388_v26  ;;  %v4634_v36 = vpop.f32.mrb[105].mxu1  ;;  %v8452_v26 = vld [vmem:[%s8546_s4 + $0x34] ss:$8 sps:$4 sm:$0xff]  }
0x3ee0   :  { %v4640_v56 = vadd.f32 %v4634_v36, %v2389_v41  ;;  %v4636_v17 = vpop.f32.mrb[106].mxu1  ;;  %v8596_v41 = vld [vmem:[#allocation26_spill] sm:$0xff] }
0x3ee1   :  { %v4637_v58 = vpop.f32.mrb[107].mxu1  ;;  %v5760_v6 = vmul.f32 -1.442695, %v4639_v55  ;;  %v2392_v52 = vadd.f32 %v7711_v1, %v8596_v41  ;;  %v8597_v55 = vld [vmem:[#allocation27_spill] sm:$0xff] }
0x3ee2   :  { %6475 = vtanh.f32 %v4640_v56  ;;  %v5761_v5 = vmul.f32 -1.442695, %v4640_v56  ;;  %v2393_v36 = vadd.f32 %v7738_v10, %v8597_v55  ;;  %v8600_v55 = vld [vmem:[#allocation30_spill] sm:$0xff] }
0x3ee3   :  { %6477 = vpow2.f32 %v5760_v6 }
0x3eec   :  { %v6476_v15 = vpop.eup %6475 }
0x3eed   :  { %4656 = vrot.lane.b32.xlu0 %v6476_v15, %s6624_s3  ;;  %v6478_v12 = vpop.eup %6477 }
0x3eee   :  { %v4647_v2 = vadd.f32 1.0, %v6478_v12 }
0x3ef0   :  { %6479 = vrcp.f32 %v4647_v2 }
0x3efa   :  { %v6480_v18 = vpop.eup %6479 }
0x3efb   :  { %v4654_v3 = vmul.f32 %v6480_v18, %v4584_v29 }
0x3f5f   :  { %v4657_v62 = vpop.permute.xlu0 %4656 }
0x3f60   :  { %v4659_v63 = vmul.f32 %v6480_v18, %v4657_v62 }
0x3f62   :  { %4661 = vrot.lane.b32.xlu1 %v4659_v63, %s6624_s3 }
0x3fd4   :  { %v4662_v9 = vpop.permute.xlu1 %4661 }
0x3fd5   :  { %v4664_v4 = vadd.f32 %v4662_v9, %v4654_v3 }
0x3fd7   :  { %6481 = vtanh.f32 %v4664_v4 }
0x3fd8   :  { %6483 = vpow2.f32 %v5761_v5 }
0x3fe1   :  { %v6482_v13 = vpop.eup %6481 }
0x3fe2   :  { %4667 = vrot.lane.b32.xlu0 %v6482_v13, %s6624_s3  ;;  %v6484_v37 = vpop.eup %6483 }
0x3fe3   :  { %v4648_v44 = vadd.f32 1.0, %v6484_v37 }
0x3fe5   :  { %6485 = vrcp.f32 %v4648_v44 }
0x3fef   :  { %v6486_v45 = vpop.eup %6485 }
0x4054   :  { %v4668_v38 = vpop.permute.xlu0 %4667 }
0x4055   :  { %v4670_v49 = vmul.f32 %v6486_v45, %v4668_v38 }
0x4057   :  { %v4674_v46 = vpack.c.bf16 %v4670_v49, %v4670_v49 }
0x4059   :  { %5762 = vmatmul.mubr.msk.bf16.vlgmr.msra.gmra.mrb[108].mxu1 %vm2514_vm0, %v4674_v46 }
0x405a   :  { %4759 = vmatpush1.bf16.msra.mxu1 %v8177_v20  ;;  %4790 = vmatprep.mubr.bf16.mxu1 %v8579_v60  ;;  %v8594_v20 = vld [vmem:[#allocation24_spill] sm:$0xff] }
0x405b   :  { %4760 = vmatprep.subr.bf16.mxu1 %v8184_v16  ;;  %v2390_v16 = vadd.f32 %v7711_v1, %v8594_v20 }
0x405e   :  { %4761 = vmatpush1.bf16.msra.mxu1 %v8190_v42  ;;  %v2391_v42 = vadd.f32 %v7738_v10, %v8595_v8 }
0x405f   :  { %4762 = vmatprep.subr.bf16.mxu1 %v8196_v0 }
0x4062   :  { %4763 = vmatpush1.bf16.msra.mxu1 %v8202_v43 }
0x4063   :  { %4764 = vmatprep.subr.bf16.mxu1 %v8208_v31 }
0x4066   :  { %4765 = vmatpush1.bf16.msra.mxu1 %v8214_v22 }
0x4067   :  { %4838 = vmatprep.subr.bf16.mxu1 %v8407_v50 }
0x412c   :  { %v4712_v0 = vpop.f32.mrb[108].mxu1 }
0x412d   :  { %v4719_v11 = vadd.f32 %v4712_v0, %v2390_v16  ;;  %v4714_v43 = vpop.f32.mrb[109].mxu1 }
0x412e   :  { %v4720_v53 = vadd.f32 %v4714_v43, %v2391_v42  ;;  %v4716_v31 = vpop.f32.mrb[110].mxu1  ;;  %v8598_v42 = vld [vmem:[#allocation28_spill] sm:$0xff] }
0x412f   :  { %v4717_v57 = vpop.f32.mrb[111].mxu1  ;;  %v5763_v59 = vmul.f32 -1.442695, %v4719_v11  ;;  %v2394_v0 = vadd.f32 %v7711_v1, %v8598_v42  ;;  %v8599_v11 = vld [vmem:[#allocation29_spill] sm:$0xff] }
0x4130   :  { %6487 = vtanh.f32 %v4720_v53  ;;  %v5764_v32 = vmul.f32 -1.442695, %v4720_v53  ;;  %v2395_v43 = vadd.f32 %v7738_v10, %v8599_v11 }
0x4131   :  { %6489 = vpow2.f32 %v5763_v59 }
0x413a   :  { %v6488_v22 = vpop.eup %6487 }
0x413b   :  { %4736 = vrot.lane.b32.xlu1 %v6488_v22, %s6624_s3  ;;  %v6490_v39 = vpop.eup %6489 }
0x413c   :  { %v4727_v54 = vadd.f32 1.0, %v6490_v39 }
0x413e   :  { %6491 = vrcp.f32 %v4727_v54 }
0x4148   :  { %v6492_v14 = vpop.eup %6491 }
0x4149   :  { %v4734_v33 = vmul.f32 %v6492_v14, %v4664_v4 }
0x41ad   :  { %v4737_v61 = vpop.permute.xlu1 %4736 }
0x41ae   :  { %v4739_v7 = vmul.f32 %v6492_v14, %v4737_v61 }
0x41b0   :  { %4741 = vrot.lane.b32.xlu0 %v4739_v7, %s6624_s3 }
0x4222   :  { %v4742_v19 = vpop.permute.xlu0 %4741 }
0x4223   :  { %v4744_v34 = vadd.f32 %v4742_v19, %v4734_v33 }
0x4225   :  { %6493 = vtanh.f32 %v4744_v34 }
0x4226   :  { %6495 = vpow2.f32 %v5764_v32 }
0x422f   :  { %v6494_v24 = vpop.eup %6493 }
0x4230   :  { %4747 = vrot.lane.b32.xlu1 %v6494_v24, %s6624_s3  ;;  %v6496_v21 = vpop.eup %6495 }
0x4231   :  { %v4728_v29 = vadd.f32 1.0, %v6496_v21 }
0x4233   :  { %6497 = vrcp.f32 %v4728_v29 }
0x423d   :  { %v6498_v25 = vpop.eup %6497 }
0x42a2   :  { %v4748_v35 = vpop.permute.xlu1 %4747 }
0x42a3   :  { %v4750_v23 = vmul.f32 %v6498_v25, %v4748_v35 }
0x42a5   :  { %v4754_v47 = vpack.c.bf16 %v4750_v23, %v4750_v23 }
0x42a7   :  { %5765 = vmatmul.mubr.msk.bf16.vlgmr.msra.gmra.mrb[112].mxu1 %vm2514_vm0, %v4754_v47 }
0x42a8   :  { %4839 = vmatpush1.bf16.msra.mxu1 %v8421_v30  ;;  %4870 = vmatprep.mubr.bf16.mxu1 %v8579_v60 }
0x42a9   :  { %4840 = vmatprep.subr.bf16.mxu1 %v8428_v48 }
0x42ac   :  { %4841 = vmatpush1.bf16.msra.mxu1 %v8434_v27 }
0x42ad   :  { %4842 = vmatprep.subr.bf16.mxu1 %v8440_v28 }
0x42b0   :  { %4843 = vmatpush1.bf16.msra.mxu1 %v8446_v40 }
0x42b1   :  { %4844 = vmatprep.subr.bf16.mxu1 %v8452_v26 }
0x42b4   :  { %4845 = vmatpush1.bf16.msra.mxu1 %v8458_v51 }
0x42b5   :  { %4918 = vmatprep.subr.bf16.mxu1 %v8407_v50 }
0x437a   :  { %v4792_v56 = vpop.f32.mrb[112].mxu1 }
0x437b   :  { %v4799_v17 = vadd.f32 %v4792_v56, %v2392_v52  ;;  %v4794_v58 = vpop.f32.mrb[113].mxu1  ;;  %v8601_v56 = vld [vmem:[#allocation31_spill] sm:$0xff] }
0x437c   :  { %v4800_v15 = vadd.f32 %v4794_v58, %v2393_v36  ;;  %v4796_v6 = vpop.f32.mrb[114].mxu1  ;;  %v2396_v36 = vadd.f32 %v7711_v1, %v8600_v55 }
0x437d   :  { %v4797_v12 = vpop.f32.mrb[115].mxu1  ;;  %v5766_v18 = vmul.f32 -1.442695, %v4799_v17 }
0x437e   :  { %6499 = vtanh.f32 %v4800_v15  ;;  %v5767_v45 = vmul.f32 -1.442695, %v4800_v15 }
0x437f   :  { %6501 = vpow2.f32 %v5766_v18 }
0x4388   :  { %v6500_v2 = vpop.eup %6499 }
0x4389   :  { %4816 = vrot.lane.b32.xlu0 %v6500_v2, %s6624_s3  ;;  %v6502_v62 = vpop.eup %6501 }
0x438a   :  { %v4807_v63 = vadd.f32 1.0, %v6502_v62 }
0x438c   :  { %6503 = vrcp.f32 %v4807_v63 }
0x4396   :  { %v6504_v3 = vpop.eup %6503 }
0x4397   :  { %v4814_v13 = vmul.f32 %v6504_v3, %v4744_v34 }
0x43fb   :  { %v4817_v9 = vpop.permute.xlu0 %4816 }
0x43fc   :  { %v4819_v4 = vmul.f32 %v6504_v3, %v4817_v9 }
0x43fe   :  { %4821 = vrot.lane.b32.xlu1 %v4819_v4, %s6624_s3 }
0x4470   :  { %v4822_v5 = vpop.permute.xlu1 %4821 }
0x4471   :  { %v4824_v37 = vadd.f32 %v4822_v5, %v4814_v13 }
0x4473   :  { %6505 = vtanh.f32 %v4824_v37 }
0x4474   :  { %6507 = vpow2.f32 %v5767_v45 }
0x447d   :  { %v6506_v44 = vpop.eup %6505 }
0x447e   :  { %4827 = vrot.lane.b32.xlu0 %v6506_v44, %s6624_s3  ;;  %v6508_v38 = vpop.eup %6507 }
0x447f   :  { %v4808_v49 = vadd.f32 1.0, %v6508_v38  ;;  %v8602_v38 = vld [vmem:[#allocation32_spill] sm:$0xff] }
0x4481   :  { %6509 = vrcp.f32 %v4808_v49  ;;  %v2398_v49 = vadd.f32 %v7711_v1, %v8602_v38 }
0x448b   :  { %v6510_v46 = vpop.eup %6509 }
0x44f0   :  { %v4828_v20 = vpop.permute.xlu0 %4827 }
0x44f1   :  { %v4830_v16 = vmul.f32 %v6510_v46, %v4828_v20  ;;  %v8603_v46 = vld [vmem:[#allocation33_spill] sm:$0xff] }
0x44f2   :  { %v2399_v20 = vadd.f32 %v7738_v10, %v8603_v46 }
0x44f3   :  { %v4834_v8 = vpack.c.bf16 %v4830_v16, %v4830_v16 }
0x44f5   :  { %5768 = vmatmul.mubr.msk.bf16.vlgmr.msra.gmra.mrb[116].mxu1 %vm2514_vm0, %v4834_v8 }
0x44f6   :  { %4919 = vmatpush1.bf16.msra.mxu1 %v8421_v30  ;;  %4950 = vmatprep.mubr.bf16.mxu1 %v8579_v60 }
0x44f7   :  { %4920 = vmatprep.subr.bf16.mxu1 %v8428_v48 }
0x44fa   :  { %4921 = vmatpush1.bf16.msra.mxu1 %v8434_v27 }
0x44fb   :  { %4922 = vmatprep.subr.bf16.mxu1 %v8440_v28 }
0x44fe   :  { %4923 = vmatpush1.bf16.msra.mxu1 %v8446_v40 }
0x44ff   :  { %4924 = vmatprep.subr.bf16.mxu1 %v8452_v26 }
0x4502   :  { %4925 = vmatpush1.bf16.msra.mxu1 %v8458_v51 }
0x4503   :  { %4998 = vmatprep.subr.bf16.mxu1 %v8407_v50 }
0x45c8   :  { %v4872_v53 = vpop.f32.mrb[116].mxu1 }
0x45c9   :  { %v4879_v31 = vadd.f32 %v4872_v53, %v2394_v0  ;;  %v4874_v57 = vpop.f32.mrb[117].mxu1 }
0x45ca   :  { %v4880_v22 = vadd.f32 %v4874_v57, %v2395_v43  ;;  %v4876_v59 = vpop.f32.mrb[118].mxu1 }
0x45cb   :  { %v4877_v39 = vpop.f32.mrb[119].mxu1  ;;  %v5769_v14 = vmul.f32 -1.442695, %v4879_v31 }
0x45cc   :  { %6511 = vtanh.f32 %v4880_v22  ;;  %v5770_v29 = vmul.f32 -1.442695, %v4880_v22 }
0x45cd   :  { %6513 = vpow2.f32 %v5769_v14  ;;  %v6160_v14 = vld [vmem:[%s8547_s5 + $0x8] sm:$0xff]  }
0x45d6   :  { %v6512_v54 = vpop.eup %6511 }
0x45d7   :  { %4896 = vrot.lane.b32.xlu1 %v6512_v54, %s6624_s3  ;;  %v6514_v61 = vpop.eup %6513  ;;  %v6625_v54 = vmov 0.0  }
0x45d8   :  { %v4887_v50 = vadd.f32 1.0, %v6514_v61  ;;  %v6161_v61 = vld [vmem:[%s8547_s5 + $0x10] sm:$0xff]  }
0x45da   :  { %6515 = vrcp.f32 %v4887_v50 }
0x45e4   :  { %v6516_v7 = vpop.eup %6515 }
0x45e5   :  { %v4894_v34 = vmul.f32 %v6516_v7, %v4824_v37 }
0x4649   :  { %v4897_v33 = vpop.permute.xlu1 %4896 }
0x464a   :  { %v4899_v19 = vmul.f32 %v6516_v7, %v4897_v33 }
0x464c   :  { %4901 = vrot.lane.b32.xlu0 %v4899_v19, %s6624_s3  ;;  %v6162_v19 = vld [vmem:[%s8547_s5 + $0x18] sm:$0xff]  }
0x46be   :  { %v4902_v24 = vpop.permute.xlu0 %4901 }
0x46bf   :  { %v4904_v32 = vadd.f32 %v4902_v24, %v4894_v34 }
0x46c1   :  { %6517 = vtanh.f32 %v4904_v32 }
0x46c2   :  { %6519 = vpow2.f32 %v5770_v29 }
0x46cb   :  { %v6518_v21 = vpop.eup %6517 }
0x46cc   :  { %4907 = vrot.lane.b32.xlu1 %v6518_v21, %s6624_s3  ;;  %v6520_v25 = vpop.eup %6519 }
0x46cd   :  { %v4888_v35 = vadd.f32 1.0, %v6520_v25 }
0x46cf   :  { %6521 = vrcp.f32 %v4888_v35 }
0x46d9   :  { %v6522_v23 = vpop.eup %6521 }
0x473e   :  { %v4908_v47 = vpop.permute.xlu1 %4907 }
0x473f   :  { %v4910_v41 = vmul.f32 %v6522_v23, %v4908_v47  ;;  %v5777_v47 = vld [vmem:[%s8548_s6] ss:$0 sm:$0xff] }
0x4741   :  { %v4914_v52 = vpack.c.bf16 %v4910_v41, %v4910_v41 }
0x4743   :  { %5771 = vmatmul.mubr.msk.bf16.vlgmr.msra.gmra.mrb[120].mxu1 %vm2514_vm0, %v4914_v52 }
0x4744   :  { %4999 = vmatpush1.bf16.msra.mxu1 %v8421_v30  ;;  %5030 = vmatprep.mubr.bf16.mxu1 %v8579_v60  ;;  %v2397_v30 = vadd.f32 %v7738_v10, %v8601_v56  ;;  %v6159_v10 = vld [vmem:[%s8547_s5] sm:$0xff]   ;;  %s6627_s5 = smov [#allocation6]  }
0x4745   :  { %5000 = vmatprep.subr.bf16.mxu1 %v8428_v48  ;;  %s5181_s6 = sshll.u32 %s6627_s5, 4  ;;  %s5182_s6 = int_to_ptr.vmem [resolvable:$true] %s5181_s6 }
0x4746   :  { %p6598_p9 = scmp.lt.s32.totalorder %s5182_s6, %s5182_s6 }
0x4748   :  { %5001 = vmatpush1.bf16.msra.mxu1 %v8434_v27 }
0x4749   :  { %5002 = vmatprep.subr.bf16.mxu1 %v8440_v28 }
0x474c   :  { %5003 = vmatpush1.bf16.msra.mxu1 %v8446_v40 }
0x474d   :  { %5004 = vmatprep.subr.bf16.mxu1 %v8452_v26 }
0x4750   :  { %5005 = vmatpush1.bf16.msra.mxu1 %v8458_v51 }
0x4751   :  { %5788 = vmatprep.subr.bf16.mxu1 %v6625_v54 }
0x4816   :  { %v4952_v17 = vpop.f32.mrb[120].mxu1 }
0x4817   :  { %v4959_v60 = vadd.f32 %v4952_v17, %v2396_v36  ;;  %v4954_v58 = vpop.f32.mrb[121].mxu1  ;;  %v8604_v17 = vld [vmem:[#allocation9_spill] sm:$0xff] }
0x4818   :  { %v4960_v48 = vadd.f32 %v4954_v58, %v2397_v30  ;;  %v4956_v15 = vpop.f32.mrb[122].mxu1 }
0x4819   :  { %v4957_v27 = vpop.f32.mrb[123].mxu1  ;;  %v5772_v40 = vmul.f32 -1.442695, %v4959_v60 }
0x481a   :  { %6523 = vtanh.f32 %v4960_v48  ;;  %v5773_v9 = vmul.f32 -1.442695, %v4960_v48 }
0x481b   :  { %6525 = vpow2.f32 %v5772_v40 }
0x4824   :  { %v6524_v28 = vpop.eup %6523 }
0x4825   :  { %4976 = vrot.lane.b32.xlu0 %v6524_v28, %s6624_s3  ;;  %v6526_v26 = vpop.eup %6525 }
0x4826   :  { %v4967_v51 = vadd.f32 1.0, %v6526_v26 }
0x4828   :  { %6527 = vrcp.f32 %v4967_v51 }
0x4832   :  { %v6528_v6 = vpop.eup %6527 }
0x4833   :  { %v4974_v18 = vmul.f32 %v6528_v6, %v4904_v32 }
0x4897   :  { %v4977_v12 = vpop.permute.xlu0 %4976 }
0x4898   :  { %v4979_v2 = vmul.f32 %v6528_v6, %v4977_v12 }
0x489a   :  { %4981 = vrot.lane.b32.xlu1 %v4979_v2, %s6624_s3 }
0x490c   :  { %v4982_v62 = vpop.permute.xlu1 %4981 }
0x490d   :  { %v4984_v63 = vadd.f32 %v4982_v62, %v4974_v18 }
0x490f   :  { %6529 = vtanh.f32 %v4984_v63 }
0x4910   :  { %6531 = vpow2.f32 %v5773_v9 }
0x4919   :  { %v6530_v3 = vpop.eup %6529 }
0x491a   :  { %4987 = vrot.lane.b32.xlu0 %v6530_v3, %s6624_s3  ;;  %v6532_v4 = vpop.eup %6531 }
0x491b   :  { %v4968_v13 = vadd.f32 1.0, %v6532_v4 }
0x491d   :  { %6533 = vrcp.f32 %v4968_v13 }
0x4927   :  { %v6534_v5 = vpop.eup %6533 }
0x498c   :  { %v4988_v37 = vpop.permute.xlu0 %4987 }
0x498d   :  { %v4990_v44 = vmul.f32 %v6534_v5, %v4988_v37 }
0x498f   :  { %v4994_v45 = vpack.c.bf16 %v4990_v44, %v4990_v44 }
0x4991   :  { %5774 = vmatmul.mubr.msk.bf16.vlgmr.msra.gmra.mrb[124].mxu1 %vm2514_vm0, %v4994_v45 }
0x4992   :  { %5789 = vmatpush3.bf16.msra.mxu1 %v6159_v10  ;;  %5796 = vmatprep.mubr.msk.bf16.mxu1 %vm6626_vm1, %v6625_v54 }
0x4993   :  { %5790 = vmatprep.subr.bf16.mxu1 %v6625_v54 }
0x4996   :  { %5791 = vmatpush3.bf16.msra.mxu1 %v6160_v14 }
0x4997   :  { %5792 = vmatprep.subr.bf16.mxu1 %v6625_v54 }
0x499a   :  { %5793 = vmatpush3.bf16.msra.mxu1 %v6161_v61 }
0x499b   :  { %5794 = vmatprep.subr.bf16.mxu1 %v6625_v54 }
0x499e   :  { %5795 = vmatpush3.bf16.msra.mxu1 %v6162_v19 }
0x4a64   :  { %v5032_v16 = vpop.f32.mrb[124].mxu1 }
0x4a65   :  { %v5039_v8 = vadd.f32 %v5032_v16, %v2398_v49  ;;  %v5034_v42 = vpop.f32.mrb[125].mxu1 }
0x4a66   :  { %v5040_v0 = vadd.f32 %v5034_v42, %v2399_v20  ;;  %v5036_v11 = vpop.f32.mrb[126].mxu1 }
0x4a67   :  { %v5037_v43 = vpop.f32.mrb[127].mxu1  ;;  %v5775_v31 = vmul.f32 -1.442695, %v5039_v8 }
0x4a68   :  { %6535 = vtanh.f32 %v5040_v0  ;;  %v5776_v24 = vmul.f32 -1.442695, %v5040_v0 }
0x4a69   :  { %6537 = vpow2.f32 %v5775_v31 }
0x4a72   :  { %v6536_v53 = vpop.eup %6535 }
0x4a73   :  { %5056 = vrot.lane.b32.xlu1 %v6536_v53, %s6624_s3  ;;  %v6538_v57 = vpop.eup %6537 }
0x4a74   :  { %v5047_v22 = vadd.f32 1.0, %v6538_v57 }
0x4a76   :  { %6539 = vrcp.f32 %v5047_v22 }
0x4a80   :  { %v6540_v59 = vpop.eup %6539 }
0x4a81   :  { %v5054_v50 = vmul.f32 %v6540_v59, %v4984_v63 }
0x4ae5   :  { %v5057_v1 = vpop.permute.xlu1 %5056 }
0x4ae6   :  { %v5059_v39 = vmul.f32 %v6540_v59, %v5057_v1 }
0x4ae8   :  { %5061 = vrot.lane.b32.xlu0 %v5059_v39, %s6624_s3 }
0x4b5a   :  { %v5062_v7 = vpop.permute.xlu0 %5061 }
0x4b5b   :  { %v5064_v33 = vadd.f32 %v5062_v7, %v5054_v50 }
0x4b5d   :  { %6541 = vtanh.f32 %v5064_v33 }
0x4b5e   :  { %6543 = vpow2.f32 %v5776_v24 }
0x4b67   :  { %v6542_v34 = vpop.eup %6541 }
0x4b68   :  { %5067 = vrot.lane.b32.xlu1 %v6542_v34, %s6624_s3  ;;  %v6544_v32 = vpop.eup %6543  ;;  %s6593_s3 = scalar_lea.vmem %s5182_s6, 128 }
0x4b69   :  { %v5048_v21 = vadd.f32 1.0, %v6544_v32  ;;  %p6594_p8 = scmp.ne.s32.totalorder %s5182_s6, %s6593_s3  ;;  %p6599_p10 = scmp.lt.s32.totalorder %s6593_s3, %s6593_s3 }
0x4b6b   :  { %6545 = vrcp.f32 %v5048_v21  ;;  %p6600_p11 = por %p6599_p10, %p6598_p9 }
0x4b6d   :  { %p6601_p12 = pnand %p6600_p11, %p6594_p8 }
0x4b75   :  { %v6546_v29 = vpop.eup %6545 }
0x4bda   :  { %v5068_v25 = vpop.permute.xlu1 %5067 }
0x4bdb   :  { %v5070_v35 = vmul.f32 %v6546_v29, %v5068_v25 }
0x4bdd   :  { %v5071_v23 = vpack.c.bf16 %v5070_v35, %v5070_v35 }
0x4bdf   :  { %5797 = vmatmul.mubr.msk.bf16.vlgmr.msra.gmra.mrb[128].mxu1 %vm2514_vm0, %v5071_v23 }
0x4cb2   :  { %v5148_v41 = vpop.f32.mrb[128].mxu1 }
0x4cb3   :  { %v5149_v52 = vadd.f32 %v5777_v47, %v5148_v41  ;;  %v5798_v55 = vpop.f32.mrb[129].mxu1 }
0x4cb4   :  { %v5151_v36 = vpop.f32.mrb[130].mxu1 }
0x4cb5   :  { %5154 = vst [vmem:[#allocation6] sm:$0xff] %v5149_v52  ;;  %5155 = vmax.xlane.f32.xlu0 %v5149_v52  ;;  %v5799_v56 = vpop.f32.mrb[131].mxu1 }
0x4d42   :  { %v5156_v30 = vpop.xlane.xlu0 %5155 }
0x4d43   :  { %vm5157_vm2 = vcmp.eq.f32.partialorder %v5149_v52, %v5156_v30 }
0x4d44   :  { %v5158_v60 = vsel %vm5157_vm2, %v8604_v17, 128 }
0x4d45   :  { %v5160_v58 = vshra.s32 %v5158_v60, 16  ;;  %v5159_v15 = vand.u32 65535, %v5158_v60 }
0x4d47   :  { %v5162_v48 = vcvt.s32.f32 %v5160_v58  ;;  %v5161_v27 = vcvt.s32.f32 %v5159_v15 }
0x4d49   :  { %5163 = vmin.xlane.f32.xlu1 %v5162_v48 }
0x4dd6   :  { %v5164_v28 = vpop.xlane.xlu1 %5163 }
0x4dd7   :  { %vm5165_vm3 = vcmp.eq.f32.partialorder %v5162_v48, %v5164_v28 }
0x4dd8   :  { %v5166_v40 = vsel %vm5165_vm3, %v5161_v27, inf }
0x4dd9   :  { %5167 = vmin.xlane.f32.xlu0 %v5166_v40 }
0x4dda   :  { %6604 = shalt.err (!%p6601_p12)
}
0x4ddb   :  { %s6605_s10 = scalar_lea.hbm %s8549_s7, 128 }
0x4ddc   :  { %p6606_p13 = scmp.ne.s32.totalorder %s8549_s7, %s6605_s10  ;;  %p6609_p0 = scmp.lt.u32.totalorder %s6605_s10, %s8549_s7 }
0x4dde   :  { %p6611_p1 = pnand %p6609_p0, %p6606_p13 }
0x4de0   :  { %6614 = shalt.err (!%p6611_p1)
}
0x4de1   :  { %5184 = dma.vmem_to_hbm [thread:$0]  %s5182_s6, 128, %s8549_s7, [#allocation5]   ;;  %v5170_v26 = vcvt.f32.s32 %v5164_v28  ;;  %vm5173_vm4 = vcmask 7168  }
0x4de3   :  { %v5171_v6 = vshll.u32 %v5170_v26, 16 }
0x4e66   :  { %v5168_v51 = vpop.xlane.xlu0 %5167 }
0x4e67   :  { %v5169_v12 = vcvt.f32.s32 %v5168_v51 }
0x4e69   :  { %v5172_v2 = vadd.s32 %v5171_v6, %v5169_v12 }
0x4e6b   :  { %5174 = vst.msk [vmem:[%s8550_s8] sm:$0xff] %vm5173_vm4, %v5172_v2 }
0x4e6c   :  { %6617 = dma.done.wait [#allocation5], 128  }
0x4e6d   :  { %6618 = vsyncadd [#allocation5], 4294967168 }
0x4e6e   :  { %5192 = vsyncpa [#allocation4], 1 }
0x4e6f   :  { %5193 = vsyncpa [#allocation5], 1 }

</bundles_post_ra>
